<compile_context>
chip_gen: v5e
topology: v5e:2x2
jax: 0.10.0
libtpu: 0.0.40
codegen_flags: <defaults>
</compile_context>

<pallas_src>
import functools

import jax
import jax.numpy as jnp
from jax.experimental import pallas as pl
from jax.experimental.pallas import tpu as pltpu


# ---------------------------------------------------------------------------
# Tiling helpers
# ---------------------------------------------------------------------------

def _choose_tm(n, bytes_per_elem=2, max_block_bytes=8 * 1024 * 1024):
    """Largest row block (multiple of 16 sublanes) whose bf16 A tile fits the budget."""
    if n <= 256:
        return n
    budget_rows = max(16, (max_block_bytes // max(n * bytes_per_elem, 1)) // 16 * 16)
    tm = min(n, 1024, budget_rows)
    tm = max(16, (tm // 16) * 16)
    return min(tm, n)


def _vmem_limit_bytes(n, cin, cout, tm):
    a = 2 * tm * n * 2                         # double-buffered bf16 adjacency block
    x = n * cin * 4                            # resident node features (loaded once)
    w = 8 * cin * max(cout, cin) * 4           # weights (generous)
    o = 6 * tm * max(cout, cin) * 4            # up to 3 double-buffered output blocks
    est = a + x + w + o + (8 << 20)            # headroom for compiler scratch
    return int(min(max(est, 32 << 20), 56 << 20))


# ---------------------------------------------------------------------------
# Kernel 1: eval-BatchNorm + SAGEConv (+ReLU), tiled over row blocks of A
# ---------------------------------------------------------------------------

def _sage_layer_kernel(a_ref, x_ref, xt_ref, scale_ref, shift_ref,
                       wl_ref, wr_ref, b_ref, o_ref, *, activation):
    # Eval-mode BatchNorm fused in as an affine on the input features
    # (scale=1, shift=0 makes it the identity for the first layer).
    xb = x_ref[...] * scale_ref[...] + shift_ref[...]                  # [N, Cin] f32
    # Neighbor mean aggregation for this row block: bf16 MXU, f32 accumulate.
    agg = jnp.dot(a_ref[...], xb.astype(jnp.bfloat16),
                  preferred_element_type=jnp.float32)                  # [TM, Cin]
    # Self term only needs this row block of the (BN'd) features.
    xb_t = xt_ref[...] * scale_ref[...] + shift_ref[...]               # [TM, Cin]
    out = (jnp.dot(agg, wl_ref[...], preferred_element_type=jnp.float32)
           + jnp.dot(xb_t, wr_ref[...], preferred_element_type=jnp.float32)
           + b_ref[...])
    if activation == "relu":
        out = jnp.maximum(out, 0.0)
    o_ref[...] = out


def sage_layer(adj_bf16, x, scale, shift, wl, wr, b, *, activation="relu", tm=None):
    n, cin = x.shape
    cout = wl.shape[1]
    tm = _choose_tm(n) if tm is None else min(tm, n)
    grid = (pl.cdiv(n, tm),)
    kern = functools.partial(_sage_layer_kernel, activation=activation)
    return pl.pallas_call(
        kern,
        out_shape=jax.ShapeDtypeStruct((n, cout), jnp.float32),
        grid=grid,
        in_specs=[
            pl.BlockSpec((tm, n), lambda i: (i, 0)),       # A row block (bf16)
            pl.BlockSpec((n, cin), lambda i: (0, 0)),      # X resident across grid
            pl.BlockSpec((tm, cin), lambda i: (i, 0)),     # X row block (self term)
            pl.BlockSpec((1, cin), lambda i: (0, 0)),      # BN scale
            pl.BlockSpec((1, cin), lambda i: (0, 0)),      # BN shift
            pl.BlockSpec((cin, cout), lambda i: (0, 0)),   # W_l
            pl.BlockSpec((cin, cout), lambda i: (0, 0)),   # W_r
            pl.BlockSpec((1, cout), lambda i: (0, 0)),     # bias
        ],
        out_specs=pl.BlockSpec((tm, cout), lambda i: (i, 0)),
        compiler_params=pltpu.CompilerParams(
            dimension_semantics=("parallel",),
            vmem_limit_bytes=_vmem_limit_bytes(n, cin, cout, tm),
        ),
    )(adj_bf16, x, x, scale, shift, wl, wr, b)


# ---------------------------------------------------------------------------
# Kernel 2: fused node-attention split + three readout heads (stacked weights)
# ---------------------------------------------------------------------------

def _heads_kernel(a_ref, h_ref, ht_ref, wd_ref, db_ref, wagg_ref, wself_ref, b_ref,
                  slab_ref, xo_relu_ref, xc_relu_ref, *, out_dim):
    h = h_ref[...]                                                     # [N, H] f32
    # 2-way softmax via sigmoid of the logit difference (VPU reduce + EUP; no MXU).
    d = jnp.sum(h * wd_ref[...], axis=-1, keepdims=True) + db_ref[...]
    att0 = jax.nn.sigmoid(d)                                           # softmax col 0
    xo = att0 * h
    xc = h - xo                                                        # (1 - att0) * h
    # Single aggregation matmul over the lane-concat [xo | xc]; the ctx+obj head
    # reuses agg_o + agg_c through the stacked weight matrix (linearity).
    cat = jnp.concatenate([xo, xc], axis=1).astype(jnp.bfloat16)       # [N, 2H]
    agg = jnp.dot(a_ref[...], cat, preferred_element_type=jnp.float32) # [TM, 2H]
    # Row block of xo / xc for the self term and the relu outputs.
    h_t = ht_ref[...]
    d_t = jnp.sum(h_t * wd_ref[...], axis=-1, keepdims=True) + db_ref[...]
    a0_t = jax.nn.sigmoid(d_t)
    xo_t = a0_t * h_t
    xc_t = h_t - xo_t
    xo_relu_ref[...] = jnp.maximum(xo_t, 0.0)
    xc_relu_ref[...] = jnp.maximum(xc_t, 0.0)
    cat_t = jnp.concatenate([xo_t, xc_t], axis=1)                      # [TM, 2H] f32
    # Packed logits [TM, 3*out_dim]: columns are [objects | context | ctx+obj].
    logits = (jnp.dot(agg, wagg_ref[...], preferred_element_type=jnp.float32)
              + jnp.dot(cat_t, wself_ref[...], preferred_element_type=jnp.float32)
              + b_ref[...])
    # Per-head log_softmax, then ONE full-width store of the packed slab.
    segs = []
    for head in range(3):
        lo, hi = head * out_dim, (head + 1) * out_dim
        seg = logits[:, lo:hi]
        m = jnp.max(seg, axis=-1, keepdims=True)
        lse = m + jnp.log(jnp.sum(jnp.exp(seg - m), axis=-1, keepdims=True))
        segs.append(seg - lse)
    slab_ref[...] = jnp.concatenate(segs, axis=1)


def fused_heads(adj_bf16, h, wd, db, w_agg, w_self, b_pack, *, out_dim, tm=None):
    n, hid = h.shape
    tm = _choose_tm(n) if tm is None else min(tm, n)
    grid = (pl.cdiv(n, tm),)
    kern = functools.partial(_heads_kernel, out_dim=out_dim)
    return pl.pallas_call(
        kern,
        out_shape=(
            jax.ShapeDtypeStruct((n, 3 * out_dim), jnp.float32),   # packed log-probs
            jax.ShapeDtypeStruct((n, hid), jnp.float32),           # relu(xo)
            jax.ShapeDtypeStruct((n, hid), jnp.float32),           # relu(xc)
        ),
        grid=grid,
        in_specs=[
            pl.BlockSpec((tm, n), lambda i: (i, 0)),               # A row block (bf16)
            pl.BlockSpec((n, hid), lambda i: (0, 0)),              # h resident
            pl.BlockSpec((tm, hid), lambda i: (i, 0)),             # h row block
            pl.BlockSpec((1, hid), lambda i: (0, 0)),              # att w0 - w1
            pl.BlockSpec((1, 1), lambda i: (0, 0)),                # att b0 - b1
            pl.BlockSpec((2 * hid, 3 * out_dim), lambda i: (0, 0)),  # stacked Wl pack
            pl.BlockSpec((2 * hid, 3 * out_dim), lambda i: (0, 0)),  # stacked Wr pack
            pl.BlockSpec((1, 3 * out_dim), lambda i: (0, 0)),      # packed bias
        ],
        out_specs=(
            pl.BlockSpec((tm, 3 * out_dim), lambda i: (i, 0)),
            pl.BlockSpec((tm, hid), lambda i: (i, 0)),
            pl.BlockSpec((tm, hid), lambda i: (i, 0)),
        ),
        compiler_params=pltpu.CompilerParams(
            dimension_semantics=("parallel",),
            vmem_limit_bytes=_vmem_limit_bytes(n, hid, max(3 * out_dim, hid), tm),
        ),
    )(adj_bf16, h, h, wd, db, w_agg, w_self, b_pack)


# ---------------------------------------------------------------------------
# Glue: graph lowering, parameter init, full forward, f32 reference
# ---------------------------------------------------------------------------

def edge_index_to_mean_adj(edge_index, num_nodes):
    src, dst = edge_index[0], edge_index[1]
    a = jnp.zeros((num_nodes, num_nodes), jnp.float32).at[dst, src].add(1.0)
    deg = jnp.sum(a, axis=1, keepdims=True)
    return a / jnp.maximum(deg, 1.0)   # isolated nodes aggregate to 0 (as in PyG)


def init_sage_params(key, in_dim, out_dim):
    k1, k2, k3 = jax.random.split(key, 3)
    s = 1.0 / jnp.sqrt(jnp.float32(in_dim))
    wl = jax.random.uniform(k1, (in_dim, out_dim), jnp.float32, -s, s)
    wr = jax.random.uniform(k2, (in_dim, out_dim), jnp.float32, -s, s)
    b = jax.random.uniform(k3, (1, out_dim), jnp.float32, -s, s)
    return (wl, wr, b)


def init_causal_sage(key, in_dim, hid_dim, out_dim, num_layers):
    keys = jax.random.split(key, num_layers + 6)
    bn_eps = 1e-5
    bn_scale = jnp.full((1, hid_dim), 1.0 / jnp.sqrt(1.0 + bn_eps), jnp.float32)
    bn_shift = jnp.full((1, hid_dim), 1e-4, jnp.float32)
    s_att = 1.0 / jnp.sqrt(jnp.float32(hid_dim))
    return {
        "conv_feat": init_sage_params(keys[0], in_dim, hid_dim),
        "bns": [(bn_scale, bn_shift) for _ in range(num_layers)],
        "convs": [init_sage_params(keys[1 + i], hid_dim, hid_dim)
                  for i in range(num_layers)],
        "att_w": jax.random.uniform(keys[num_layers + 1], (hid_dim, 2),
                                    jnp.float32, -s_att, s_att),
        "att_b": jax.random.uniform(keys[num_layers + 2], (1, 2),
                                    jnp.float32, -s_att, s_att),
        "context": init_sage_params(keys[num_layers + 3], hid_dim, out_dim),
        "objects": init_sage_params(keys[num_layers + 4], hid_dim, out_dim),
        "ctx_obj": init_sage_params(keys[num_layers + 5], hid_dim, out_dim),
    }


def causal_sage_forward(params, x, adj_bf16, *, tm=None):
    n, in_dim = x.shape
    hid = params["att_w"].shape[0]
    out_dim = params["objects"][0].shape[1]

    # x = relu(conv_feat(x)); dropout is identity in eval mode.
    ident = (jnp.ones((1, in_dim), jnp.float32), jnp.zeros((1, in_dim), jnp.float32))
    h = sage_layer(adj_bf16, x, ident[0], ident[1], *params["conv_feat"],
                   activation="relu", tm=tm)
    # per-layer: fused eval-BatchNorm + SAGEConv + relu (single kernel each).
    for (scale, shift), (wl, wr, b) in zip(params["bns"], params["convs"]):
        h = sage_layer(adj_bf16, h, scale, shift, wl, wr, b, activation="relu", tm=tm)

    # Pack / stack the three readout heads (pure JAX, tiny, folded under jit).
    wl_o, wr_o, b_o = params["objects"]
    wl_c, wr_c, b_c = params["context"]
    wl_x, wr_x, b_x = params["ctx_obj"]
    z = jnp.zeros((hid, out_dim), jnp.float32)
    # Rows 0..hid multiply the xo part; rows hid..2*hid multiply the xc part.
    w_agg = jnp.concatenate(
        [jnp.concatenate([wl_o, z, wl_x], axis=1),
         jnp.concatenate([z, wl_c, wl_x], axis=1)], axis=0)   # (2H, 3*out_dim)
    w_self = jnp.concatenate(
        [jnp.concatenate([wr_o, z, wr_x], axis=1),
         jnp.concatenate([z, wr_c, wr_x], axis=1)], axis=0)   # (2H, 3*out_dim)
    b_pack = jnp.concatenate([b_o, b_c, b_x], axis=1)
    # 2-way softmax -> sigmoid of the logit difference.
    wd = (params["att_w"][:, 0] - params["att_w"][:, 1]).reshape(1, hid)
    db = (params["att_b"][:, 0] - params["att_b"][:, 1]).reshape(1, 1)

    # TODO(synk): with_random=True would apply a host-side random.shuffle permutation
    # to xc before the ctx+obj head; with args.with_random=False it is the identity,
    # so 'add' mode reduces to A@(xc+xo) = A@xc + A@xo inside the fused kernel.
    slab, xo_relu, xc_relu = fused_heads(adj_bf16, h, wd, db, w_agg, w_self, b_pack,
                                         out_dim=out_dim, tm=tm)
    xo_logis = slab[:, :out_dim]
    xc_logis = slab[:, out_dim:2 * out_dim]
    xco_logis = slab[:, 2 * out_dim:]
    return xo_logis, xc_logis, xco_logis, xo_relu, xc_relu


def causal_sage_reference(params, x, adj_f32):
    """Pure-JAX f32 reference mirroring the PyTorch module (eval mode)."""
    def sage(a, xx, p):
        wl, wr, b = p
        return (a @ xx) @ wl + xx @ wr + b

    h = jax.nn.relu(sage(adj_f32, x, params["conv_feat"]))
    for (scale, shift), p in zip(params["bns"], params["convs"]):
        h = jax.nn.relu(sage(adj_f32, h * scale + shift, p))
    att = jax.nn.softmax(h @ params["att_w"] + params["att_b"], axis=-1)
    xo = att[:, 0:1] * h
    xc = att[:, 1:2] * h
    xo_logis = jax.nn.log_softmax(sage(adj_f32, xo, params["objects"]), axis=-1)
    xc_logis = jax.nn.log_softmax(sage(adj_f32, xc, params["context"]), axis=-1)
    xco_logis = jax.nn.log_softmax(sage(adj_f32, xc + xo, params["ctx_obj"]), axis=-1)
    return xo_logis, xc_logis, xco_logis, jax.nn.relu(xo), jax.nn.relu(xc)


if __name__ == "__main__":
    N, E = 128, 512
    in_dim, hid_dim, out_dim, num_layers = 8, 32, 4, 2

    key = jax.random.PRNGKey(0)
    k_x, k_e, k_p = jax.random.split(key, 3)

    x = jax.random.normal(k_x, (N, in_dim), jnp.float32)
    edge_index = jax.random.randint(k_e, (2, E), 0, N)
    adj_f32 = edge_index_to_mean_adj(edge_index, N)
    adj = adj_f32.astype(jnp.bfloat16)    # bf16 adjacency for the MXU (f32 accumulate)

    params = init_causal_sage(k_p, in_dim, hid_dim, out_dim, num_layers)

    # tm=64 -> grid=(2,) so the row-block pipelining is actually exercised.
    fwd = jax.jit(functools.partial(causal_sage_forward, tm=64))
    outs = jax.block_until_ready(fwd(params, x, adj))

    xo_logis, xc_logis, xco_logis, xo_relu, xc_relu = outs
    assert xo_logis.shape == (N, out_dim)
    assert xc_logis.shape == (N, out_dim)
    assert xco_logis.shape == (N, out_dim)
    assert xo_relu.shape == (N, hid_dim)
    assert xc_relu.shape == (N, hid_dim)

    # Validate against the f32 reference (loose tolerance for the bf16 adjacency path).
    ref = causal_sage_reference(params, x, adj_f32)
    for name, got, want in zip(
            ("xo_logis", "xc_logis", "xco_logis", "xo_relu", "xc_relu"), outs, ref):
        err = float(jnp.max(jnp.abs(got - want)))
        assert err < 5e-2, f"{name}: max abs err {err}"

    print("KERNEL_OK")
</pallas_src>

<mosaic_0001>
module attributes {stable_mosaic.version = 11 : i64} {
  func.func @_sage_layer_kernel(%arg0: i32, %arg1: memref<64x128xbf16, #tpu.memory_space<vmem>>, %arg2: memref<128x32xf32, #tpu.memory_space<vmem>>, %arg3: memref<64x32xf32, #tpu.memory_space<vmem>>, %arg4: memref<1x32xf32, #tpu.memory_space<vmem>>, %arg5: memref<1x32xf32, #tpu.memory_space<vmem>>, %arg6: memref<32x32xf32, #tpu.memory_space<vmem>>, %arg7: memref<32x32xf32, #tpu.memory_space<vmem>>, %arg8: memref<1x32xf32, #tpu.memory_space<vmem>>, %arg9: memref<64x32xf32, #tpu.memory_space<vmem>>) attributes {dimension_semantics = [#tpu.dimension_semantics<parallel>], iteration_bounds = array<i64: 2>, scalar_prefetch = 0 : i64, scratch_operands = 0 : i64, tpu.core_type = #tpu.core_type<tc>, window_params = [{transform_indices = @transform_0, window_bounds = array<i64: 64, 128>}, {pipeline_mode = #tpu.pipeline_mode<synchronous>, transform_indices = @transform_1, window_bounds = array<i64: 128, 32>}, {transform_indices = @transform_2, window_bounds = array<i64: 64, 32>}, {pipeline_mode = #tpu.pipeline_mode<synchronous>, transform_indices = @transform_3, window_bounds = array<i64: 1, 32>}, {pipeline_mode = #tpu.pipeline_mode<synchronous>, transform_indices = @transform_4, window_bounds = array<i64: 1, 32>}, {pipeline_mode = #tpu.pipeline_mode<synchronous>, transform_indices = @transform_5, window_bounds = array<i64: 32, 32>}, {pipeline_mode = #tpu.pipeline_mode<synchronous>, transform_indices = @transform_6, window_bounds = array<i64: 32, 32>}, {pipeline_mode = #tpu.pipeline_mode<synchronous>, transform_indices = @transform_7, window_bounds = array<i64: 1, 32>}, {transform_indices = @transform_8, window_bounds = array<i64: 64, 32>}]} {
    %c0 = arith.constant 0 : index
    %c0_0 = arith.constant 0 : index
    %0 = vector.load %arg2[%c0, %c0_0] : memref<128x32xf32, #tpu.memory_space<vmem>>, vector<128x32xf32>
    %c0_1 = arith.constant 0 : index
    %c0_2 = arith.constant 0 : index
    %1 = vector.load %arg4[%c0_1, %c0_2] : memref<1x32xf32, #tpu.memory_space<vmem>>, vector<1x32xf32>
    %2 = vector.broadcast %1 : vector<1x32xf32> to vector<128x32xf32>
    %3 = arith.mulf %0, %2 : vector<128x32xf32>
    %c0_3 = arith.constant 0 : index
    %c0_4 = arith.constant 0 : index
    %4 = vector.load %arg5[%c0_3, %c0_4] : memref<1x32xf32, #tpu.memory_space<vmem>>, vector<1x32xf32>
    %5 = vector.broadcast %4 : vector<1x32xf32> to vector<128x32xf32>
    %6 = arith.addf %3, %5 : vector<128x32xf32>
    %c0_5 = arith.constant 0 : index
    %c0_6 = arith.constant 0 : index
    %7 = vector.load %arg1[%c0_5, %c0_6] : memref<64x128xbf16, #tpu.memory_space<vmem>>, vector<64x128xbf16>
    %8 = arith.truncf %6 : vector<128x32xf32> to vector<128x32xbf16>
    %cst = arith.constant dense<0.000000e+00> : vector<64x32xf32>
    %9 = tpu.matmul %7, %8, %cst {dimension_numbers = #tpu.dot_dimension_numbers<[1], [0], [0], [1], [0, 0, 1, 1], [], []>} : vector<64x128xbf16>, vector<128x32xbf16>, vector<64x32xf32> -> vector<64x32xf32>
    %c0_7 = arith.constant 0 : index
    %c0_8 = arith.constant 0 : index
    %10 = vector.load %arg3[%c0_7, %c0_8] : memref<64x32xf32, #tpu.memory_space<vmem>>, vector<64x32xf32>
    %c0_9 = arith.constant 0 : index
    %c0_10 = arith.constant 0 : index
    %11 = vector.load %arg4[%c0_9, %c0_10] : memref<1x32xf32, #tpu.memory_space<vmem>>, vector<1x32xf32>
    %12 = vector.broadcast %11 : vector<1x32xf32> to vector<64x32xf32>
    %13 = arith.mulf %10, %12 : vector<64x32xf32>
    %c0_11 = arith.constant 0 : index
    %c0_12 = arith.constant 0 : index
    %14 = vector.load %arg5[%c0_11, %c0_12] : memref<1x32xf32, #tpu.memory_space<vmem>>, vector<1x32xf32>
    %15 = vector.broadcast %14 : vector<1x32xf32> to vector<64x32xf32>
    %16 = arith.addf %13, %15 : vector<64x32xf32>
    %c0_13 = arith.constant 0 : index
    %c0_14 = arith.constant 0 : index
    %17 = vector.load %arg6[%c0_13, %c0_14] : memref<32x32xf32, #tpu.memory_space<vmem>>, vector<32x32xf32>
    %cst_15 = arith.constant dense<0.000000e+00> : vector<64x32xf32>
    %18 = tpu.matmul %9, %17, %cst_15 {dimension_numbers = #tpu.dot_dimension_numbers<[1], [0], [0], [1], [0, 0, 1, 1], [], []>} : vector<64x32xf32>, vector<32x32xf32>, vector<64x32xf32> -> vector<64x32xf32>
    %c0_16 = arith.constant 0 : index
    %c0_17 = arith.constant 0 : index
    %19 = vector.load %arg7[%c0_16, %c0_17] : memref<32x32xf32, #tpu.memory_space<vmem>>, vector<32x32xf32>
    %cst_18 = arith.constant dense<0.000000e+00> : vector<64x32xf32>
    %20 = tpu.matmul %16, %19, %cst_18 {dimension_numbers = #tpu.dot_dimension_numbers<[1], [0], [0], [1], [0, 0, 1, 1], [], []>} : vector<64x32xf32>, vector<32x32xf32>, vector<64x32xf32> -> vector<64x32xf32>
    %21 = arith.addf %18, %20 : vector<64x32xf32>
    %c0_19 = arith.constant 0 : index
    %c0_20 = arith.constant 0 : index
    %22 = vector.load %arg8[%c0_19, %c0_20] : memref<1x32xf32, #tpu.memory_space<vmem>>, vector<1x32xf32>
    %23 = vector.broadcast %22 : vector<1x32xf32> to vector<64x32xf32>
    %24 = arith.addf %21, %23 : vector<64x32xf32>
    %cst_21 = arith.constant 0.000000e+00 : f32
    %25 = vector.broadcast %cst_21 : f32 to vector<64x32xf32>
    %26 = arith.maximumf %24, %25 : vector<64x32xf32>
    %c0_22 = arith.constant 0 : index
    %c0_23 = arith.constant 0 : index
    %27 = vector.load %arg9[%c0_22, %c0_23] : memref<64x32xf32, #tpu.memory_space<vmem>>, vector<64x32xf32>
    tpu.vector_store %arg9[%c0_22, %c0_23], %26 {strides = array<i32>} : memref<64x32xf32, #tpu.memory_space<vmem>>, vector<64x32xf32>,
    return
  }
  func.func @transform_0(%arg0: i32) -> (i32, i32) {
    %c0_i32 = arith.constant 0 : i32
    %c0_i32_0 = arith.constant 0 : i32
    return %arg0, %c0_i32 : i32, i32
  }
  func.func @transform_1(%arg0: i32) -> (i32, i32) {
    %c0_i32 = arith.constant 0 : i32
    %c0_i32_0 = arith.constant 0 : i32
    %c0_i32_1 = arith.constant 0 : i32
    return %c0_i32, %c0_i32_0 : i32, i32
  }
  func.func @transform_2(%arg0: i32) -> (i32, i32) {
    %c0_i32 = arith.constant 0 : i32
    %c0_i32_0 = arith.constant 0 : i32
    return %arg0, %c0_i32 : i32, i32
  }
  func.func @transform_3(%arg0: i32) -> (i32, i32) {
    %c0_i32 = arith.constant 0 : i32
    %c0_i32_0 = arith.constant 0 : i32
    %c0_i32_1 = arith.constant 0 : i32
    return %c0_i32, %c0_i32_0 : i32, i32
  }
  func.func @transform_4(%arg0: i32) -> (i32, i32) {
    %c0_i32 = arith.constant 0 : i32
    %c0_i32_0 = arith.constant 0 : i32
    %c0_i32_1 = arith.constant 0 : i32
    return %c0_i32, %c0_i32_0 : i32, i32
  }
  func.func @transform_5(%arg0: i32) -> (i32, i32) {
    %c0_i32 = arith.constant 0 : i32
    %c0_i32_0 = arith.constant 0 : i32
    %c0_i32_1 = arith.constant 0 : i32
    return %c0_i32, %c0_i32_0 : i32, i32
  }
  func.func @transform_6(%arg0: i32) -> (i32, i32) {
    %c0_i32 = arith.constant 0 : i32
    %c0_i32_0 = arith.constant 0 : i32
    %c0_i32_1 = arith.constant 0 : i32
    return %c0_i32, %c0_i32_0 : i32, i32
  }
  func.func @transform_7(%arg0: i32) -> (i32, i32) {
    %c0_i32 = arith.constant 0 : i32
    %c0_i32_0 = arith.constant 0 : i32
    %c0_i32_1 = arith.constant 0 : i32
    return %c0_i32, %c0_i32_0 : i32, i32
  }
  func.func @transform_8(%arg0: i32) -> (i32, i32) {
    %c0_i32 = arith.constant 0 : i32
    %c0_i32_0 = arith.constant 0 : i32
    return %arg0, %c0_i32 : i32, i32
  }
}

module attributes {stable_mosaic.version = 11 : i64} {
  func.func @_sage_layer_kernel(%arg0: i32, %arg1: memref<64x128xbf16, #tpu.memory_space<vmem>>, %arg2: memref<128x8xf32, #tpu.memory_space<vmem>>, %arg3: memref<64x8xf32, #tpu.memory_space<vmem>>, %arg4: memref<1x8xf32, #tpu.memory_space<vmem>>, %arg5: memref<1x8xf32, #tpu.memory_space<vmem>>, %arg6: memref<8x32xf32, #tpu.memory_space<vmem>>, %arg7: memref<8x32xf32, #tpu.memory_space<vmem>>, %arg8: memref<1x32xf32, #tpu.memory_space<vmem>>, %arg9: memref<64x32xf32, #tpu.memory_space<vmem>>) attributes {dimension_semantics = [#tpu.dimension_semantics<parallel>], iteration_bounds = array<i64: 2>, scalar_prefetch = 0 : i64, scratch_operands = 0 : i64, tpu.core_type = #tpu.core_type<tc>, window_params = [{transform_indices = @transform_0, window_bounds = array<i64: 64, 128>}, {pipeline_mode = #tpu.pipeline_mode<synchronous>, transform_indices = @transform_1, window_bounds = array<i64: 128, 8>}, {transform_indices = @transform_2, window_bounds = array<i64: 64, 8>}, {pipeline_mode = #tpu.pipeline_mode<synchronous>, transform_indices = @transform_3, window_bounds = array<i64: 1, 8>}, {pipeline_mode = #tpu.pipeline_mode<synchronous>, transform_indices = @transform_4, window_bounds = array<i64: 1, 8>}, {pipeline_mode = #tpu.pipeline_mode<synchronous>, transform_indices = @transform_5, window_bounds = array<i64: 8, 32>}, {pipeline_mode = #tpu.pipeline_mode<synchronous>, transform_indices = @transform_6, window_bounds = array<i64: 8, 32>}, {pipeline_mode = #tpu.pipeline_mode<synchronous>, transform_indices = @transform_7, window_bounds = array<i64: 1, 32>}, {transform_indices = @transform_8, window_bounds = array<i64: 64, 32>}]} {
    %c0 = arith.constant 0 : index
    %c0_0 = arith.constant 0 : index
    %0 = vector.load %arg2[%c0, %c0_0] : memref<128x8xf32, #tpu.memory_space<vmem>>, vector<128x8xf32>
    %c0_1 = arith.constant 0 : index
    %c0_2 = arith.constant 0 : index
    %1 = vector.load %arg4[%c0_1, %c0_2] : memref<1x8xf32, #tpu.memory_space<vmem>>, vector<1x8xf32>
    %2 = vector.broadcast %1 : vector<1x8xf32> to vector<128x8xf32>
    %3 = arith.mulf %0, %2 : vector<128x8xf32>
    %c0_3 = arith.constant 0 : index
    %c0_4 = arith.constant 0 : index
    %4 = vector.load %arg5[%c0_3, %c0_4] : memref<1x8xf32, #tpu.memory_space<vmem>>, vector<1x8xf32>
    %5 = vector.broadcast %4 : vector<1x8xf32> to vector<128x8xf32>
    %6 = arith.addf %3, %5 : vector<128x8xf32>
    %c0_5 = arith.constant 0 : index
    %c0_6 = arith.constant 0 : index
    %7 = vector.load %arg1[%c0_5, %c0_6] : memref<64x128xbf16, #tpu.memory_space<vmem>>, vector<64x128xbf16>
    %8 = arith.truncf %6 : vector<128x8xf32> to vector<128x8xbf16>
    %cst = arith.constant dense<0.000000e+00> : vector<64x8xf32>
    %9 = tpu.matmul %7, %8, %cst {dimension_numbers = #tpu.dot_dimension_numbers<[1], [0], [0], [1], [0, 0, 1, 1], [], []>} : vector<64x128xbf16>, vector<128x8xbf16>, vector<64x8xf32> -> vector<64x8xf32>
    %c0_7 = arith.constant 0 : index
    %c0_8 = arith.constant 0 : index
    %10 = vector.load %arg3[%c0_7, %c0_8] : memref<64x8xf32, #tpu.memory_space<vmem>>, vector<64x8xf32>
    %c0_9 = arith.constant 0 : index
    %c0_10 = arith.constant 0 : index
    %11 = vector.load %arg4[%c0_9, %c0_10] : memref<1x8xf32, #tpu.memory_space<vmem>>, vector<1x8xf32>
    %12 = vector.broadcast %11 : vector<1x8xf32> to vector<64x8xf32>
    %13 = arith.mulf %10, %12 : vector<64x8xf32>
    %c0_11 = arith.constant 0 : index
    %c0_12 = arith.constant 0 : index
    %14 = vector.load %arg5[%c0_11, %c0_12] : memref<1x8xf32, #tpu.memory_space<vmem>>, vector<1x8xf32>
    %15 = vector.broadcast %14 : vector<1x8xf32> to vector<64x8xf32>
    %16 = arith.addf %13, %15 : vector<64x8xf32>
    %c0_13 = arith.constant 0 : index
    %c0_14 = arith.constant 0 : index
    %17 = vector.load %arg6[%c0_13, %c0_14] : memref<8x32xf32, #tpu.memory_space<vmem>>, vector<8x32xf32>
    %cst_15 = arith.constant dense<0.000000e+00> : vector<64x32xf32>
    %18 = tpu.matmul %9, %17, %cst_15 {dimension_numbers = #tpu.dot_dimension_numbers<[1], [0], [0], [1], [0, 0, 1, 1], [], []>} : vector<64x8xf32>, vector<8x32xf32>, vector<64x32xf32> -> vector<64x32xf32>
    %c0_16 = arith.constant 0 : index
    %c0_17 = arith.constant 0 : index
    %19 = vector.load %arg7[%c0_16, %c0_17] : memref<8x32xf32, #tpu.memory_space<vmem>>, vector<8x32xf32>
    %cst_18 = arith.constant dense<0.000000e+00> : vector<64x32xf32>
    %20 = tpu.matmul %16, %19, %cst_18 {dimension_numbers = #tpu.dot_dimension_numbers<[1], [0], [0], [1], [0, 0, 1, 1], [], []>} : vector<64x8xf32>, vector<8x32xf32>, vector<64x32xf32> -> vector<64x32xf32>
    %21 = arith.addf %18, %20 : vector<64x32xf32>
    %c0_19 = arith.constant 0 : index
    %c0_20 = arith.constant 0 : index
    %22 = vector.load %arg8[%c0_19, %c0_20] : memref<1x32xf32, #tpu.memory_space<vmem>>, vector<1x32xf32>
    %23 = vector.broadcast %22 : vector<1x32xf32> to vector<64x32xf32>
    %24 = arith.addf %21, %23 : vector<64x32xf32>
    %cst_21 = arith.constant 0.000000e+00 : f32
    %25 = vector.broadcast %cst_21 : f32 to vector<64x32xf32>
    %26 = arith.maximumf %24, %25 : vector<64x32xf32>
    %c0_22 = arith.constant 0 : index
    %c0_23 = arith.constant 0 : index
    %27 = vector.load %arg9[%c0_22, %c0_23] : memref<64x32xf32, #tpu.memory_space<vmem>>, vector<64x32xf32>
    tpu.vector_store %arg9[%c0_22, %c0_23], %26 {strides = array<i32>} : memref<64x32xf32, #tpu.memory_space<vmem>>, vector<64x32xf32>,
    return
  }
  func.func @transform_0(%arg0: i32) -> (i32, i32) {
    %c0_i32 = arith.constant 0 : i32
    %c0_i32_0 = arith.constant 0 : i32
    return %arg0, %c0_i32 : i32, i32
  }
  func.func @transform_1(%arg0: i32) -> (i32, i32) {
    %c0_i32 = arith.constant 0 : i32
    %c0_i32_0 = arith.constant 0 : i32
    %c0_i32_1 = arith.constant 0 : i32
    return %c0_i32, %c0_i32_0 : i32, i32
  }
  func.func @transform_2(%arg0: i32) -> (i32, i32) {
    %c0_i32 = arith.constant 0 : i32
    %c0_i32_0 = arith.constant 0 : i32
    return %arg0, %c0_i32 : i32, i32
  }
  func.func @transform_3(%arg0: i32) -> (i32, i32) {
    %c0_i32 = arith.constant 0 : i32
    %c0_i32_0 = arith.constant 0 : i32
    %c0_i32_1 = arith.constant 0 : i32
    return %c0_i32, %c0_i32_0 : i32, i32
  }
  func.func @transform_4(%arg0: i32) -> (i32, i32) {
    %c0_i32 = arith.constant 0 : i32
    %c0_i32_0 = arith.constant 0 : i32
    %c0_i32_1 = arith.constant 0 : i32
    return %c0_i32, %c0_i32_0 : i32, i32
  }
  func.func @transform_5(%arg0: i32) -> (i32, i32) {
    %c0_i32 = arith.constant 0 : i32
    %c0_i32_0 = arith.constant 0 : i32
    %c0_i32_1 = arith.constant 0 : i32
    return %c0_i32, %c0_i32_0 : i32, i32
  }
  func.func @transform_6(%arg0: i32) -> (i32, i32) {
    %c0_i32 = arith.constant 0 : i32
    %c0_i32_0 = arith.constant 0 : i32
    %c0_i32_1 = arith.constant 0 : i32
    return %c0_i32, %c0_i32_0 : i32, i32
  }
  func.func @transform_7(%arg0: i32) -> (i32, i32) {
    %c0_i32 = arith.constant 0 : i32
    %c0_i32_0 = arith.constant 0 : i32
    %c0_i32_1 = arith.constant 0 : i32
    return %c0_i32, %c0_i32_0 : i32, i32
  }
  func.func @transform_8(%arg0: i32) -> (i32, i32) {
    %c0_i32 = arith.constant 0 : i32
    %c0_i32_0 = arith.constant 0 : i32
    return %arg0, %c0_i32 : i32, i32
  }
}

module attributes {stable_mosaic.version = 11 : i64} {
  func.func @_heads_kernel(%arg0: i32, %arg1: memref<64x128xbf16, #tpu.memory_space<vmem>>, %arg2: memref<128x32xf32, #tpu.memory_space<vmem>>, %arg3: memref<64x32xf32, #tpu.memory_space<vmem>>, %arg4: memref<1x32xf32, #tpu.memory_space<vmem>>, %arg5: memref<1x1xf32, #tpu.memory_space<vmem>>, %arg6: memref<64x12xf32, #tpu.memory_space<vmem>>, %arg7: memref<64x12xf32, #tpu.memory_space<vmem>>, %arg8: memref<1x12xf32, #tpu.memory_space<vmem>>, %arg9: memref<64x12xf32, #tpu.memory_space<vmem>>, %arg10: memref<64x32xf32, #tpu.memory_space<vmem>>, %arg11: memref<64x32xf32, #tpu.memory_space<vmem>>) attributes {dimension_semantics = [#tpu.dimension_semantics<parallel>], iteration_bounds = array<i64: 2>, scalar_prefetch = 0 : i64, scratch_operands = 0 : i64, tpu.core_type = #tpu.core_type<tc>, window_params = [{transform_indices = @transform_0, window_bounds = array<i64: 64, 128>}, {pipeline_mode = #tpu.pipeline_mode<synchronous>, transform_indices = @transform_1, window_bounds = array<i64: 128, 32>}, {transform_indices = @transform_2, window_bounds = array<i64: 64, 32>}, {pipeline_mode = #tpu.pipeline_mode<synchronous>, transform_indices = @transform_3, window_bounds = array<i64: 1, 32>}, {pipeline_mode = #tpu.pipeline_mode<synchronous>, transform_indices = @transform_4, window_bounds = array<i64: 1, 1>}, {pipeline_mode = #tpu.pipeline_mode<synchronous>, transform_indices = @transform_5, window_bounds = array<i64: 64, 12>}, {pipeline_mode = #tpu.pipeline_mode<synchronous>, transform_indices = @transform_6, window_bounds = array<i64: 64, 12>}, {pipeline_mode = #tpu.pipeline_mode<synchronous>, transform_indices = @transform_7, window_bounds = array<i64: 1, 12>}, {transform_indices = @transform_8, window_bounds = array<i64: 64, 12>}, {transform_indices = @transform_9, window_bounds = array<i64: 64, 32>}, {transform_indices = @transform_10, window_bounds = array<i64: 64, 32>}]} {
    %c0 = arith.constant 0 : index
    %c0_0 = arith.constant 0 : index
    %0 = vector.load %arg2[%c0, %c0_0] : memref<128x32xf32, #tpu.memory_space<vmem>>, vector<128x32xf32>
    %c0_1 = arith.constant 0 : index
    %c0_2 = arith.constant 0 : index
    %1 = vector.load %arg4[%c0_1, %c0_2] : memref<1x32xf32, #tpu.memory_space<vmem>>, vector<1x32xf32>
    %2 = vector.broadcast %1 : vector<1x32xf32> to vector<128x32xf32>
    %3 = arith.mulf %0, %2 : vector<128x32xf32>
    %cst = arith.constant dense<0.000000e+00> : vector<128xf32>
    %4 = vector.multi_reduction <add>, %3, %cst [1] : vector<128x32xf32> to vector<128xf32>
    %5 = vector.shape_cast %4 : vector<128xf32> to vector<128x1xf32>
    %c0_3 = arith.constant 0 : index
    %c0_4 = arith.constant 0 : index
    %6 = vector.load %arg5[%c0_3, %c0_4] : memref<1x1xf32, #tpu.memory_space<vmem>>, vector<1x1xf32>
    %7 = vector.broadcast %6 : vector<1x1xf32> to vector<128x1xf32>
    %8 = arith.addf %5, %7 : vector<128x1xf32>
    %9 = arith.negf %8 : vector<128x1xf32>
    %10 = math.exp %9 : vector<128x1xf32>
    %cst_5 = arith.constant 1.000000e+00 : f32
    %11 = vector.broadcast %cst_5 : f32 to vector<128x1xf32>
    %12 = arith.addf %11, %10 : vector<128x1xf32>
    %13 = arith.divf %11, %12 : vector<128x1xf32>
    %14 = vector.broadcast %13 : vector<128x1xf32> to vector<128x32xf32>
    %15 = arith.mulf %14, %0 : vector<128x32xf32>
    %16 = arith.subf %0, %15 : vector<128x32xf32>
    %17 = tpu.concatenate %15, %16 in 1 : vector<128x32xf32>, vector<128x32xf32> -> vector<128x64xf32>
    %18 = arith.truncf %17 : vector<128x64xf32> to vector<128x64xbf16>
    %c0_6 = arith.constant 0 : index
    %c0_7 = arith.constant 0 : index
    %19 = vector.load %arg1[%c0_6, %c0_7] : memref<64x128xbf16, #tpu.memory_space<vmem>>, vector<64x128xbf16>
    %cst_8 = arith.constant dense<0.000000e+00> : vector<64x64xf32>
    %20 = tpu.matmul %19, %18, %cst_8 {dimension_numbers = #tpu.dot_dimension_numbers<[1], [0], [0], [1], [0, 0, 1, 1], [], []>} : vector<64x128xbf16>, vector<128x64xbf16>, vector<64x64xf32> -> vector<64x64xf32>
    %c0_9 = arith.constant 0 : index
    %c0_10 = arith.constant 0 : index
    %21 = vector.load %arg3[%c0_9, %c0_10] : memref<64x32xf32, #tpu.memory_space<vmem>>, vector<64x32xf32>
    %c0_11 = arith.constant 0 : index
    %c0_12 = arith.constant 0 : index
    %22 = vector.load %arg4[%c0_11, %c0_12] : memref<1x32xf32, #tpu.memory_space<vmem>>, vector<1x32xf32>
    %23 = vector.broadcast %22 : vector<1x32xf32> to vector<64x32xf32>
    %24 = arith.mulf %21, %23 : vector<64x32xf32>
    %cst_13 = arith.constant dense<0.000000e+00> : vector<64xf32>
    %25 = vector.multi_reduction <add>, %24, %cst_13 [1] : vector<64x32xf32> to vector<64xf32>
    %26 = vector.shape_cast %25 : vector<64xf32> to vector<64x1xf32>
    %c0_14 = arith.constant 0 : index
    %c0_15 = arith.constant 0 : index
    %27 = vector.load %arg5[%c0_14, %c0_15] : memref<1x1xf32, #tpu.memory_space<vmem>>, vector<1x1xf32>
    %28 = vector.broadcast %27 : vector<1x1xf32> to vector<64x1xf32>
    %29 = arith.addf %26, %28 : vector<64x1xf32>
    %30 = arith.negf %29 : vector<64x1xf32>
    %31 = math.exp %30 : vector<64x1xf32>
    %cst_16 = arith.constant 1.000000e+00 : f32
    %32 = vector.broadcast %cst_16 : f32 to vector<64x1xf32>
    %33 = arith.addf %32, %31 : vector<64x1xf32>
    %34 = arith.divf %32, %33 : vector<64x1xf32>
    %35 = vector.broadcast %34 : vector<64x1xf32> to vector<64x32xf32>
    %36 = arith.mulf %35, %21 : vector<64x32xf32>
    %37 = arith.subf %21, %36 : vector<64x32xf32>
    %cst_17 = arith.constant 0.000000e+00 : f32
    %38 = vector.broadcast %cst_17 : f32 to vector<64x32xf32>
    %39 = arith.maximumf %36, %38 : vector<64x32xf32>
    %c0_18 = arith.constant 0 : index
    %c0_19 = arith.constant 0 : index
    %40 = vector.load %arg10[%c0_18, %c0_19] : memref<64x32xf32, #tpu.memory_space<vmem>>, vector<64x32xf32>
    tpu.vector_store %arg10[%c0_18, %c0_19], %39 {strides = array<i32>} : memref<64x32xf32, #tpu.memory_space<vmem>>, vector<64x32xf32>,
    %cst_20 = arith.constant 0.000000e+00 : f32
    %41 = vector.broadcast %cst_20 : f32 to vector<64x32xf32>
    %42 = arith.maximumf %37, %41 : vector<64x32xf32>
    %c0_21 = arith.constant 0 : index
    %c0_22 = arith.constant 0 : index
    %43 = vector.load %arg11[%c0_21, %c0_22] : memref<64x32xf32, #tpu.memory_space<vmem>>, vector<64x32xf32>
    tpu.vector_store %arg11[%c0_21, %c0_22], %42 {strides = array<i32>} : memref<64x32xf32, #tpu.memory_space<vmem>>, vector<64x32xf32>,
    %44 = tpu.concatenate %36, %37 in 1 : vector<64x32xf32>, vector<64x32xf32> -> vector<64x64xf32>
    %c0_23 = arith.constant 0 : index
    %c0_24 = arith.constant 0 : index
    %45 = vector.load %arg6[%c0_23, %c0_24] : memref<64x12xf32, #tpu.memory_space<vmem>>, vector<64x12xf32>
    %cst_25 = arith.constant dense<0.000000e+00> : vector<64x12xf32>
    %46 = tpu.matmul %20, %45, %cst_25 {dimension_numbers = #tpu.dot_dimension_numbers<[1], [0], [0], [1], [0, 0, 1, 1], [], []>} : vector<64x64xf32>, vector<64x12xf32>, vector<64x12xf32> -> vector<64x12xf32>
    %c0_26 = arith.constant 0 : index
    %c0_27 = arith.constant 0 : index
    %47 = vector.load %arg7[%c0_26, %c0_27] : memref<64x12xf32, #tpu.memory_space<vmem>>, vector<64x12xf32>
    %cst_28 = arith.constant dense<0.000000e+00> : vector<64x12xf32>
    %48 = tpu.matmul %44, %47, %cst_28 {dimension_numbers = #tpu.dot_dimension_numbers<[1], [0], [0], [1], [0, 0, 1, 1], [], []>} : vector<64x64xf32>, vector<64x12xf32>, vector<64x12xf32> -> vector<64x12xf32>
    %49 = arith.addf %46, %48 : vector<64x12xf32>
    %c0_29 = arith.constant 0 : index
    %c0_30 = arith.constant 0 : index
    %50 = vector.load %arg8[%c0_29, %c0_30] : memref<1x12xf32, #tpu.memory_space<vmem>>, vector<1x12xf32>
    %51 = vector.broadcast %50 : vector<1x12xf32> to vector<64x12xf32>
    %52 = arith.addf %49, %51 : vector<64x12xf32>
    %53 = vector.extract_strided_slice %52 {offsets = [0, 0], sizes = [64, 4], strides = [1, 1]} : vector<64x12xf32> to vector<64x4xf32>
    %cst_31 = arith.constant dense<0xFF800000> : vector<64xf32>
    %54 = vector.multi_reduction <maximumf>, %53, %cst_31 [1] : vector<64x4xf32> to vector<64xf32>
    %55 = vector.shape_cast %54 : vector<64xf32> to vector<64x1xf32>
    %56 = vector.broadcast %55 : vector<64x1xf32> to vector<64x4xf32>
    %57 = arith.subf %53, %56 : vector<64x4xf32>
    %58 = math.exp %57 : vector<64x4xf32>
    %cst_32 = arith.constant dense<0.000000e+00> : vector<64xf32>
    %59 = vector.multi_reduction <add>, %58, %cst_32 [1] : vector<64x4xf32> to vector<64xf32>
    %60 = vector.shape_cast %59 : vector<64xf32> to vector<64x1xf32>
    %61 = math.log %60 : vector<64x1xf32>
    %62 = arith.addf %55, %61 : vector<64x1xf32>
    %63 = vector.broadcast %62 : vector<64x1xf32> to vector<64x4xf32>
    %64 = arith.subf %53, %63 : vector<64x4xf32>
    %65 = vector.extract_strided_slice %52 {offsets = [0, 4], sizes = [64, 4], strides = [1, 1]} : vector<64x12xf32> to vector<64x4xf32>
    %cst_33 = arith.constant dense<0xFF800000> : vector<64xf32>
    %66 = vector.multi_reduction <maximumf>, %65, %cst_33 [1] : vector<64x4xf32> to vector<64xf32>
    %67 = vector.shape_cast %66 : vector<64xf32> to vector<64x1xf32>
    %68 = vector.broadcast %67 : vector<64x1xf32> to vector<64x4xf32>
    %69 = arith.subf %65, %68 : vector<64x4xf32>
    %70 = math.exp %69 : vector<64x4xf32>
    %cst_34 = arith.constant dense<0.000000e+00> : vector<64xf32>
    %71 = vector.multi_reduction <add>, %70, %cst_34 [1] : vector<64x4xf32> to vector<64xf32>
    %72 = vector.shape_cast %71 : vector<64xf32> to vector<64x1xf32>
    %73 = math.log %72 : vector<64x1xf32>
    %74 = arith.addf %67, %73 : vector<64x1xf32>
    %75 = vector.broadcast %74 : vector<64x1xf32> to vector<64x4xf32>
    %76 = arith.subf %65, %75 : vector<64x4xf32>
    %77 = vector.extract_strided_slice %52 {offsets = [0, 8], sizes = [64, 4], strides = [1, 1]} : vector<64x12xf32> to vector<64x4xf32>
    %cst_35 = arith.constant dense<0xFF800000> : vector<64xf32>
    %78 = vector.multi_reduction <maximumf>, %77, %cst_35 [1] : vector<64x4xf32> to vector<64xf32>
    %79 = vector.shape_cast %78 : vector<64xf32> to vector<64x1xf32>
    %80 = vector.broadcast %79 : vector<64x1xf32> to vector<64x4xf32>
    %81 = arith.subf %77, %80 : vector<64x4xf32>
    %82 = math.exp %81 : vector<64x4xf32>
    %cst_36 = arith.constant dense<0.000000e+00> : vector<64xf32>
    %83 = vector.multi_reduction <add>, %82, %cst_36 [1] : vector<64x4xf32> to vector<64xf32>
    %84 = vector.shape_cast %83 : vector<64xf32> to vector<64x1xf32>
    %85 = math.log %84 : vector<64x1xf32>
    %86 = arith.addf %79, %85 : vector<64x1xf32>
    %87 = vector.broadcast %86 : vector<64x1xf32> to vector<64x4xf32>
    %88 = arith.subf %77, %87 : vector<64x4xf32>
    %89 = tpu.concatenate %64, %76, %88 in 1 : vector<64x4xf32>, vector<64x4xf32>, vector<64x4xf32> -> vector<64x12xf32>
    %c0_37 = arith.constant 0 : index
    %c0_38 = arith.constant 0 : index
    %90 = vector.load %arg9[%c0_37, %c0_38] : memref<64x12xf32, #tpu.memory_space<vmem>>, vector<64x12xf32>
    tpu.vector_store %arg9[%c0_37, %c0_38], %89 {strides = array<i32>} : memref<64x12xf32, #tpu.memory_space<vmem>>, vector<64x12xf32>,
    return
  }
  func.func @transform_0(%arg0: i32) -> (i32, i32) {
    %c0_i32 = arith.constant 0 : i32
    %c0_i32_0 = arith.constant 0 : i32
    return %arg0, %c0_i32 : i32, i32
  }
  func.func @transform_1(%arg0: i32) -> (i32, i32) {
    %c0_i32 = arith.constant 0 : i32
    %c0_i32_0 = arith.constant 0 : i32
    %c0_i32_1 = arith.constant 0 : i32
    return %c0_i32, %c0_i32_0 : i32, i32
  }
  func.func @transform_2(%arg0: i32) -> (i32, i32) {
    %c0_i32 = arith.constant 0 : i32
    %c0_i32_0 = arith.constant 0 : i32
    return %arg0, %c0_i32 : i32, i32
  }
  func.func @transform_3(%arg0: i32) -> (i32, i32) {
    %c0_i32 = arith.constant 0 : i32
    %c0_i32_0 = arith.constant 0 : i32
    %c0_i32_1 = arith.constant 0 : i32
    return %c0_i32, %c0_i32_0 : i32, i32
  }
  func.func @transform_4(%arg0: i32) -> (i32, i32) {
    %c0_i32 = arith.constant 0 : i32
    %c0_i32_0 = arith.constant 0 : i32
    %c0_i32_1 = arith.constant 0 : i32
    return %c0_i32, %c0_i32_0 : i32, i32
  }
  func.func @transform_5(%arg0: i32) -> (i32, i32) {
    %c0_i32 = arith.constant 0 : i32
    %c0_i32_0 = arith.constant 0 : i32
    %c0_i32_1 = arith.constant 0 : i32
    return %c0_i32, %c0_i32_0 : i32, i32
  }
  func.func @transform_6(%arg0: i32) -> (i32, i32) {
    %c0_i32 = arith.constant 0 : i32
    %c0_i32_0 = arith.constant 0 : i32
    %c0_i32_1 = arith.constant 0 : i32
    return %c0_i32, %c0_i32_0 : i32, i32
  }
  func.func @transform_7(%arg0: i32) -> (i32, i32) {
    %c0_i32 = arith.constant 0 : i32
    %c0_i32_0 = arith.constant 0 : i32
    %c0_i32_1 = arith.constant 0 : i32
    return %c0_i32, %c0_i32_0 : i32, i32
  }
  func.func @transform_8(%arg0: i32) -> (i32, i32) {
    %c0_i32 = arith.constant 0 : i32
    %c0_i32_0 = arith.constant 0 : i32
    return %arg0, %c0_i32 : i32, i32
  }
  func.func @transform_9(%arg0: i32) -> (i32, i32) {
    %c0_i32 = arith.constant 0 : i32
    %c0_i32_0 = arith.constant 0 : i32
    return %arg0, %c0_i32 : i32, i32
  }
  func.func @transform_10(%arg0: i32) -> (i32, i32) {
    %c0_i32 = arith.constant 0 : i32
    %c0_i32_0 = arith.constant 0 : i32
    return %arg0, %c0_i32 : i32, i32
  }
}

</mosaic_0001>

<bundles_post_ra>
// kernel: causal_sage_forward.5
= control target key start
LH: loop header
LB: loop body
LE: loop exit
PB: predicated region body
PF: predicated region fallthrough
CT: control target
= control target key end

     0   :  { %s836_s27 = smov 0   ;;  %s1043_s0 = inlined_call_operand.vmem [shape: bf16[128,128], index: 0, kind: input, shape index: {}]   ;;  %s1044_s1 = inlined_call_operand.vmem [shape: f32[128,32], index: 1, kind: input, shape index: {}, may-alias: {1,2}]   ;;  %s1045_s2 = inlined_call_operand.vmem [shape: f32[128,32], index: 2, kind: input, shape index: {}, may-alias: {1,2}]   ;;  %s1046_s3 = inlined_call_operand.vmem [shape: f32[1,32], index: 3, kind: input, shape index: {}]   ;;  %s1047_s4 = inlined_call_operand.vmem [shape: f32[1,32], index: 4, kind: input, shape index: {}]   ;;  %s1048_s5 = inlined_call_operand.vmem [shape: f32[32,32], index: 5, kind: input, shape index: {}]   ;;  %s1049_s6 = inlined_call_operand.vmem [shape: f32[32,32], index: 6, kind: input, shape index: {}]   ;;  %s1050_s7 = inlined_call_operand.vmem [shape: f32[1,32], index: 7, kind: input, shape index: {}]   ;;  %s1051_s8 = inlined_call_operand.vmem [shape: f32[128,32], index: 8, kind: output, shape index: {}]  }
   0x1 LB: > { %s715_s28 = sadd.s32 4294967295, %s789_s27   ;;  %p719_p0 = scmp.ge.s32.totalorder %s789_s27, 1  ;;  %s789_s27 = sphi %s836_s27, %s18_s27  }
   0x2   : > { %p274_p1 = scmp.lt.s32.totalorder %s789_s27, 3 }
   0x4   : > { %p275_p2 = pnand %p719_p0, %p274_p1 }
   0x5   : > { %s720_s19 = sshll.u32 (!%p275_p2), %s715_s28, 3 }
   0x6   : > { %278 = sbr.rel (%p275_p2) target bundleno = 370 (0x172), region = 52  ;;  %p314_p3 = scmp.lt.s32.totalorder (!%p275_p2), %s720_s19, 15 }
   0xb   : > { %v345_v0 = vld [vmem:[%s1044_s1 + $0x70] sm:$0xff]  ;;  %v346_v1 = vld [vmem:[%s1044_s1 + $0x78] sm:$0xff]  ;;  %v853_v2 = vld [vmem:[%s1046_s3] ss:$0 sm:$0xff]  ;;  %s1053_s19 = smov (!%p314_p3, %s720_s19), 15  ;;  %vm488_vm0 = vcmask 261120  }
   0xc   : > { %v858_v3 = vld [vmem:[%s1047_s4] ss:$0 sm:$0xff]  ;;  %v344_v5 = vld [vmem:[%s1044_s1 + $0x68] sm:$0xff]  ;;  %v341_v6 = vld [vmem:[%s1044_s1 + $0x50] sm:$0xff]  ;;  %v365_v7 = vmul.f32 %v853_v2, %v345_v0  ;;  %v366_v8 = vmul.f32 %v853_v2, %v346_v1  ;;  %s721_s28 = sshll.u32 %s1053_s19, 2  ;;  %s723_s13 = sshll.u32 %s1053_s19, 3 }
   0xd   : > { %v343_v4 = vld [vmem:[%s1044_s1 + $0x60] sm:$0xff]  ;;  %v364_v10 = vmul.f32 %v853_v2, %v344_v5  ;;  %v342_v11 = vld [vmem:[%s1044_s1 + $0x58] sm:$0xff]  ;;  %v361_v12 = vmul.f32 %v853_v2, %v341_v6  ;;  %v340_v19 = vld [vmem:[%s1044_s1 + $0x48] sm:$0xff]  ;;  %s317_s26 = scalar_lea.vmem %s1043_s0, %s721_s28  ;;  %s963_s21 = scalar_lea.vmem %s1045_s2, %s723_s13 }
   0xe   : > { %v363_v9 = vmul.f32 %v853_v2, %v343_v4  ;;  %v362_v13 = vmul.f32 %v853_v2, %v342_v11  ;;  %v385_v14 = vadd.f32 %v858_v3, %v365_v7  ;;  %v386_v15 = vadd.f32 %v858_v3, %v366_v8  ;;  %v339_v18 = vld [vmem:[%s1044_s1 + $0x40] sm:$0xff]  ;;  %v337_v26 = vld [vmem:[%s1044_s1 + $0x30] sm:$0xff]  ;;  %v338_v27 = vld [vmem:[%s1044_s1 + $0x38] sm:$0xff]  ;;  %s1022_s11 = scalar_lea.vmem %s1051_s8, %s723_s13 }
   0xf   : > { %v384_v17 = vadd.f32 %v858_v3, %v364_v10  ;;  %v359_v21 = vmul.f32 %v853_v2, %v339_v18  ;;  %v360_v22 = vmul.f32 %v853_v2, %v340_v19  ;;  %v381_v24 = vadd.f32 %v858_v3, %v361_v12  ;;  %v335_v33 = vld [vmem:[%s1044_s1 + $0x20] sm:$0xff]  ;;  %v336_v34 = vld [vmem:[%s1044_s1 + $0x28] sm:$0xff]  ;;  %v333_v40 = vld [vmem:[%s1044_s1 + $0x10] sm:$0xff] }
  0x10   : > { %v383_v16 = vadd.f32 %v858_v3, %v363_v9  ;;  %v402_v20 = vpack.c.bf16 %v386_v15, %v385_v14  ;;  %v382_v25 = vadd.f32 %v858_v3, %v362_v13  ;;  %v357_v31 = vmul.f32 %v853_v2, %v337_v26  ;;  %v334_v41 = vld [vmem:[%s1044_s1 + $0x18] sm:$0xff]  ;;  %v331_v47 = vld [vmem:[%s1044_s1] sm:$0xff]  ;;  %v332_v48 = vld [vmem:[%s1044_s1 + $0x8] sm:$0xff] }
  0x11   : > { %v379_v28 = vadd.f32 %v858_v3, %v359_v21  ;;  %v380_v29 = vadd.f32 %v858_v3, %v360_v22  ;;  %v358_v32 = vmul.f32 %v853_v2, %v338_v27  ;;  %v355_v36 = vmul.f32 %v853_v2, %v335_v33  ;;  %v760_v58 = vld [vmem:[%s317_s26] sm:$0xff]  ;;  %v761_v59 = vld [vmem:[%s317_s26 + $0x8] sm:$0xff]  ;;  %v483_v60 = vld [vmem:[%s1048_s5 + $0x18] sm:$0xff] }
  0x12   : > { %427 = vmatpush.bf16.msra.mxu0 %v402_v20  ;;  %764 = vmatpush.bf16.msra.mxu3 %v402_v20  ;;  %v401_v23 = vpack.c.bf16 %v384_v17, %v383_v16  ;;  %v400_v30 = vpack.c.bf16 %v382_v25, %v381_v24  ;;  %v377_v37 = vadd.f32 %v858_v3, %v357_v31  ;;  %v482_v61 = vld [vmem:[%s1048_s5 + $0x10] sm:$0xff]  ;;  %v481_v62 = vld [vmem:[%s1048_s5 + $0x8] sm:$0xff]  ;;  %v763_v0 = vld [vmem:[%s317_s26 + $0x18] sm:$0xff] }
  0x13   : > { %v399_v35 = vpack.c.bf16 %v380_v29, %v379_v28  ;;  %v378_v38 = vadd.f32 %v858_v3, %v358_v32  ;;  %v356_v39 = vmul.f32 %v853_v2, %v336_v34  ;;  %v375_v42 = vadd.f32 %v858_v3, %v355_v36  ;;  %590 = vmatpush.msra.mxu2 %v483_v60  ;;  %v762_v63 = vld [vmem:[%s317_s26 + $0x10] sm:$0xff]  ;;  %v487_v1 = vld [vmem:[%s1049_s6 + $0x18] sm:$0xff]  ;;  %v480_v4 = vld [vmem:[%s1048_s5] sm:$0xff] }
  0x14   : > { %v353_v43 = vmul.f32 %v853_v2, %v333_v40  ;;  %v354_v46 = vmul.f32 %v853_v2, %v334_v41  ;;  %v351_v50 = vmul.f32 %v853_v2, %v331_v47  ;;  %v352_v53 = vmul.f32 %v853_v2, %v332_v48  ;;  %525 = vmatpush.msra.mxu1 %v487_v1  ;;  %v486_v5 = vld [vmem:[%s1049_s6 + $0x10] sm:$0xff]  ;;  %v485_v6 = vld [vmem:[%s1049_s6 + $0x8] sm:$0xff]  ;;  %v456_v7 = vld [vmem:[%s963_s21] sm:$0xff] }
  0x15   : > { %v398_v44 = vpack.c.bf16 %v378_v38, %v377_v37  ;;  %v376_v45 = vadd.f32 %v858_v3, %v356_v39  ;;  %591 = vmatpush.msra.mxu2 %v482_v61  ;;  %v484_v8 = vld [vmem:[%s1049_s6] sm:$0xff]  ;;  %v464_v9 = vmul.f32 %v853_v2, %v456_v7  ;;  %v457_v11 = vld [vmem:[%s963_s21 + $0x8] sm:$0xff]  ;;  %v458_v14 = vld [vmem:[%s963_s21 + $0x10] sm:$0xff] }
  0x16   : > { %428 = vmatpush.bf16.msra.mxu0 %v401_v23  ;;  %765 = vmatpush.bf16.msra.mxu3 %v401_v23  ;;  %v373_v49 = vadd.f32 %v858_v3, %v353_v43  ;;  %v374_v52 = vadd.f32 %v858_v3, %v354_v46  ;;  %v371_v55 = vadd.f32 %v858_v3, %v351_v50  ;;  %v459_v17 = vld [vmem:[%s963_s21 + $0x18] sm:$0xff]  ;;  %v460_v21 = vld [vmem:[%s963_s21 + $0x20] sm:$0xff]  ;;  %v461_v26 = vld [vmem:[%s963_s21 + $0x28] sm:$0xff] }
  0x17   : > { %v397_v51 = vpack.c.bf16 %v376_v45, %v375_v42  ;;  %v372_v56 = vadd.f32 %v858_v3, %v352_v53  ;;  %592 = vmatpush.msra.mxu2 %v481_v62  ;;  %526 = vmatpush.msra.mxu1 %v486_v5  ;;  %v472_v10 = vadd.f32 %v858_v3, %v464_v9  ;;  %v463_v33 = vld [vmem:[%s963_s21 + $0x38] sm:$0xff] }
  0x18   : > { %v396_v54 = vpack.c.bf16 %v374_v52, %v373_v49  ;;  %v465_v12 = vmul.f32 %v853_v2, %v457_v11  ;;  %v466_v15 = vmul.f32 %v853_v2, %v458_v14  ;;  %v467_v18 = vmul.f32 %v853_v2, %v459_v17 }
  0x19   : > { %v395_v57 = vpack.c.bf16 %v372_v56, %v371_v55  ;;  %593 = vmatpush.msra.mxu2 %v480_v4  ;;  %527 = vmatpush.msra.mxu1 %v485_v6  ;;  %v468_v22 = vmul.f32 %v853_v2, %v460_v21  ;;  %v469_v27 = vmul.f32 %v853_v2, %v461_v26 }
  0x1a   : > { %429 = vmatpush.bf16.msra.mxu0 %v400_v30  ;;  %766 = vmatpush.bf16.msra.mxu3 %v400_v30  ;;  %v473_v13 = vadd.f32 %v858_v3, %v465_v12  ;;  %v474_v16 = vadd.f32 %v858_v3, %v466_v15  ;;  %v475_v19 = vadd.f32 %v858_v3, %v467_v18  ;;  %v462_v30 = vld [vmem:[%s963_s21 + $0x30] sm:$0xff] }
  0x1b   : > { %528 = vmatpush.msra.mxu1 %v484_v8  ;;  %v476_v23 = vadd.f32 %v858_v3, %v468_v22  ;;  %v477_v28 = vadd.f32 %v858_v3, %v469_v27  ;;  %v470_v31 = vmul.f32 %v853_v2, %v462_v30 }
  0x1c   : > { %742 = vmatmul.msk.f32.vlgmr.msra.gmra.mxu1 %vm488_vm0, %v472_v10 }
  0x1d   : > { %v478_v32 = vadd.f32 %v858_v3, %v470_v31 }
  0x1e   : > { %430 = vmatpush.bf16.msra.mxu0 %v399_v35  ;;  %767 = vmatpush.bf16.msra.mxu3 %v399_v35  ;;  %v471_v35 = vmul.f32 %v853_v2, %v463_v33  ;;  %v782_v2 = vld [vmem:[%s1050_s7] ss:$0 sm:$0xff] }
  0x20   : > { %v479_v36 = vadd.f32 %v858_v3, %v471_v35 }
  0x22   : > { %431 = vmatpush.bf16.msra.mxu0 %v398_v44  ;;  %768 = vmatpush.bf16.msra.mxu3 %v398_v44 }
  0x24   : > { %743 = vmatmul.msk.f32.gmra.mxu1 %vm488_vm0, %v473_v13 }
  0x26   : > { %432 = vmatpush.bf16.msra.mxu0 %v397_v51  ;;  %769 = vmatpush.bf16.msra.mxu3 %v397_v51 }
  0x2a   : > { %433 = vmatpush.bf16.msra.mxu0 %v396_v54  ;;  %770 = vmatpush.bf16.msra.mxu3 %v396_v54 }
  0x2c   : > { %744 = vmatmul.msk.f32.gmra.mxu1 %vm488_vm0, %v474_v16 }
  0x2e   : > { %434 = vmatpush.bf16.msra.mxu0 %v395_v57  ;;  %771 = vmatpush.bf16.msra.mxu3 %v395_v57 }
  0x31   : > { %435 = vmatmul.bf16.vlgmr.msra.gmra.mxu0 %v760_v58  ;;  %440 = vmatmul.bf16.vlgmr.msra.gmra.mxu3 %v761_v59 }
  0x34   : > { %745 = vmatmul.msk.f32.gmra.mxu1 %vm488_vm0, %v475_v19 }
  0x3c   : > { %746 = vmatmul.msk.f32.gmra.mxu1 %vm488_vm0, %v476_v23 }
  0x41   : > { %445 = vmatmul.bf16.gmra.mxu3 %v762_v63 }
  0x44   : > { %747 = vmatmul.msk.f32.gmra.mxu1 %vm488_vm0, %v477_v28 }
  0x4c   : > { %748 = vmatmul.msk.f32.gmra.mxu1 %vm488_vm0, %v478_v32 }
  0x51   : > { %450 = vmatmul.bf16.gmra.mxu3 %v763_v0 }
  0x54   : > { %749 = vmatmul.msk.f32.gmra.mxu1 %vm488_vm0, %v479_v36 }
  0x99   : > { %v530_v40 = vpop.f32.mrf.mxu1 }
  0xa1   : > { %v533_v41 = vpop.f32.mrf.mxu1 }
  0xa9   : > { %v536_v44 = vpop.f32.mrf.mxu1 }
  0xae   : > { %v436_v20 = vpop.f32.mrf.mxu0 }
  0xaf   : > { %750 = vmatmul.msk.f32.vlgmr.msra.gmra.mxu2 %vm488_vm0, %v436_v20 }
  0xb1   : > { %v539_v50 = vpop.f32.mrf.mxu1 }
  0xb4   : > { %v441_v24 = vpop.f32.mrf.mxu3 }
  0xb6   : > { %v438_v25 = vpop.f32.mrf.mxu0 }
  0xb7   : > { %751 = vmatmul.msk.f32.gmra.mxu2 %vm488_vm0, %v438_v25 }
  0xb9   : > { %v542_v56 = vpop.f32.mrf.mxu1 }
  0xbc   : > { %v443_v29 = vpop.f32.mrf.mxu3 }
  0xbf   : > { %752 = vmatmul.msk.f32.gmra.mxu2 %vm488_vm0, %v441_v24 }
  0xc1   : > { %v545_v62 = vpop.f32.mrf.mxu1 }
  0xc4   : > { %v446_v34 = vpop.f32.mrf.mxu3 }
  0xc7   : > { %753 = vmatmul.msk.f32.gmra.mxu2 %vm488_vm0, %v443_v29 }
  0xc9   : > { %v548_v6 = vpop.f32.mrf.mxu1 }
  0xcc   : > { %v448_v37 = vpop.f32.mrf.mxu3 }
  0xcf   : > { %754 = vmatmul.msk.f32.gmra.mxu2 %vm488_vm0, %v446_v34 }
  0xd1   : > { %v551_v12 = vpop.f32.mrf.mxu1 }
  0xd4   : > { %v451_v38 = vpop.f32.mrf.mxu3 }
  0xd7   : > { %755 = vmatmul.msk.f32.gmra.mxu2 %vm488_vm0, %v448_v37 }
  0xdc   : > { %v453_v39 = vpop.f32.mrf.mxu3 }
  0xdf   : > { %756 = vmatmul.msk.f32.gmra.mxu2 %vm488_vm0, %v451_v38 }
  0xe7   : > { %757 = vmatmul.msk.f32.gmra.mxu2 %vm488_vm0, %v453_v39 }
 0x132   : > { %v595_v3 = vpop.f32.mrf.mxu2 }
 0x133   : > { %v596_v42 = vadd.f32 %v595_v3, %v530_v40 }
 0x135   : > { %v623_v43 = vadd.f32 %v782_v2, %v596_v42 }
 0x137   : > { %v631_v45 = vmax.f32 %v623_v43, 0.0 }
 0x139   : > { %639 = vst.msk [vmem:[%s1022_s11] sm:$0xff] %vm488_vm0, %v631_v45 }
 0x13a   : > { %v598_v46 = vpop.f32.mrf.mxu2 }
 0x13b   : > { %v599_v47 = vadd.f32 %v598_v46, %v533_v41 }
 0x13d   : > { %v624_v48 = vadd.f32 %v782_v2, %v599_v47 }
 0x13f   : > { %v632_v49 = vmax.f32 %v624_v48, 0.0 }
 0x141   : > { %640 = vst.msk [vmem:[%s1022_s11 + $0x8] sm:$0xff] %vm488_vm0, %v632_v49 }
 0x142   : > { %v601_v51 = vpop.f32.mrf.mxu2 }
 0x143   : > { %v602_v52 = vadd.f32 %v601_v51, %v536_v44 }
 0x145   : > { %v625_v53 = vadd.f32 %v782_v2, %v602_v52 }
 0x147   : > { %v633_v54 = vmax.f32 %v625_v53, 0.0 }
 0x149   : > { %641 = vst.msk [vmem:[%s1022_s11 + $0x10] sm:$0xff] %vm488_vm0, %v633_v54 }
 0x14a   : > { %v604_v55 = vpop.f32.mrf.mxu2 }
 0x14b   : > { %v605_v57 = vadd.f32 %v604_v55, %v539_v50 }
 0x14d   : > { %v626_v58 = vadd.f32 %v782_v2, %v605_v57 }
 0x14f   : > { %v634_v59 = vmax.f32 %v626_v58, 0.0 }
 0x151   : > { %642 = vst.msk [vmem:[%s1022_s11 + $0x18] sm:$0xff] %vm488_vm0, %v634_v59 }
 0x152   : > { %v607_v60 = vpop.f32.mrf.mxu2 }
 0x153   : > { %v608_v61 = vadd.f32 %v607_v60, %v542_v56 }
 0x155   : > { %v627_v63 = vadd.f32 %v782_v2, %v608_v61 }
 0x157   : > { %v635_v0 = vmax.f32 %v627_v63, 0.0 }
 0x159   : > { %643 = vst.msk [vmem:[%s1022_s11 + $0x20] sm:$0xff] %vm488_vm0, %v635_v0 }
 0x15a   : > { %v610_v1 = vpop.f32.mrf.mxu2 }
 0x15b   : > { %v611_v4 = vadd.f32 %v610_v1, %v545_v62 }
 0x15d   : > { %v628_v5 = vadd.f32 %v782_v2, %v611_v4 }
 0x15f   : > { %v636_v7 = vmax.f32 %v628_v5, 0.0 }
 0x161   : > { %644 = vst.msk [vmem:[%s1022_s11 + $0x28] sm:$0xff] %vm488_vm0, %v636_v7 }
 0x162   : > { %v613_v8 = vpop.f32.mrf.mxu2 }
 0x163   : > { %v614_v9 = vadd.f32 %v613_v8, %v548_v6 }
 0x165   : > { %v629_v10 = vadd.f32 %v782_v2, %v614_v9 }
 0x167   : > { %v637_v11 = vmax.f32 %v629_v10, 0.0 }
 0x169   : > { %645 = vst.msk [vmem:[%s1022_s11 + $0x30] sm:$0xff] %vm488_vm0, %v637_v11 }
 0x16a   : > { %v616_v13 = vpop.f32.mrf.mxu2 }
 0x16b   : > { %v617_v14 = vadd.f32 %v616_v13, %v551_v12 }
 0x16d   : > { %v630_v15 = vadd.f32 %v782_v2, %v617_v14 }
 0x16f   : > { %v638_v16 = vmax.f32 %v630_v15, 0.0 }
 0x171   : > { %646 = vst.msk [vmem:[%s1022_s11 + $0x38] sm:$0xff] %vm488_vm0, %v638_v16 }
 0x172 PF: > { %s18_s27 = sadd.s32 1, %s789_s27  }
 0x173   : > { %p15_p4 = scmp.ge.s32.totalorder %s18_s27, 4  }
 0x175   :  { %17 = sbr.rel (!%p15_p4) target bundleno = 1 (0x1), region = 85 }

// kernel: causal_sage_forward.4
= control target key start
LH: loop header
LB: loop body
LE: loop exit
PB: predicated region body
PF: predicated region fallthrough
CT: control target
= control target key end

     0   :  { %s831_s27 = smov 0   ;;  %s1020_s0 = inlined_call_operand.vmem [shape: bf16[128,128], index: 0, kind: input, shape index: {}]   ;;  %s1021_s1 = inlined_call_operand.vmem [shape: f32[128,8], index: 1, kind: input, shape index: {}, may-alias: {1,2}]   ;;  %s1022_s2 = inlined_call_operand.vmem [shape: f32[128,8], index: 2, kind: input, shape index: {}, may-alias: {1,2}]   ;;  %s1023_s3 = inlined_call_operand.vmem [shape: f32[1,8], index: 3, kind: input, shape index: {}]   ;;  %s1024_s4 = inlined_call_operand.vmem [shape: f32[1,8], index: 4, kind: input, shape index: {}]   ;;  %s1025_s5 = inlined_call_operand.vmem [shape: f32[8,32], index: 5, kind: input, shape index: {}]   ;;  %s1026_s6 = inlined_call_operand.vmem [shape: f32[8,32], index: 6, kind: input, shape index: {}]   ;;  %s1027_s7 = inlined_call_operand.vmem [shape: f32[1,32], index: 7, kind: input, shape index: {}]   ;;  %s1028_s8 = inlined_call_operand.vmem [shape: f32[128,32], index: 8, kind: output, shape index: {}]  }
   0x1 LB: > { %s710_s28 = sadd.s32 4294967295, %s784_s27   ;;  %p714_p0 = scmp.ge.s32.totalorder %s784_s27, 1  ;;  %s784_s27 = sphi %s831_s27, %s18_s27  }
   0x2   : > { %p274_p1 = scmp.lt.s32.totalorder %s784_s27, 3 }
   0x4   : > { %p275_p2 = pnand %p714_p0, %p274_p1 }
   0x5   : > { %s715_s19 = sshll.u32 (!%p275_p2), %s710_s28, 3 }
   0x6   : > { %278 = sbr.rel (%p275_p2) target bundleno = 370 (0x172), region = 52  ;;  %p314_p3 = scmp.lt.s32.totalorder (!%p275_p2), %s715_s19, 15 }
   0xb   : > { %v345_v0 = vld [vmem:[%s1021_s1 + $0x70] sm:$0xff]  ;;  %v346_v1 = vld [vmem:[%s1021_s1 + $0x78] sm:$0xff]  ;;  %v848_v2 = vld [vmem:[%s1023_s3] ss:$0 sm:$0xff]  ;;  %s1030_s19 = smov (!%p314_p3, %s715_s19), 15  ;;  %vm482_vm0 = vcmask 64512  }
   0xc   : > { %v853_v3 = vld [vmem:[%s1024_s4] ss:$0 sm:$0xff]  ;;  %v344_v5 = vld [vmem:[%s1021_s1 + $0x68] sm:$0xff]  ;;  %v341_v6 = vld [vmem:[%s1021_s1 + $0x50] sm:$0xff]  ;;  %v365_v7 = vmul.f32 %v848_v2, %v345_v0  ;;  %v366_v8 = vmul.f32 %v848_v2, %v346_v1  ;;  %s716_s28 = sshll.u32 %s1030_s19, 2  ;;  %s718_s29 = sshll.u32 %s1030_s19, 3 }
   0xd   : > { %v343_v4 = vld [vmem:[%s1021_s1 + $0x60] sm:$0xff]  ;;  %v364_v10 = vmul.f32 %v848_v2, %v344_v5  ;;  %v342_v11 = vld [vmem:[%s1021_s1 + $0x58] sm:$0xff]  ;;  %v361_v12 = vmul.f32 %v848_v2, %v341_v6  ;;  %v340_v19 = vld [vmem:[%s1021_s1 + $0x48] sm:$0xff]  ;;  %s317_s26 = scalar_lea.vmem %s1020_s0, %s716_s28  ;;  %s943_s10 = scalar_lea.vmem %s1022_s2, %s718_s29  ;;  %vm633_vm1 = vcmask 261120  }
   0xe   : > { %v363_v9 = vmul.f32 %v848_v2, %v343_v4  ;;  %v362_v13 = vmul.f32 %v848_v2, %v342_v11  ;;  %v385_v14 = vadd.f32 %v853_v3, %v365_v7  ;;  %v386_v15 = vadd.f32 %v853_v3, %v366_v8  ;;  %v339_v18 = vld [vmem:[%s1021_s1 + $0x40] sm:$0xff]  ;;  %v337_v26 = vld [vmem:[%s1021_s1 + $0x30] sm:$0xff]  ;;  %v338_v27 = vld [vmem:[%s1021_s1 + $0x38] sm:$0xff]  ;;  %s999_s20 = scalar_lea.vmem %s1028_s8, %s718_s29 }
   0xf   : > { %v384_v17 = vadd.f32 %v853_v3, %v364_v10  ;;  %v359_v21 = vmul.f32 %v848_v2, %v339_v18  ;;  %v360_v22 = vmul.f32 %v848_v2, %v340_v19  ;;  %v381_v24 = vadd.f32 %v853_v3, %v361_v12  ;;  %v335_v33 = vld [vmem:[%s1021_s1 + $0x20] sm:$0xff]  ;;  %v336_v34 = vld [vmem:[%s1021_s1 + $0x28] sm:$0xff]  ;;  %v333_v40 = vld [vmem:[%s1021_s1 + $0x10] sm:$0xff] }
  0x10   : > { %v383_v16 = vadd.f32 %v853_v3, %v363_v9  ;;  %v402_v20 = vpack.c.bf16 %v386_v15, %v385_v14  ;;  %v382_v25 = vadd.f32 %v853_v3, %v362_v13  ;;  %v357_v31 = vmul.f32 %v848_v2, %v337_v26  ;;  %v334_v41 = vld [vmem:[%s1021_s1 + $0x18] sm:$0xff]  ;;  %v331_v47 = vld [vmem:[%s1021_s1] sm:$0xff]  ;;  %v332_v48 = vld [vmem:[%s1021_s1 + $0x8] sm:$0xff] }
  0x11   : > { %v379_v28 = vadd.f32 %v853_v3, %v359_v21  ;;  %v380_v29 = vadd.f32 %v853_v3, %v360_v22  ;;  %v358_v32 = vmul.f32 %v848_v2, %v338_v27  ;;  %v355_v36 = vmul.f32 %v848_v2, %v335_v33  ;;  %v755_v58 = vld [vmem:[%s317_s26] sm:$0xff]  ;;  %v756_v59 = vld [vmem:[%s317_s26 + $0x8] sm:$0xff]  ;;  %v757_v60 = vld [vmem:[%s317_s26 + $0x10] sm:$0xff] }
  0x12   : > { %427 = vmatpush.bf16.msra.mxu0 %v402_v20  ;;  %759 = vmatpush.bf16.msra.mxu3 %v402_v20  ;;  %v401_v23 = vpack.c.bf16 %v384_v17, %v383_v16  ;;  %v400_v30 = vpack.c.bf16 %v382_v25, %v381_v24  ;;  %v377_v37 = vadd.f32 %v853_v3, %v357_v31  ;;  %v758_v61 = vld [vmem:[%s317_s26 + $0x18] sm:$0xff]  ;;  %v480_v62 = vld [vmem:[%s1025_s5] sm:$0xff]  ;;  %v457_v5 = vld [vmem:[%s943_s10 + $0x8] sm:$0xff] }
  0x13   : > { %v399_v35 = vpack.c.bf16 %v380_v29, %v379_v28  ;;  %v378_v38 = vadd.f32 %v853_v3, %v358_v32  ;;  %v356_v39 = vmul.f32 %v848_v2, %v336_v34  ;;  %v375_v42 = vadd.f32 %v853_v3, %v355_v36  ;;  %587 = vmatpush.msra.mxu2 %v480_v62  ;;  %v481_v63 = vld [vmem:[%s1026_s6] sm:$0xff]  ;;  %v458_v8 = vld [vmem:[%s943_s10 + $0x10] sm:$0xff]  ;;  %v459_v11 = vld [vmem:[%s943_s10 + $0x18] sm:$0xff] }
  0x14   : > { %v353_v43 = vmul.f32 %v848_v2, %v333_v40  ;;  %v354_v46 = vmul.f32 %v848_v2, %v334_v41  ;;  %v351_v50 = vmul.f32 %v848_v2, %v331_v47  ;;  %v352_v53 = vmul.f32 %v848_v2, %v332_v48  ;;  %v456_v0 = vld [vmem:[%s943_s10] sm:$0xff]  ;;  %522 = vmatpush.msra.mxu1 %v481_v63  ;;  %v461_v20 = vld [vmem:[%s943_s10 + $0x28] sm:$0xff]  ;;  %v462_v24 = vld [vmem:[%s943_s10 + $0x30] sm:$0xff] }
  0x15   : > { %v398_v44 = vpack.c.bf16 %v378_v38, %v377_v37  ;;  %v376_v45 = vadd.f32 %v853_v3, %v356_v39  ;;  %v464_v1 = vmul.f32 %v848_v2, %v456_v0  ;;  %v465_v6 = vmul.f32 %v848_v2, %v457_v5  ;;  %v460_v15 = vld [vmem:[%s943_s10 + $0x20] sm:$0xff]  ;;  %v463_v27 = vld [vmem:[%s943_s10 + $0x38] sm:$0xff] }
  0x16   : > { %428 = vmatpush.bf16.msra.mxu0 %v401_v23  ;;  %760 = vmatpush.bf16.msra.mxu3 %v401_v23  ;;  %v373_v49 = vadd.f32 %v853_v3, %v353_v43  ;;  %v374_v52 = vadd.f32 %v853_v3, %v354_v46  ;;  %v371_v55 = vadd.f32 %v853_v3, %v351_v50 }
  0x17   : > { %v397_v51 = vpack.c.bf16 %v376_v45, %v375_v42  ;;  %v372_v56 = vadd.f32 %v853_v3, %v352_v53  ;;  %v472_v4 = vadd.f32 %v853_v3, %v464_v1  ;;  %v473_v7 = vadd.f32 %v853_v3, %v465_v6 }
  0x18   : > { %v396_v54 = vpack.c.bf16 %v374_v52, %v373_v49  ;;  %v466_v9 = vmul.f32 %v848_v2, %v458_v8  ;;  %v467_v12 = vmul.f32 %v848_v2, %v459_v11  ;;  %v468_v16 = vmul.f32 %v848_v2, %v460_v15 }
  0x19   : > { %v395_v57 = vpack.c.bf16 %v372_v56, %v371_v55  ;;  %737 = vmatmul.msk.f32.vlgmr.msra.gmra.mxu1 %vm482_vm0, %v472_v4  ;;  %v469_v21 = vmul.f32 %v848_v2, %v461_v20  ;;  %v470_v25 = vmul.f32 %v848_v2, %v462_v24  ;;  %v471_v29 = vmul.f32 %v848_v2, %v463_v27  ;;  %v777_v2 = vld [vmem:[%s1027_s7] ss:$0 sm:$0xff] }
  0x1a   : > { %429 = vmatpush.bf16.msra.mxu0 %v400_v30  ;;  %761 = vmatpush.bf16.msra.mxu3 %v400_v30  ;;  %v474_v10 = vadd.f32 %v853_v3, %v466_v9  ;;  %v475_v13 = vadd.f32 %v853_v3, %v467_v12  ;;  %v476_v17 = vadd.f32 %v853_v3, %v468_v16 }
  0x1b   : > { %v477_v22 = vadd.f32 %v853_v3, %v469_v21  ;;  %v478_v26 = vadd.f32 %v853_v3, %v470_v25  ;;  %v479_v30 = vadd.f32 %v853_v3, %v471_v29 }
  0x1e   : > { %430 = vmatpush.bf16.msra.mxu0 %v399_v35  ;;  %762 = vmatpush.bf16.msra.mxu3 %v399_v35 }
  0x21   : > { %738 = vmatmul.msk.f32.gmra.mxu1 %vm482_vm0, %v473_v7 }
  0x22   : > { %431 = vmatpush.bf16.msra.mxu0 %v398_v44  ;;  %763 = vmatpush.bf16.msra.mxu3 %v398_v44 }
  0x26   : > { %432 = vmatpush.bf16.msra.mxu0 %v397_v51  ;;  %764 = vmatpush.bf16.msra.mxu3 %v397_v51 }
  0x29   : > { %739 = vmatmul.msk.f32.gmra.mxu1 %vm482_vm0, %v474_v10 }
  0x2a   : > { %433 = vmatpush.bf16.msra.mxu0 %v396_v54  ;;  %765 = vmatpush.bf16.msra.mxu3 %v396_v54 }
  0x2e   : > { %434 = vmatpush.bf16.msra.mxu0 %v395_v57  ;;  %766 = vmatpush.bf16.msra.mxu3 %v395_v57 }
  0x31   : > { %435 = vmatmul.bf16.vlgmr.msra.gmra.mxu0 %v755_v58  ;;  %440 = vmatmul.bf16.vlgmr.msra.gmra.mxu3 %v756_v59 }
  0x32   : > { %740 = vmatmul.msk.f32.gmra.mxu1 %vm482_vm0, %v475_v13 }
  0x3a   : > { %741 = vmatmul.msk.f32.gmra.mxu1 %vm482_vm0, %v476_v17 }
  0x41   : > { %445 = vmatmul.bf16.gmra.mxu3 %v757_v60 }
  0x42   : > { %742 = vmatmul.msk.f32.gmra.mxu1 %vm482_vm0, %v477_v22 }
  0x4a   : > { %743 = vmatmul.msk.f32.gmra.mxu1 %vm482_vm0, %v478_v26 }
  0x51   : > { %450 = vmatmul.bf16.gmra.mxu3 %v758_v61 }
  0x52   : > { %744 = vmatmul.msk.f32.gmra.mxu1 %vm482_vm0, %v479_v30 }
  0x96   : > { %v524_v34 = vpop.f32.mrf.mxu1 }
  0x9e   : > { %v527_v35 = vpop.f32.mrf.mxu1 }
  0xa6   : > { %v530_v38 = vpop.f32.mrf.mxu1 }
  0xae   : > { %v436_v14 = vpop.f32.mrf.mxu0 }
  0xaf   : > { %745 = vmatmul.msk.f32.vlgmr.msra.gmra.mxu2 %vm482_vm0, %v436_v14  ;;  %v533_v44 = vpop.f32.mrf.mxu1 }
  0xb4   : > { %v441_v18 = vpop.f32.mrf.mxu3 }
  0xb6   : > { %v438_v19 = vpop.f32.mrf.mxu0 }
  0xb7   : > { %746 = vmatmul.msk.f32.gmra.mxu2 %vm482_vm0, %v438_v19  ;;  %v536_v50 = vpop.f32.mrf.mxu1 }
  0xbc   : > { %v443_v23 = vpop.f32.mrf.mxu3 }
  0xbf   : > { %747 = vmatmul.msk.f32.gmra.mxu2 %vm482_vm0, %v441_v18  ;;  %v539_v56 = vpop.f32.mrf.mxu1 }
  0xc4   : > { %v446_v28 = vpop.f32.mrf.mxu3 }
  0xc7   : > { %748 = vmatmul.msk.f32.gmra.mxu2 %vm482_vm0, %v443_v23  ;;  %v542_v62 = vpop.f32.mrf.mxu1 }
  0xcc   : > { %v448_v31 = vpop.f32.mrf.mxu3 }
  0xcf   : > { %749 = vmatmul.msk.f32.gmra.mxu2 %vm482_vm0, %v446_v28  ;;  %v545_v6 = vpop.f32.mrf.mxu1 }
  0xd4   : > { %v451_v32 = vpop.f32.mrf.mxu3 }
  0xd7   : > { %750 = vmatmul.msk.f32.gmra.mxu2 %vm482_vm0, %v448_v31 }
  0xdc   : > { %v453_v33 = vpop.f32.mrf.mxu3 }
  0xdf   : > { %751 = vmatmul.msk.f32.gmra.mxu2 %vm482_vm0, %v451_v32 }
  0xe7   : > { %752 = vmatmul.msk.f32.gmra.mxu2 %vm482_vm0, %v453_v33 }
 0x132   : > { %v589_v3 = vpop.f32.mrf.mxu2 }
 0x133   : > { %v590_v36 = vadd.f32 %v589_v3, %v524_v34 }
 0x135   : > { %v617_v37 = vadd.f32 %v777_v2, %v590_v36 }
 0x137   : > { %v625_v39 = vmax.f32 %v617_v37, 0.0 }
 0x139   : > { %634 = vst.msk [vmem:[%s999_s20] sm:$0xff] %vm633_vm1, %v625_v39 }
 0x13a   : > { %v592_v40 = vpop.f32.mrf.mxu2 }
 0x13b   : > { %v593_v41 = vadd.f32 %v592_v40, %v527_v35 }
 0x13d   : > { %v618_v42 = vadd.f32 %v777_v2, %v593_v41 }
 0x13f   : > { %v626_v43 = vmax.f32 %v618_v42, 0.0 }
 0x141   : > { %635 = vst.msk [vmem:[%s999_s20 + $0x8] sm:$0xff] %vm633_vm1, %v626_v43 }
 0x142   : > { %v595_v45 = vpop.f32.mrf.mxu2 }
 0x143   : > { %v596_v46 = vadd.f32 %v595_v45, %v530_v38 }
 0x145   : > { %v619_v47 = vadd.f32 %v777_v2, %v596_v46 }
 0x147   : > { %v627_v48 = vmax.f32 %v619_v47, 0.0 }
 0x149   : > { %636 = vst.msk [vmem:[%s999_s20 + $0x10] sm:$0xff] %vm633_vm1, %v627_v48 }
 0x14a   : > { %v598_v49 = vpop.f32.mrf.mxu2 }
 0x14b   : > { %v599_v51 = vadd.f32 %v598_v49, %v533_v44 }
 0x14d   : > { %v620_v52 = vadd.f32 %v777_v2, %v599_v51 }
 0x14f   : > { %v628_v53 = vmax.f32 %v620_v52, 0.0 }
 0x151   : > { %637 = vst.msk [vmem:[%s999_s20 + $0x18] sm:$0xff] %vm633_vm1, %v628_v53 }
 0x152   : > { %v601_v54 = vpop.f32.mrf.mxu2 }
 0x153   : > { %v602_v55 = vadd.f32 %v601_v54, %v536_v50 }
 0x155   : > { %v621_v57 = vadd.f32 %v777_v2, %v602_v55 }
 0x157   : > { %v629_v58 = vmax.f32 %v621_v57, 0.0 }
 0x159   : > { %638 = vst.msk [vmem:[%s999_s20 + $0x20] sm:$0xff] %vm633_vm1, %v629_v58 }
 0x15a   : > { %v604_v59 = vpop.f32.mrf.mxu2 }
 0x15b   : > { %v605_v60 = vadd.f32 %v604_v59, %v539_v56 }
 0x15d   : > { %v622_v61 = vadd.f32 %v777_v2, %v605_v60 }
 0x15f   : > { %v630_v63 = vmax.f32 %v622_v61, 0.0 }
 0x161   : > { %639 = vst.msk [vmem:[%s999_s20 + $0x28] sm:$0xff] %vm633_vm1, %v630_v63 }
 0x162   : > { %v607_v0 = vpop.f32.mrf.mxu2 }
 0x163   : > { %v608_v1 = vadd.f32 %v607_v0, %v542_v62 }
 0x165   : > { %v623_v4 = vadd.f32 %v777_v2, %v608_v1 }
 0x167   : > { %v631_v5 = vmax.f32 %v623_v4, 0.0 }
 0x169   : > { %640 = vst.msk [vmem:[%s999_s20 + $0x30] sm:$0xff] %vm633_vm1, %v631_v5 }
 0x16a   : > { %v610_v7 = vpop.f32.mrf.mxu2 }
 0x16b   : > { %v611_v8 = vadd.f32 %v610_v7, %v545_v6 }
 0x16d   : > { %v624_v9 = vadd.f32 %v777_v2, %v611_v8 }
 0x16f   : > { %v632_v10 = vmax.f32 %v624_v9, 0.0 }
 0x171   : > { %641 = vst.msk [vmem:[%s999_s20 + $0x38] sm:$0xff] %vm633_vm1, %v632_v10 }
 0x172 PF: > { %s18_s27 = sadd.s32 1, %s784_s27  }
 0x173   : > { %p15_p4 = scmp.ge.s32.totalorder %s18_s27, 4  }
 0x175   :  { %17 = sbr.rel (!%p15_p4) target bundleno = 1 (0x1), region = 85 }

// kernel: causal_sage_forward.7
= control target key start
LH: loop header
LB: loop body
LE: loop exit
PB: predicated region body
PF: predicated region fallthrough
CT: control target
= control target key end

     0   :  { %s2527_s15 = smov 0   ;;  %s3760_s0 = inlined_call_operand.vmem [shape: bf16[128,128], index: 0, kind: input, shape index: {}]   ;;  %s3761_s1 = inlined_call_operand.vmem [shape: f32[128,32], index: 1, kind: input, shape index: {}, may-alias: {1,2}]   ;;  %s3762_s2 = inlined_call_operand.vmem [shape: f32[128,32], index: 2, kind: input, shape index: {}, may-alias: {1,2}]   ;;  %s3763_s3 = inlined_call_operand.vmem [shape: f32[1,32], index: 3, kind: input, shape index: {}]   ;;  %s3764_s4 = inlined_call_operand.<no memory space> [shape: f32[1,1], index: 4, kind: input, shape index: {}]   ;;  %s3765_s5 = inlined_call_operand.vmem [shape: f32[64,12], index: 5, kind: input, shape index: {}]   ;;  %s3766_s6 = inlined_call_operand.vmem [shape: f32[64,12], index: 6, kind: input, shape index: {}]   ;;  %s3767_s7 = inlined_call_operand.vmem [shape: f32[1,12], index: 7, kind: input, shape index: {}]   ;;  %s3768_s8 = inlined_call_operand.vmem [shape: f32[128,12], index: 8, kind: output, shape index: {0}]   ;;  %s3769_s9 = inlined_call_operand.vmem [shape: f32[128,32], index: 9, kind: output, shape index: {1}]   ;;  %s3770_s10 = inlined_call_operand.vmem [shape: f32[128,32], index: 10, kind: output, shape index: {2}]  }
   0x1   :  { %v16_v0 = vstv %s3764_s4 }
   0x2   :  { %17 = vst [vmem:[#allocation2] sm:$0x1] %v16_v0 }
   0x3 LB: > { %s2112_s16 = sadd.s32 4294967295, %s2463_s15   ;;  %p2116_p0 = scmp.ge.s32.totalorder %s2463_s15, 1  ;;  %s2463_s15 = sphi %s2527_s15, %s23_s15  }
   0x4   : > { %p331_p1 = scmp.lt.s32.totalorder %s2463_s15, 3 }
   0x6   : > { %p332_p2 = pnand %p2116_p0, %p331_p1 }
   0x7   : > { %s2466_s11 = smov (!%p332_p2), 32   ;;  %s2117_s12 = sshll.u32 (!%p332_p2), %s2112_s16, 3 }
   0x8   : > { %335 = sbr.rel (%p332_p2) target bundleno = 1414 (0x586), region = 52  ;;  %p385_p3 = scmp.lt.s32.totalorder (!%p332_p2), %s2117_s12, 15 }
   0x9   : > { %s2467_s27 = smov (!%p332_p2), 124   ;;  %s2468_s29 = smov (!%p332_p2), 120  }
   0xd   : > { %v2538_v1 = vld [vmem:[%s3761_s1 + $0x70] sm:$0xff]  ;;  %v2543_v2 = vld [vmem:[%s3763_s3] ss:$0 sm:$0xff]  ;;  %vm450_vm0 = vcmask 261120   ;;  %v2564_v8 = vld [vmem:[%s3761_s1 + $0x78] sm:$0xff]  ;;  %v2465_v57 = vmov 0  }
   0xe   : > { %v2548_v3 = vld [vmem:[%s3761_s1 + $0x60] sm:$0xff]  ;;  %v2553_v4 = vld [vmem:[%s3761_s1 + $0x50] sm:$0xff]  ;;  %v448_v5 = vmul.f32 %v2543_v2, %v2538_v1  ;;  %v2569_v9 = vld [vmem:[%s3761_s1 + $0x68] sm:$0xff]  ;;  %v449_v14 = vmul.f32 %v2543_v2, %v2564_v8  ;;  %2219 = vset.pattern.permute.xlu0 %v2465_v57  ;;  %2217 = vset.pattern.permute.xlu1 %v2465_v57  ;;  %s3804_s12 = smov (!%p385_p3, %s2117_s12), 15 }
   0xf   : > { %v446_v6 = vmul.f32 %v2543_v2, %v2548_v3  ;;  %v444_v7 = vmul.f32 %v2543_v2, %v2553_v4  ;;  %v2577_v13 = vld [vmem:[%s3761_s1 + $0x58] sm:$0xff]  ;;  %v447_v15 = vmul.f32 %v2543_v2, %v2569_v9  ;;  %v2591_v20 = vld [vmem:[%s3761_s1 + $0x40] sm:$0xff]  ;;  %v2596_v21 = vld [vmem:[%s3761_s1 + $0x48] sm:$0xff]  ;;  %2218 = vset.pattern.permute.xlu2 %v2465_v57  ;;  %s3119_s13 = sshll.u32 %s3804_s12, 3  ;;  %s2118_s19 = sshll.u32 %s3804_s12, 2 }
  0x10   : > { %v493_v10 = vsel %vm450_vm0, %v448_v5, 0.0  ;;  %v445_v16 = vmul.f32 %v2543_v2, %v2577_v13  ;;  %v496_v17 = vsel %vm450_vm0, %v449_v14, 0.0  ;;  %v2601_v22 = vld [vmem:[%s3761_s1 + $0x30] sm:$0xff]  ;;  %v442_v23 = vmul.f32 %v2543_v2, %v2591_v20  ;;  %v2615_v29 = vld [vmem:[%s3761_s1 + $0x38] sm:$0xff]  ;;  %v2620_v30 = vld [vmem:[%s3761_s1 + $0x20] sm:$0xff]  ;;  %s3125_s18 = scalar_lea.vmem %s3762_s2, %s3119_s13  ;;  %s3262_s22 = scalar_lea.vmem %s3760_s0, %s2118_s19 }
  0x11   : > { %v487_v11 = vsel %vm450_vm0, %v446_v6, 0.0  ;;  %v481_v12 = vsel %vm450_vm0, %v444_v7, 0.0  ;;  %494 = vadd.xlane.f32.xlu0 %v493_v10  ;;  %v490_v18 = vsel %vm450_vm0, %v447_v15, 0.0  ;;  %v443_v24 = vmul.f32 %v2543_v2, %v2596_v21  ;;  %v2625_v31 = vld [vmem:[%s3761_s1 + $0x28] sm:$0xff]  ;;  %v2639_v38 = vld [vmem:[%s3761_s1 + $0x10] sm:$0xff]  ;;  %v2644_v39 = vld [vmem:[%s3761_s1 + $0x18] sm:$0xff]  ;;  %s3274_s25 = scalar_lea.vmem %s3769_s9, %s3119_s13  ;;  %s3283_s28 = scalar_lea.vmem %s3770_s10, %s3119_s13 }
  0x12   : > { %488 = vadd.xlane.f32.xlu1 %v487_v11  ;;  %482 = vadd.xlane.f32.xlu2 %v481_v12  ;;  %v484_v19 = vsel %vm450_vm0, %v445_v16, 0.0  ;;  %v440_v25 = vmul.f32 %v2543_v2, %v2601_v22  ;;  %v475_v26 = vsel %vm450_vm0, %v442_v23, 0.0  ;;  %v441_v32 = vmul.f32 %v2543_v2, %v2615_v29  ;;  %v2649_v40 = vld [vmem:[%s3761_s1] sm:$0xff]  ;;  %v2662_v46 = vld [vmem:[%s3761_s1 + $0x8] sm:$0xff]  ;;  %s3681_s14 = scalar_lea.vmem %s3768_s8, %s3119_s13 }
  0x13   : > { %v478_v27 = vsel %vm450_vm0, %v443_v24, 0.0  ;;  %v438_v33 = vmul.f32 %v2543_v2, %v2620_v30  ;;  %v439_v34 = vmul.f32 %v2543_v2, %v2625_v31  ;;  %v436_v41 = vmul.f32 %v2543_v2, %v2639_v38  ;;  %v2668_v50 = vld [vmem:[#allocation2] ss:$0 sm:$0xff] }
  0x14   : > { %v469_v28 = vsel %vm450_vm0, %v440_v25, 0.0  ;;  %v472_v35 = vsel %vm450_vm0, %v441_v32, 0.0  ;;  %v437_v42 = vmul.f32 %v2543_v2, %v2644_v39  ;;  %v434_v43 = vmul.f32 %v2543_v2, %v2649_v40 }
  0x15   : > { %v463_v36 = vsel %vm450_vm0, %v438_v33, 0.0  ;;  %v466_v37 = vsel %vm450_vm0, %v439_v34, 0.0  ;;  %v457_v44 = vsel %vm450_vm0, %v436_v41, 0.0  ;;  %v435_v48 = vmul.f32 %v2543_v2, %v2662_v46 }
  0x16   : > { %v460_v45 = vsel %vm450_vm0, %v437_v42, 0.0  ;;  %v451_v47 = vsel %vm450_vm0, %v434_v43, 0.0 }
  0x17   : > { %v454_v49 = vsel %vm450_vm0, %v435_v48, 0.0 }
  0x19   : > { %497 = vadd.xlane.f32.xlu0 %v496_v17 }
  0x1a   : > { %491 = vadd.xlane.f32.xlu1 %v490_v18  ;;  %485 = vadd.xlane.f32.xlu2 %v484_v19 }
  0x21   : > { %476 = vadd.xlane.f32.xlu0 %v475_v26 }
  0x22   : > { %479 = vadd.xlane.f32.xlu1 %v478_v27  ;;  %470 = vadd.xlane.f32.xlu2 %v469_v28 }
  0x29   : > { %473 = vadd.xlane.f32.xlu0 %v472_v35 }
  0x2a   : > { %464 = vadd.xlane.f32.xlu1 %v463_v36  ;;  %467 = vadd.xlane.f32.xlu2 %v466_v37 }
  0x31   : > { %458 = vadd.xlane.f32.xlu0 %v457_v44 }
  0x32   : > { %461 = vadd.xlane.f32.xlu1 %v460_v45  ;;  %452 = vadd.xlane.f32.xlu2 %v451_v47 }
  0x39   : > { %455 = vadd.xlane.f32.xlu0 %v454_v49 }
  0x84   : > { %v495_v51 = vpop.xlane.xlu0 %494 }
  0x85   : > { %v489_v52 = vpop.xlane.xlu1 %488  ;;  %v517_v53 = vadd.f32 %v2668_v50, %v495_v51  ;;  %v483_v55 = vpop.xlane.xlu2 %482 }
  0x86   : > { %v515_v54 = vadd.f32 %v2668_v50, %v489_v52  ;;  %v513_v56 = vadd.f32 %v2668_v50, %v483_v55 }
  0x87   : > { %v2141_v58 = vmul.f32 -1.442695, %v517_v53 }
  0x88   : > { %v2139_v59 = vmul.f32 -1.442695, %v515_v54  ;;  %v2137_v60 = vmul.f32 -1.442695, %v513_v56 }
  0x89   : > { %2263 = vpow2.f32 %v2141_v58 }
  0x8a   : > { %2265 = vpow2.f32 %v2139_v59 }
  0x8b   : > { %2267 = vpow2.f32 %v2137_v60 }
  0x8c   : > { %v498_v61 = vpop.xlane.xlu0 %497 }
  0x8d   : > { %v492_v62 = vpop.xlane.xlu1 %491  ;;  %v518_v63 = vadd.f32 %v2668_v50, %v498_v61  ;;  %v486_v0 = vpop.xlane.xlu2 %485 }
  0x8e   : > { %v514_v5 = vadd.f32 %v2668_v50, %v486_v0  ;;  %v516_v6 = vadd.f32 %v2668_v50, %v492_v62 }
  0x8f   : > { %v2264_v7 = vpop.eup %2263  ;;  %v2142_v10 = vmul.f32 -1.442695, %v518_v63 }
  0x90   : > { %v2266_v11 = vpop.eup %2265  ;;  %v2676_v12 = vadd.f32 1.0, %v2264_v7  ;;  %v2138_v16 = vmul.f32 -1.442695, %v514_v5  ;;  %v2140_v18 = vmul.f32 -1.442695, %v516_v6 }
  0x91   : > { %v2268_v14 = vpop.eup %2267  ;;  %v2678_v15 = vadd.f32 1.0, %v2266_v11  ;;  %2269 = vpow2.f32 %v2142_v10 }
  0x92   : > { %2271 = vrcp.f32 %v2676_v12  ;;  %v2681_v17 = vadd.f32 1.0, %v2268_v14  ;;  %v804_v19 = vand.u32 2147483648, %v2676_v12  ;;  %v802_v25 = vand.u32 2147483647, %v2676_v12 }
  0x93   : > { %2273 = vrcp.f32 %v2678_v15  ;;  %v772_v26 = vand.u32 2147483647, %v2678_v15  ;;  %v774_v33 = vand.u32 2147483648, %v2678_v15  ;;  %vm798_vm1 = vweird.f32 %v2676_v12 }
  0x94   : > { %2275 = vrcp.f32 %v2681_v17  ;;  %v477_v23 = vpop.xlane.xlu0 %476  ;;  %v2693_v37 = vor.u32 1.1754944e-38, %v804_v19  ;;  %vm768_vm2 = vweird.f32 %v2678_v15  ;;  %v744_v47 = vand.u32 2147483648, %v2681_v17 }
  0x95   : > { %v480_v24 = vpop.xlane.xlu1 %479  ;;  %2277 = vpow2.f32 %v2138_v16  ;;  %v511_v27 = vadd.f32 %v2668_v50, %v477_v23  ;;  %v471_v28 = vpop.xlane.xlu2 %470  ;;  %vm2700_vm3 = vcmp.eq.f32.partialorder %v772_v26, 8.507059e+37  ;;  %vm2707_vm4 = vcmp.eq.f32.partialorder %v802_v25, 8.507059e+37 }
  0x96   : > { %v512_v32 = vadd.f32 %v2668_v50, %v480_v24  ;;  %2279 = vpow2.f32 %v2140_v18  ;;  %v509_v34 = vadd.f32 %v2668_v50, %v471_v28  ;;  %v775_v52 = vor.u32 1.1754944e-38, %v774_v33 }
  0x97   : > { %v2270_v35 = vpop.eup %2269  ;;  %v2135_v36 = vmul.f32 -1.442695, %v511_v27  ;;  %vm738_vm5 = vweird.f32 %v2681_v17  ;;  %v742_v53 = vand.u32 2147483647, %v2681_v17  ;;  %v2720_v59 = vor.u32 1.1754944e-38, %v744_v47 }
  0x98   : > { %v2696_v41 = vpop.eup %2271  ;;  %v2698_v42 = vadd.f32 1.0, %v2270_v35  ;;  %v2133_v43 = vmul.f32 -1.442695, %v509_v34  ;;  %v2136_v44 = vmul.f32 -1.442695, %v512_v32 }
  0x99   : > { %v2274_v48 = vpop.eup %2273  ;;  %2281 = vpow2.f32 %v2135_v36  ;;  %v794_v49 = vmul.f32 %v2696_v41, %v2676_v12  ;;  %vm799_vm6 = vweird.f32 %v2696_v41  ;;  %vm2730_vm9 = vcmp.eq.f32.partialorder %v742_v53, 8.507059e+37 }
  0x9a   : > { %v2713_v54 = vpop.eup %2275  ;;  %2283 = vrcp.f32 %v2698_v42  ;;  %v764_v55 = vmul.f32 %v2274_v48, %v2678_v15  ;;  %vm769_vm7 = vweird.f32 %v2274_v48  ;;  %vm800_vm11 = vmor %vm798_vm1, %vm799_vm6  ;;  %vm813_vm12 = vweird.f32 %v2698_v42 }
  0x9b   : > { %v2278_v56 = vpop.eup %2277  ;;  %2285 = vpow2.f32 %v2133_v43  ;;  %v795_v57 = vsub.f32 1.0, %v794_v49  ;;  %v734_v58 = vmul.f32 %v2713_v54, %v2681_v17  ;;  %vm739_vm8 = vweird.f32 %v2713_v54  ;;  %vm2741_vm10 = vmor %vm768_vm2, %vm769_vm7 }
  0x9c   : > { %v2280_v60 = vpop.eup %2279  ;;  %v2722_v61 = vadd.f32 1.0, %v2278_v56  ;;  %v474_v62 = vpop.xlane.xlu0 %473  ;;  %2287 = vpow2.f32 %v2136_v44  ;;  %v765_v63 = vsub.f32 1.0, %v764_v55  ;;  %vm740_vm14 = vmor %vm738_vm5, %vm739_vm8  ;;  %v819_v51 = vand.u32 2147483648, %v2698_v42 }
  0x9d   : > { %v465_v0 = vpop.xlane.xlu1 %464  ;;  %v2725_v5 = vadd.f32 1.0, %v2280_v60  ;;  %v510_v6 = vadd.f32 %v2668_v50, %v474_v62  ;;  %v468_v7 = vpop.xlane.xlu2 %467  ;;  %v796_v10 = vmul.f32 %v2696_v41, %v795_v57  ;;  %v735_v19 = vsub.f32 1.0, %v734_v58 }
  0x9e   : > { %v507_v11 = vadd.f32 %v2668_v50, %v465_v0  ;;  %2289 = vrcp.f32 %v2722_v61  ;;  %v508_v16 = vadd.f32 %v2668_v50, %v468_v7  ;;  %v766_v18 = vmul.f32 %v2274_v48, %v765_v63 }
  0x9f   : > { %v2282_v23 = vpop.eup %2281  ;;  %2291 = vrcp.f32 %v2725_v5  ;;  %v2134_v24 = vmul.f32 -1.442695, %v510_v6  ;;  %v797_v25 = vadd.f32 %v2696_v41, %v796_v10  ;;  %v736_v35 = vmul.f32 %v2713_v54, %v735_v19 }
  0xa0   : > { %v2131_v27 = vmul.f32 -1.442695, %v507_v11  ;;  %v2745_v28 = vpop.eup %2283  ;;  %v2747_v32 = vadd.f32 1.0, %v2282_v23  ;;  %v2132_v33 = vmul.f32 -1.442695, %v508_v16  ;;  %v767_v34 = vadd.f32 %v2274_v48, %v766_v18 }
  0xa1   : > { %v2286_v15 = vpop.eup %2285  ;;  %2293 = vpow2.f32 %v2134_v24  ;;  %v801_v36 = vsel %vm800_vm11, %v2696_v41, %v797_v25  ;;  %v809_v43 = vmul.f32 %v2745_v28, %v2698_v42  ;;  %vm814_vm13 = vweird.f32 %v2745_v28 }
  0xa2   : > { %v2288_v44 = vpop.eup %2287  ;;  %2295 = vrcp.f32 %v2747_v32  ;;  %v2760_v47 = vadd.f32 1.0, %v2286_v15  ;;  %v806_v12 = vsel %vm2707_vm4, %v2693_v37, %v801_v36  ;;  %v771_v49 = vsel %vm2741_vm10, %v2274_v48, %v767_v34  ;;  %vm815_vm2 = vmor %vm813_vm12, %vm814_vm13 }
  0xa3   : > { %2297 = vpow2.f32 %v2132_v33  ;;  %v2767_v53 = vadd.f32 1.0, %v2288_v44  ;;  %895 = vperm.xlu1 %2217, %v806_v12   ;;  %v776_v41 = vsel %vm2700_vm3, %v775_v52, %v771_v49  ;;  %v737_v55 = vadd.f32 %v2713_v54, %v736_v35 }
  0xa4   : > { %v2772_v56 = vpop.eup %2289  ;;  %2299 = vrcp.f32 %v2760_v47  ;;  %885 = vperm.xlu0 %2219, %v776_v41   ;;  %v459_v57 = vpop.xlane.xlu0 %458  ;;  %v810_v37 = vsub.f32 1.0, %v809_v43  ;;  %v817_v48 = vand.u32 2147483647, %v2698_v42  ;;  %v820_v11 = vor.u32 1.1754944e-38, %v819_v51 }
  0xa5   : > { %v462_v45 = vpop.xlane.xlu1 %461  ;;  %v2781_v52 = vpop.eup %2291  ;;  %2301 = vrcp.f32 %v2767_v53  ;;  %v505_v58 = vadd.f32 %v2668_v50, %v459_v57  ;;  %v741_v60 = vsel %vm740_vm14, %v2713_v54, %v737_v55  ;;  %vm708_vm1 = vweird.f32 %v2747_v32 }
  0xa6   : > { %v453_v62 = vpop.xlane.xlu2 %452  ;;  %v506_v63 = vadd.f32 %v2668_v50, %v462_v45  ;;  %2303 = vpow2.f32 %v2131_v27  ;;  %v746_v17 = vsel %vm2730_vm9, %v2720_v59, %v741_v60  ;;  %v811_v0 = vmul.f32 %v2745_v28, %v810_v37 }
  0xa7   : > { %vm2791_vm15 = vcmp.eq.f32.partialorder %v817_v48, 8.507059e+37  ;;  %v2294_v7 = vpop.eup %2293  ;;  %v2129_v10 = vmul.f32 -1.442695, %v505_v58  ;;  %v503_v16 = vadd.f32 %v2668_v50, %v453_v62  ;;  %v712_v59 = vand.u32 2147483647, %v2747_v32 }
  0xa8   : > { %v2130_v54 = vmul.f32 -1.442695, %v506_v63  ;;  %v2296_v18 = vpop.eup %2295  ;;  %v2796_v19 = vadd.f32 1.0, %v2294_v7  ;;  %v812_v23 = vadd.f32 %v2745_v28, %v811_v0  ;;  %v714_v36 = vand.u32 2147483648, %v2747_v32 }
  0xa9   : > { %v2298_v14 = vpop.eup %2297  ;;  %2305 = vpow2.f32 %v2129_v10  ;;  %v2127_v24 = vmul.f32 -1.442695, %v503_v16  ;;  %v704_v25 = vmul.f32 %v2296_v18, %v2747_v32  ;;  %vm709_vm3 = vweird.f32 %v2296_v18 }
  0xaa   : > { %v2806_v26 = vpop.eup %2299  ;;  %2307 = vrcp.f32 %v2796_v19  ;;  %v2809_v27 = vadd.f32 1.0, %v2298_v14  ;;  %v816_v33 = vsel %vm815_vm2, %v2745_v28, %v812_v23  ;;  %vm2812_vm4 = vcmp.eq.f32.partialorder %v712_v59, 8.507059e+37  ;;  %vm710_vm7 = vmor %vm708_vm1, %vm709_vm3 }
  0xab   : > { %v2816_v35 = vpop.eup %2301  ;;  %875 = vperm.xlu1 %2217, %v746_v17   ;;  %v821_v42 = vsel %vm2791_vm15, %v820_v11, %v816_v33  ;;  %2309 = vpow2.f32 %v2127_v24  ;;  %v705_v15 = vsub.f32 1.0, %v704_v25  ;;  %v779_v28 = vmul.f32 %v2781_v52, %v2725_v5 }
  0xac   : > { %v2304_v43 = vpop.eup %2303  ;;  %2311 = vrcp.f32 %v2809_v27  ;;  %900 = vperm.xlu2 %2218, %v821_v42   ;;  %v456_v44 = vpop.xlane.xlu0 %455  ;;  %vm783_vm5 = vweird.f32 %v2725_v5  ;;  %vm784_vm6 = vweird.f32 %v2781_v52  ;;  %v715_v55 = vor.u32 1.1754944e-38, %v714_v36 }
  0xad   : > { %v2826_v12 = vadd.f32 1.0, %v2304_v43  ;;  %v504_v49 = vadd.f32 %v2668_v50, %v456_v44  ;;  %2313 = vpow2.f32 %v2130_v54  ;;  %v706_v41 = vmul.f32 %v2296_v18, %v705_v15  ;;  %vm2850_vm9 = vmor %vm783_vm5, %vm784_vm6 }
  0xae   : > { %v780_v57 = vsub.f32 1.0, %v779_v28  ;;  %v787_v37 = vand.u32 2147483647, %v2725_v5  ;;  %v789_v48 = vand.u32 2147483648, %v2725_v5  ;;  %v674_v60 = vmul.f32 %v2806_v26, %v2760_v47 }
  0xaf   : > { %v2306_v51 = vpop.eup %2305  ;;  %2315 = vrcp.f32 %v2826_v12  ;;  %v2128_v45 = vmul.f32 -1.442695, %v504_v49  ;;  %v707_v58 = vadd.f32 %v2296_v18, %v706_v41  ;;  %vm678_vm10 = vweird.f32 %v2760_v47 }
  0xb0   : > { %v2834_v62 = vpop.eup %2307  ;;  %v2836_v63 = vadd.f32 1.0, %v2306_v51  ;;  %v781_v50 = vmul.f32 %v2781_v52, %v780_v57  ;;  %vm2842_vm8 = vcmp.eq.f32.partialorder %v787_v37, 8.507059e+37  ;;  %v790_v0 = vor.u32 1.1754944e-38, %v789_v48 }
  0xb1   : > { %v2310_v6 = vpop.eup %2309  ;;  %2317 = vpow2.f32 %v2128_v45  ;;  %v711_v7 = vsel %vm710_vm7, %v2296_v18, %v707_v58  ;;  %v675_v32 = vsub.f32 1.0, %v674_v60  ;;  %vm679_vm11 = vweird.f32 %v2806_v26 }
  0xb2   : > { %v2855_v11 = vpop.eup %2311  ;;  %2319 = vrcp.f32 %v2836_v63  ;;  %v2858_v16 = vadd.f32 1.0, %v2310_v6  ;;  %v716_v54 = vsel %vm2812_vm4, %v715_v55, %v711_v7  ;;  %v782_v18 = vadd.f32 %v2781_v52, %v781_v50  ;;  %vm680_vm13 = vmor %vm678_vm10, %vm679_vm11 }
  0xb3   : > { %v2314_v23 = vpop.eup %2313  ;;  %865 = vperm.xlu1 %2217, %v716_v54   ;;  %v676_v5 = vmul.f32 %v2806_v26, %v675_v32  ;;  %v682_v59 = vand.u32 2147483647, %v2760_v47  ;;  %v684_v14 = vand.u32 2147483648, %v2760_v47  ;;  %v689_v33 = vmul.f32 %v2834_v62, %v2796_v19 }
  0xb4   : > { %2321 = vrcp.f32 %v2858_v16  ;;  %v2868_v24 = vadd.f32 1.0, %v2314_v23  ;;  %v786_v25 = vsel %vm2850_vm9, %v2781_v52, %v782_v18  ;;  %vm693_vm14 = vweird.f32 %v2796_v19 }
  0xb5   : > { %v2875_v34 = vpop.eup %2315  ;;  %v791_v42 = vsel %vm2842_vm8, %v790_v0, %v786_v25  ;;  %v677_v15 = vadd.f32 %v2806_v26, %v676_v5  ;;  %vm683_vm12 = vcmp.eq.f32.partialorder %v682_v59, 8.507059e+37  ;;  %v685_v36 = vor.u32 1.1754944e-38, %v684_v14 }
  0xb6   : > { %2323 = vrcp.f32 %v2868_v24  ;;  %890 = vperm.xlu2 %2218, %v791_v42   ;;  %v690_v43 = vsub.f32 1.0, %v689_v33  ;;  %vm694_vm15 = vweird.f32 %v2834_v62  ;;  %v697_v28 = vand.u32 2147483647, %v2796_v19 }
  0xb7   : > { %v2318_v52 = vpop.eup %2317  ;;  %v681_v44 = vsel %vm680_vm13, %v2806_v26, %v677_v15  ;;  %v699_v49 = vand.u32 2147483648, %v2796_v19  ;;  %v749_v41 = vmul.f32 %v2772_v56, %v2722_v61  ;;  %vm753_vm1 = vweird.f32 %v2722_v61  ;;  %vm695_vm4 = vmor %vm693_vm14, %vm694_vm15 }
  0xb8   : > { %v2890_v55 = vpop.eup %2319  ;;  %v2892_v57 = vadd.f32 1.0, %v2318_v52  ;;  %v686_v47 = vsel %vm683_vm12, %v685_v36, %v681_v44  ;;  %v691_v37 = vmul.f32 %v2834_v62, %v690_v43  ;;  %vm2896_vm2 = vcmp.eq.f32.partialorder %v697_v28, 8.507059e+37 }
  0xb9   : > { %v700_v26 = vor.u32 1.1754944e-38, %v699_v49  ;;  %v750_v51 = vsub.f32 1.0, %v749_v41  ;;  %vm754_vm3 = vweird.f32 %v2772_v56  ;;  %v757_v60 = vand.u32 2147483647, %v2722_v61 }
  0xba   : > { %v2901_v45 = vpop.eup %2321  ;;  %2325 = vrcp.f32 %v2892_v57  ;;  %v692_v58 = vadd.f32 %v2834_v62, %v691_v37  ;;  %v759_v50 = vand.u32 2147483648, %v2722_v61  ;;  %v659_v0 = vmul.f32 %v2855_v11, %v2809_v27  ;;  %vm755_vm8 = vmor %vm753_vm1, %vm754_vm3 }
  0xbb   : > { %855 = vperm.xlu1 %2217, %v686_v47   ;;  %v751_v17 = vmul.f32 %v2772_v56, %v750_v51  ;;  %vm663_vm5 = vweird.f32 %v2809_v27  ;;  %vm664_vm6 = vweird.f32 %v2855_v11  ;;  %vm2919_vm7 = vcmp.eq.f32.partialorder %v757_v60, 8.507059e+37 }
  0xbc   : > { %v2916_v6 = vpop.eup %2323  ;;  %v696_v7 = vsel %vm695_vm4, %v2834_v62, %v692_v58  ;;  %v760_v32 = vor.u32 1.1754944e-38, %v759_v50  ;;  %v667_v19 = vand.u32 2147483647, %v2809_v27  ;;  %v660_v23 = vsub.f32 1.0, %v659_v0  ;;  %vm665_vm15 = vmor %vm663_vm5, %vm664_vm6 }
  0xbd   : > { %v701_v54 = vsel %vm2896_vm2, %v700_v26, %v696_v7  ;;  %v752_v18 = vadd.f32 %v2772_v56, %v751_v17  ;;  %v669_v5 = vand.u32 2147483648, %v2809_v27  ;;  %v614_v59 = vmul.f32 %v2890_v55, %v2836_v63 }
  0xbe   : > { %860 = vperm.xlu0 %2219, %v701_v54   ;;  %vm2932_vm9 = vcmp.eq.f32.partialorder %v667_v19, 8.507059e+37  ;;  %vm618_vm10 = vweird.f32 %v2836_v63  ;;  %vm619_vm11 = vweird.f32 %v2890_v55  ;;  %v661_v25 = vmul.f32 %v2855_v11, %v660_v23 }
  0xbf   : > { %v756_v14 = vsel %vm755_vm8, %v2772_v56, %v752_v18  ;;  %v670_v33 = vor.u32 1.1754944e-38, %v669_v5  ;;  %v622_v42 = vand.u32 2147483647, %v2836_v63  ;;  %v615_v36 = vsub.f32 1.0, %v614_v59  ;;  %vm620_vm2 = vmor %vm618_vm10, %vm619_vm11 }
  0xc0   : > { %v2326_v61 = vpop.eup %2325  ;;  %v761_v15 = vsel %vm2919_vm7, %v760_v32, %v756_v14  ;;  %v624_v43 = vand.u32 2147483648, %v2836_v63  ;;  %v719_v52 = vmul.f32 %v2816_v35, %v2767_v53  ;;  %v662_v44 = vadd.f32 %v2855_v11, %v661_v25 }
  0xc1   : > { %880 = vperm.xlu2 %2218, %v761_v15   ;;  %vm2949_vm12 = vcmp.eq.f32.partialorder %v622_v42, 8.507059e+37  ;;  %vm723_vm13 = vweird.f32 %v2767_v53  ;;  %vm724_vm14 = vweird.f32 %v2816_v35  ;;  %v616_v28 = vmul.f32 %v2890_v55, %v615_v36 }
  0xc2   : > { %v625_v49 = vor.u32 1.1754944e-38, %v624_v43  ;;  %v720_v41 = vsub.f32 1.0, %v719_v52  ;;  %v727_v47 = vand.u32 2147483647, %v2767_v53  ;;  %v666_v37 = vsel %vm665_vm15, %v2855_v11, %v662_v44  ;;  %vm2981_vm4 = vmor %vm723_vm13, %vm724_vm14 }
  0xc3   : > { %v729_v48 = vand.u32 2147483648, %v2767_v53  ;;  %v599_v26 = vmul.f32 %v2326_v61, %v2892_v57  ;;  %vm603_vm1 = vweird.f32 %v2892_v57  ;;  %v671_v51 = vsel %vm2932_vm9, %v670_v33, %v666_v37 }
  0xc4   : > { %v617_v27 = vadd.f32 %v2890_v55, %v616_v28  ;;  %v721_v58 = vmul.f32 %v2816_v35, %v720_v41  ;;  %vm2973_vm3 = vcmp.eq.f32.partialorder %v727_v47, 8.507059e+37  ;;  %850 = vperm.xlu1 %2217, %v671_v51   ;;  %vm604_vm5 = vweird.f32 %v2326_v61 }
  0xc5   : > { %v730_v50 = vor.u32 1.1754944e-38, %v729_v48  ;;  %v600_v17 = vsub.f32 1.0, %v599_v26  ;;  %v607_v63 = vand.u32 2147483647, %v2892_v57  ;;  %v609_v10 = vand.u32 2147483648, %v2892_v57  ;;  %vm2998_vm6 = vmor %vm603_vm1, %vm604_vm5 }
  0xc6   : > { %v621_v0 = vsel %vm620_vm2, %v2890_v55, %v617_v27  ;;  %v722_v7 = vadd.f32 %v2816_v35, %v721_v58  ;;  %v644_v32 = vmul.f32 %v2875_v34, %v2826_v12  ;;  %vm648_vm7 = vweird.f32 %v2826_v12 }
  0xc7   : > { %v626_v53 = vsel %vm2949_vm12, %v625_v49, %v621_v0  ;;  %v601_v19 = vmul.f32 %v2326_v61, %v600_v17  ;;  %vm649_vm8 = vweird.f32 %v2875_v34  ;;  %v610_v62 = vor.u32 1.1754944e-38, %v609_v10 }
  0xc8   : > { %835 = vperm.xlu0 %2219, %v626_v53   ;;  %v726_v54 = vsel %vm2981_vm4, %v2816_v35, %v722_v7  ;;  %v645_v18 = vsub.f32 1.0, %v644_v32  ;;  %v654_v59 = vand.u32 2147483648, %v2826_v12  ;;  %vm608_vm9 = vcmp.eq.f32.partialorder %v607_v63, 8.507059e+37  ;;  %vm3013_vm10 = vmor %vm648_vm7, %vm649_vm8 }
  0xc9   : > { %v731_v23 = vsel %vm2973_vm3, %v730_v50, %v726_v54  ;;  %v602_v5 = vadd.f32 %v2326_v61, %v601_v19  ;;  %v652_v57 = vand.u32 2147483647, %v2826_v12  ;;  %v584_v14 = vmul.f32 %v2901_v45, %v2858_v16 }
  0xca   : > { %870 = vperm.xlu2 %2218, %v731_v23   ;;  %v646_v35 = vmul.f32 %v2875_v34, %v645_v18  ;;  %vm588_vm11 = vweird.f32 %v2858_v16  ;;  %vm589_vm12 = vweird.f32 %v2901_v45  ;;  %v592_v36 = vand.u32 2147483647, %v2858_v16 }
  0xcb   : > { %v606_v25 = vsel %vm2998_vm6, %v2326_v61, %v602_v5  ;;  %v585_v15 = vsub.f32 1.0, %v584_v14  ;;  %v594_v12 = vand.u32 2147483648, %v2858_v16  ;;  %v655_v52 = vor.u32 1.1754944e-38, %v654_v59  ;;  %vm590_vm14 = vmor %vm588_vm11, %vm589_vm12 }
  0xcc   : > { %v647_v42 = vadd.f32 %v2875_v34, %v646_v35  ;;  %v611_v43 = vsel %vm608_vm9, %v610_v62, %v606_v25  ;;  %v629_v61 = vmul.f32 %v2916_v6, %v2868_v24  ;;  %vm653_vm13 = vcmp.eq.f32.partialorder %v652_v57, 8.507059e+37 }
  0xcd   : > { %v586_v56 = vmul.f32 %v2901_v45, %v585_v15  ;;  %v595_v28 = vor.u32 1.1754944e-38, %v594_v12  ;;  %vm593_vm15 = vcmp.eq.f32.partialorder %v592_v36, 8.507059e+37  ;;  %vm633_vm1 = vweird.f32 %v2868_v24 }
  0xce   : > { %v651_v44 = vsel %vm3013_vm10, %v2875_v34, %v647_v42  ;;  %v630_v49 = vsub.f32 1.0, %v629_v61  ;;  %vm634_vm2 = vweird.f32 %v2916_v6  ;;  %v639_v37 = vand.u32 2147483648, %v2868_v24 }
  0xcf   : > { %v587_v41 = vadd.f32 %v2901_v45, %v586_v56  ;;  %v656_v16 = vsel %vm653_vm13, %v655_v52, %v651_v44  ;;  %v637_v48 = vand.u32 2147483647, %v2868_v24  ;;  %vm635_vm3 = vmor %vm633_vm1, %vm634_vm2 }
  0xd0   : > { %830 = vperm.xlu0 %2219, %v611_v43   ;;  %v631_v47 = vmul.f32 %v2916_v6, %v630_v49  ;;  %v640_v27 = vor.u32 1.1754944e-38, %v639_v37  ;;  %v3137_v37 = vld [vmem:[%s3125_s18 + $0x10] sm:$0xff] }
  0xd1   : > { %v591_v34 = vsel %vm590_vm14, %v2901_v45, %v587_v41  ;;  %vm638_vm4 = vcmp.eq.f32.partialorder %v637_v48, 8.507059e+37  ;;  %v1094_v48 = vmul.f32 %v2543_v2, %v3137_v37 }
  0xd2   : > { %845 = vperm.xlu2 %2218, %v656_v16   ;;  %v596_v26 = vsel %vm593_vm15, %v595_v28, %v591_v34  ;;  %v632_v51 = vadd.f32 %v2916_v6, %v631_v47 }
  0xd3   : > { %825 = vperm.xlu1 %2217, %v596_v26  }
  0xd4   : > { %v636_v58 = vsel %vm635_vm3, %v2916_v6, %v632_v51  ;;  %v3145_v51 = vld [vmem:[%s3125_s18 + $0x28] sm:$0xff] }
  0xd5   : > { %v641_v11 = vsel %vm638_vm4, %v640_v27, %v636_v58  ;;  %v1106_v27 = vsel %vm450_vm0, %v1094_v48, 0.0  ;;  %v3149_v58 = vld [vmem:[%s3125_s18 + $0x20] sm:$0xff] }
  0xda   : > { %840 = vperm.xlu2 %2218, %v641_v11   ;;  %v1097_v11 = vmul.f32 %v2543_v2, %v3145_v51 }
 0x106   : > { %v901_v60 = vpop.permute.xlu2 %900 }
 0x107   : > { %v3038_v17 = vmul.f32 %v901_v60, %v2564_v8  ;;  %v1096_v60 = vmul.f32 %v2543_v2, %v3149_v58 }
 0x109   : > { %v934_v6 = vsub.f32 %v2564_v8, %v3038_v17 }
 0x110   : > { %v891_v50 = vpop.permute.xlu2 %890 }
 0x111   : > { %v3041_v45 = vmul.f32 %v891_v50, %v2569_v9 }
 0x113   : > { %v932_v32 = vsub.f32 %v2569_v9, %v3041_v45 }
 0x115   : > { %v896_v24 = vpop.permute.xlu1 %895 }
 0x116   : > { %v3044_v63 = vmul.f32 %v896_v24, %v2538_v1  ;;  %v886_v0 = vpop.permute.xlu0 %885 }
 0x117   : > { %v3047_v7 = vmul.f32 %v886_v0, %v2548_v3  ;;  %v1115_v0 = vsel %vm450_vm0, %v1097_v11, 0.0 }
 0x118   : > { %v933_v10 = vsub.f32 %v2538_v1, %v3044_v63 }
 0x119   : > { %v931_v53 = vsub.f32 %v2548_v3, %v3047_v7 }
 0x11a   : > { %v2220_v19 = vpack.i.bf16 %v934_v6, %v933_v10  ;;  %v1112_v6 = vsel %vm450_vm0, %v1096_v60, 0.0 }
 0x11b   : > { %v881_v54 = vpop.permute.xlu2 %880  ;;  %v2225_v55 = vpack.i.bf16 %v932_v32, %v931_v53  ;;  %v3164_v53 = vld [vmem:[%s3125_s18] sm:$0xff] }
 0x11c   : > { %v3058_v18 = vmul.f32 %v881_v54, %v2577_v13  ;;  %2221 = vrot.lane.b32.xlu2 %v2220_v19, %s2466_s11  ;;  %v1092_v19 = vmul.f32 %v2543_v2, %v3164_v53 }
 0x11d   : > { %2226 = vrot.lane.b32.xlu1 %v2225_v55, %s2466_s11  ;;  %v876_v8 = vpop.permute.xlu1 %875 }
 0x11e   : > { %v3063_v1 = vmul.f32 %v876_v8, %v2553_v4  ;;  %v930_v9 = vsub.f32 %v2577_v13, %v3058_v18 }
 0x120   : > { %v929_v3 = vsub.f32 %v2553_v4, %v3063_v1 }
 0x122   : > { %v2230_v23 = vpack.i.bf16 %v930_v9, %v929_v3  ;;  %v1100_v9 = vsel %vm450_vm0, %v1092_v19, 0.0 }
 0x124   : > { %v871_v5 = vpop.permute.xlu2 %870  ;;  %2231 = vrot.lane.b32.xlu0 %v2230_v23, %s2466_s11 }
 0x125   : > { %v3071_v62 = vmul.f32 %v871_v5, %v2596_v21  ;;  %v866_v59 = vpop.permute.xlu1 %865 }
 0x126   : > { %v3074_v35 = vmul.f32 %v866_v59, %v2591_v20 }
 0x127   : > { %v928_v57 = vsub.f32 %v2596_v21, %v3071_v62 }
 0x128   : > { %v927_v13 = vsub.f32 %v2591_v20, %v3074_v35 }
 0x12a   : > { %v2235_v14 = vpack.i.bf16 %v928_v57, %v927_v13 }
 0x12c   : > { %v846_v25 = vpop.permute.xlu2 %845  ;;  %2236 = vrot.lane.b32.xlu2 %v2235_v14, %s2466_s11 }
 0x12d   : > { %v856_v4 = vpop.permute.xlu1 %855  ;;  %v3092_v20 = vmul.f32 %v846_v25, %v2620_v30 }
 0x12e   : > { %v3082_v33 = vmul.f32 %v856_v4, %v2601_v22 }
 0x12f   : > { %v923_v44 = vsub.f32 %v2620_v30, %v3092_v20  ;;  %v3128_v30 = vld [vmem:[%s3125_s18 + $0x18] sm:$0xff] }
 0x130   : > { %v861_v42 = vpop.permute.xlu0 %860  ;;  %v925_v15 = vsub.f32 %v2601_v22, %v3082_v33 }
 0x131   : > { %v3087_v36 = vmul.f32 %v861_v42, %v2615_v29 }
 0x133   : > { %v926_v21 = vsub.f32 %v2615_v29, %v3087_v36 }
 0x134   : > { %v841_v43 = vpop.permute.xlu2 %840 }
 0x135   : > { %v2240_v12 = vpack.i.bf16 %v926_v21, %v925_v15  ;;  %v3099_v22 = vmul.f32 %v841_v43, %v2644_v39 }
 0x136   : > { %v851_v52 = vpop.permute.xlu1 %850 }
 0x137   : > { %2241 = vrot.lane.b32.xlu1 %v2240_v12, %s2466_s11  ;;  %v3096_v61 = vmul.f32 %v851_v52, %v2625_v31  ;;  %v922_v41 = vsub.f32 %v2644_v39, %v3099_v22  ;;  %v3134_v39 = vld [vmem:[%s3125_s18 + $0x8] sm:$0xff] }
 0x138   : > { %v1093_v34 = vmul.f32 %v2543_v2, %v3134_v39 }
 0x139   : > { %v924_v29 = vsub.f32 %v2625_v31, %v3096_v61  ;;  %v1095_v31 = vmul.f32 %v2543_v2, %v3128_v30 }
 0x13a   : > { %v836_v56 = vpop.permute.xlu0 %835  ;;  %v1103_v26 = vsel %vm450_vm0, %v1093_v34, 0.0 }
 0x13b   : > { %v3106_v28 = vmul.f32 %v836_v56, %v2639_v38  ;;  %v2245_v49 = vpack.i.bf16 %v924_v29, %v923_v44 }
 0x13d   : > { %v921_v16 = vsub.f32 %v2639_v38, %v3106_v28  ;;  %2246 = vrot.lane.b32.xlu0 %v2245_v49, %s2466_s11  ;;  %v1109_v38 = vsel %vm450_vm0, %v1095_v31, 0.0 }
 0x13f   : > { %v2250_v47 = vpack.i.bf16 %v922_v41, %v921_v16 }
 0x141   : > { %2251 = vrot.lane.b32.xlu2 %v2250_v47, %s2466_s11 }
 0x142   : > { %v831_v50 = vpop.permute.xlu0 %830 }
 0x143   : > { %v3158_v10 = vmul.f32 %v831_v50, %v2662_v46 }
 0x145   : > { %v826_v24 = vpop.permute.xlu1 %825  ;;  %v920_v54 = vsub.f32 %v2662_v46, %v3158_v10  ;;  %v3179_v46 = vld [vmem:[%s3125_s18 + $0x38] sm:$0xff] }
 0x146   : > { %v3161_v32 = vmul.f32 %v826_v24, %v2649_v40 }
 0x148   : > { %v919_v55 = vsub.f32 %v2649_v40, %v3161_v32  ;;  %v2455_v40 = vld [vmem:[%s3763_s3] ss:$0 sm:$0xff] }
 0x149   : > { %v1099_v13 = vmul.f32 %v2455_v40, %v3179_v46 }
 0x14a   : > { %v2255_v5 = vpack.i.bf16 %v920_v54, %v919_v55 }
 0x14b   : > { %v1121_v14 = vsel %vm450_vm0, %v1099_v13, 0.0 }
 0x161   : > { %1110 = vadd.xlane.f32.xlu1 %v1109_v38 }
 0x167   : > { %1104 = vadd.xlane.f32.xlu0 %v1103_v26 }
 0x16a   : > { %1107 = vadd.xlane.f32.xlu2 %v1106_v27 }
 0x16f   : > { %1116 = vadd.xlane.f32.xlu0 %v1115_v0 }
 0x172   : > { %1113 = vadd.xlane.f32.xlu2 %v1112_v6 }
 0x176   : > { %v2222_v8 = vpop.permute.xlu2 %2221 }
 0x177   : > { %v2224_v3 = vunpack.i.h.bf16 %v2222_v8  ;;  %v2223_v23 = vunpack.i.l.bf16 %v2222_v8  ;;  %1122 = vadd.xlane.f32.xlu0 %v1121_v14  ;;  %v3215_v8 = vld [vmem:[#allocation2] ss:$0 sm:$0xff] }
 0x179   : > { %v1013_v59 = vsel %vm450_vm0, %v3044_v63, %v2223_v23  ;;  %v1014_v57 = vsel %vm450_vm0, %v3038_v17, %v2224_v3 }
 0x17a   : > { %1101 = vadd.xlane.f32.xlu2 %v1100_v9  ;;  %2256 = vrot.lane.b32.xlu1 %v2255_v5, %s2466_s11  ;;  %v1022_v2 = vpack.c.bf16 %v1014_v57, %v1013_v59 }
 0x17c   : > { %1055 = vmatpush.bf16.msra.mxu0 %v1022_v2  ;;  %2189 = vmatpush.bf16.msra.mxu3 %v1022_v2 }
 0x186   : > { %v2237_v21 = vpop.permute.xlu2 %2236 }
 0x187   : > { %v2239_v43 = vunpack.i.h.bf16 %v2237_v21  ;;  %v2238_v52 = vunpack.i.l.bf16 %v2237_v21 }
 0x189   : > { %v1008_v16 = vsel %vm450_vm0, %v3071_v62, %v2239_v43 }
 0x18f   : > { %v2227_v63 = vpop.permute.xlu1 %2226 }
 0x190   : > { %v2229_v25 = vunpack.i.h.bf16 %v2227_v63  ;;  %v2228_v17 = vunpack.i.l.bf16 %v2227_v63 }
 0x192   : > { %v1011_v4 = vsel %vm450_vm0, %v3047_v7, %v2228_v17  ;;  %v1012_v42 = vsel %vm450_vm0, %v3041_v45, %v2229_v25  ;;  %v3195_v7 = vld [vmem:[%s3125_s18 + $0x30] sm:$0xff]  ;;  %v1007_v45 = vsel %vm450_vm0, %v3074_v35, %v2238_v52 }
 0x193   : > { %v1021_v15 = vpack.c.bf16 %v1012_v42, %v1011_v4  ;;  %v1098_v47 = vmul.f32 %v2455_v40, %v3195_v7  ;;  %v1019_v31 = vpack.c.bf16 %v1008_v16, %v1007_v45 }
 0x195   : > { %1056 = vmatpush.bf16.msra.mxu0 %v1021_v15  ;;  %2190 = vmatpush.bf16.msra.mxu3 %v1021_v15 }
 0x196   : > { %v2232_v12 = vpop.permute.xlu0 %2231 }
 0x197   : > { %v2234_v44 = vunpack.i.h.bf16 %v2232_v12  ;;  %v2233_v29 = vunpack.i.l.bf16 %v2232_v12 }
 0x199   : > { %v1009_v56 = vsel %vm450_vm0, %v3063_v1, %v2233_v29  ;;  %v1010_v49 = vsel %vm450_vm0, %v3058_v18, %v2234_v44  ;;  %v1118_v1 = vsel %vm450_vm0, %v1098_v47, 0.0 }
 0x19a   : > { %v1020_v41 = vpack.c.bf16 %v1010_v49, %v1009_v56 }
 0x19b   : > { %v2252_v26 = vpop.permute.xlu2 %2251 }
 0x19c   : > { %1057 = vmatpush.bf16.msra.mxu0 %v1020_v41  ;;  %2191 = vmatpush.bf16.msra.mxu3 %v1020_v41  ;;  %v2254_v11 = vunpack.i.h.bf16 %v2252_v26  ;;  %v2253_v60 = vunpack.i.l.bf16 %v2252_v26 }
 0x1a0   : > { %1058 = vmatpush.bf16.msra.mxu0 %v1019_v31  ;;  %2192 = vmatpush.bf16.msra.mxu3 %v1019_v31 }
 0x1a4   : > { %1119 = vadd.xlane.f32.xlu1 %v1118_v1 }
 0x1a9   : > { %v2242_v18 = vpop.permute.xlu1 %2241 }
 0x1aa   : > { %v2244_v38 = vunpack.i.h.bf16 %v2242_v18  ;;  %v2243_v34 = vunpack.i.l.bf16 %v2242_v18 }
 0x1ac   : > { %v1005_v48 = vsel %vm450_vm0, %v3082_v33, %v2243_v34  ;;  %v1006_v35 = vsel %vm450_vm0, %v3087_v36, %v2244_v38  ;;  %v1001_v33 = vsel %vm450_vm0, %v3106_v28, %v2253_v60  ;;  %v1002_v36 = vsel %vm450_vm0, %v3099_v22, %v2254_v11 }
 0x1ad   : > { %v1018_v62 = vpack.c.bf16 %v1006_v35, %v1005_v48  ;;  %v1016_v54 = vpack.c.bf16 %v1002_v36, %v1001_v33 }
 0x1af   : > { %1059 = vmatpush.bf16.msra.mxu0 %v1018_v62  ;;  %2193 = vmatpush.bf16.msra.mxu3 %v1018_v62  ;;  %v2247_v27 = vpop.permute.xlu0 %2246 }
 0x1b0   : > { %v2249_v50 = vunpack.i.h.bf16 %v2247_v27  ;;  %v2248_v24 = vunpack.i.l.bf16 %v2247_v27 }
 0x1b2   : > { %v1003_v0 = vsel %vm450_vm0, %v3092_v20, %v2248_v24  ;;  %v1004_v6 = vsel %vm450_vm0, %v3096_v61, %v2249_v50 }
 0x1b3   : > { %v1017_v19 = vpack.c.bf16 %v1004_v6, %v1003_v0 }
 0x1b5   : > { %1060 = vmatpush.bf16.msra.mxu0 %v1017_v19  ;;  %2194 = vmatpush.bf16.msra.mxu3 %v1017_v19 }
 0x1b9   : > { %1061 = vmatpush.bf16.msra.mxu0 %v1016_v54  ;;  %2195 = vmatpush.bf16.msra.mxu3 %v1016_v54 }
 0x1d4   : > { %v1111_v55 = vpop.xlane.xlu1 %1110 }
 0x1d5   : > { %v1127_v20 = vadd.f32 %v3215_v8, %v1111_v55 }
 0x1d7   : > { %v2162_v9 = vmul.f32 -1.442695, %v1127_v20 }
 0x1d9   : > { %2327 = vpow2.f32 %v2162_v9 }
 0x1da   : > { %v1105_v61 = vpop.xlane.xlu0 %1104 }
 0x1db   : > { %v1125_v3 = vadd.f32 %v3215_v8, %v1105_v61 }
 0x1dd   : > { %v1108_v23 = vpop.xlane.xlu2 %1107  ;;  %v2160_v5 = vmul.f32 -1.442695, %v1125_v3 }
 0x1de   : > { %v1126_v28 = vadd.f32 %v3215_v8, %v1108_v23 }
 0x1df   : > { %v2328_v22 = vpop.eup %2327  ;;  %2329 = vpow2.f32 %v2160_v5 }
 0x1e0   : > { %v1159_v59 = vadd.f32 1.0, %v2328_v22  ;;  %v2161_v57 = vmul.f32 -1.442695, %v1126_v28 }
 0x1e2   : > { %2331 = vrcp.f32 %v1159_v59  ;;  %v1117_v2 = vpop.xlane.xlu0 %1116  ;;  %vm1214_vm5 = vweird.f32 %v1159_v59  ;;  %v1218_v44 = vand.u32 2147483647, %v1159_v59  ;;  %v1220_v29 = vand.u32 2147483648, %v1159_v59 }
 0x1e3   : > { %2333 = vpow2.f32 %v2161_v57  ;;  %v1129_v40 = vadd.f32 %v3215_v8, %v1117_v2 }
 0x1e4   : > { %v1221_v26 = vor.u32 1.1754944e-38, %v1220_v29  ;;  %vm1219_vm8 = vcmp.eq.f32.partialorder %v1218_v44, 8.507059e+37 }
 0x1e5   : > { %v1114_v13 = vpop.xlane.xlu2 %1113  ;;  %v2330_v14 = vpop.eup %2329  ;;  %v2164_v25 = vmul.f32 -1.442695, %v1129_v40 }
 0x1e6   : > { %v1128_v63 = vadd.f32 %v3215_v8, %v1114_v13  ;;  %v3222_v17 = vadd.f32 1.0, %v2330_v14 }
 0x1e7   : > { %2335 = vpow2.f32 %v2164_v25 }
 0x1e8   : > { %v2332_v4 = vpop.eup %2331  ;;  %v2163_v42 = vmul.f32 -1.442695, %v1128_v63  ;;  %2337 = vrcp.f32 %v3222_v17  ;;  %v1190_v0 = vand.u32 2147483648, %v3222_v17  ;;  %v1188_v19 = vand.u32 2147483647, %v3222_v17 }
 0x1e9   : > { %v2334_v15 = vpop.eup %2333  ;;  %v1210_v21 = vmul.f32 %v2332_v4, %v1159_v59  ;;  %vm1215_vm6 = vweird.f32 %v2332_v4  ;;  %vm1184_vm10 = vweird.f32 %v3222_v17 }
 0x1ea   : > { %v3225_v12 = vadd.f32 1.0, %v2334_v15  ;;  %2339 = vpow2.f32 %v2163_v42  ;;  %vm1216_vm7 = vmor %vm1214_vm5, %vm1215_vm6  ;;  %v1191_v61 = vor.u32 1.1754944e-38, %v1190_v0  ;;  %vm1189_vm13 = vcmp.eq.f32.partialorder %v1188_v19, 8.507059e+37  ;;  %v2185_v0 = vld [vmem:[%s3262_s22] sm:$0xff] }
 0x1eb   : > { %v1211_v43 = vsub.f32 1.0, %v1210_v21 }
 0x1ec   : > { %2341 = vrcp.f32 %v3225_v12  ;;  %v2257_v52 = vpop.permute.xlu1 %2256  ;;  %v1203_v36 = vand.u32 2147483647, %v3225_v12  ;;  %v1205_v54 = vand.u32 2147483648, %v3225_v12  ;;  %vm1199_vm14 = vweird.f32 %v3225_v12 }
 0x1ed   : > { %v1102_v56 = vpop.xlane.xlu2 %1101  ;;  %v2259_v49 = vunpack.i.h.bf16 %v2257_v52  ;;  %v2258_v41 = vunpack.i.l.bf16 %v2257_v52  ;;  %v1212_v45 = vmul.f32 %v2332_v4, %v1211_v43  ;;  %v2336_v16 = vpop.eup %2335 }
 0x1ee   : > { %v1124_v47 = vadd.f32 %v3215_v8, %v1102_v56  ;;  %v2338_v31 = vpop.eup %2337  ;;  %v3229_v1 = vadd.f32 1.0, %v2336_v16  ;;  %vm1204_vm1 = vcmp.eq.f32.partialorder %v1203_v36, 8.507059e+37  ;;  %v1206_v2 = vor.u32 1.1754944e-38, %v1205_v54 }
 0x1ef   : > { %v999_v18 = vsel %vm450_vm0, %v3161_v32, %v2258_v41  ;;  %v1000_v38 = vsel %vm450_vm0, %v3158_v10, %v2259_v49  ;;  %v1213_v34 = vadd.f32 %v2332_v4, %v1212_v45  ;;  %v1180_v27 = vmul.f32 %v2338_v31, %v3222_v17 }
 0x1f0   : > { %v2340_v48 = vpop.eup %2339  ;;  %v2159_v35 = vmul.f32 -1.442695, %v1124_v47  ;;  %v1015_v62 = vpack.c.bf16 %v1000_v38, %v999_v18  ;;  %2343 = vrcp.f32 %v3229_v1  ;;  %vm1185_vm9 = vweird.f32 %v2338_v31 }
 0x1f1   : > { %v3237_v11 = vadd.f32 1.0, %v2340_v48  ;;  %v1217_v60 = vsel %vm1216_vm7, %v2332_v4, %v1213_v34  ;;  %v1181_v32 = vsub.f32 1.0, %v1180_v27  ;;  %vm1186_vm12 = vmor %vm1184_vm10, %vm1185_vm9  ;;  %v1248_v63 = vand.u32 2147483647, %v3229_v1  ;;  %v1123_v34 = vpop.xlane.xlu0 %1122 }
 0x1f2   : > { %v2342_v50 = vpop.eup %2341  ;;  %2345 = vpow2.f32 %v2159_v35  ;;  %1062 = vmatpush.bf16.msra.mxu0 %v1015_v62  ;;  %2196 = vmatpush.bf16.msra.mxu3 %v1015_v62  ;;  %v1222_v10 = vsel %vm1219_vm8, %v1221_v26, %v1217_v60  ;;  %v1250_v25 = vand.u32 2147483648, %v3229_v1  ;;  %vm1244_vm3 = vweird.f32 %v3229_v1 }
 0x1f3   : > { %2347 = vrcp.f32 %v3237_v11  ;;  %1301 = vperm.xlu0 %2219, %v1222_v10   ;;  %v1195_v24 = vmul.f32 %v2342_v50, %v3225_v12  ;;  %v1182_v6 = vmul.f32 %v2338_v31, %v1181_v32  ;;  %vm1200_vm11 = vweird.f32 %v2342_v50 }
 0x1f4   : > { %vm1201_vm15 = vmor %vm1199_vm14, %vm1200_vm11  ;;  %v1235_v15 = vand.u32 2147483648, %v3237_v11  ;;  %v1233_v12 = vand.u32 2147483647, %v3237_v11  ;;  %v1251_v52 = vor.u32 1.1754944e-38, %v1250_v25  ;;  %vm1229_vm6 = vweird.f32 %v3237_v11  ;;  %v2186_v25 = vld [vmem:[%s3262_s22 + $0x8] sm:$0xff] }
 0x1f5   : > { %v1196_v33 = vsub.f32 1.0, %v1195_v24  ;;  %v1183_v55 = vadd.f32 %v2338_v31, %v1182_v6  ;;  %vm1249_vm7 = vcmp.eq.f32.partialorder %v1248_v63, 8.507059e+37  ;;  %v1131_v26 = vadd.f32 %v3215_v8, %v1123_v34  ;;  %1063 = vmatmul.bf16.vlgmr.msra.gmra.mxu0 %v2185_v0  ;;  %1068 = vmatmul.bf16.vlgmr.msra.gmra.mxu3 %v2186_v25  ;;  %v1425_v0 = vld [vmem:[%s3766_s6 + $0x28] sm:$0xff] }
 0x1f6   : > { %v2344_v20 = vpop.eup %2343  ;;  %v1236_v49 = vor.u32 1.1754944e-38, %v1235_v15  ;;  %vm1234_vm9 = vcmp.eq.f32.partialorder %v1233_v12, 8.507059e+37 }
 0x1f7   : > { %v1197_v9 = vmul.f32 %v2342_v50, %v1196_v33  ;;  %v1187_v23 = vsel %vm1186_vm12, %v2338_v31, %v1183_v55  ;;  %v1240_v28 = vmul.f32 %v2344_v20, %v3229_v1  ;;  %vm1245_vm2 = vweird.f32 %v2344_v20 }
 0x1f8   : > { %v2346_v3 = vpop.eup %2345  ;;  %v1192_v57 = vsel %vm1189_vm13, %v1191_v61, %v1187_v23  ;;  %vm1246_vm5 = vmor %vm1244_vm3, %vm1245_vm2 }
 0x1f9   : > { %v2348_v5 = vpop.eup %2347  ;;  %v1156_v22 = vadd.f32 1.0, %v2346_v3  ;;  %v1198_v59 = vadd.f32 %v2342_v50, %v1197_v9  ;;  %1291 = vperm.xlu1 %2217, %v1192_v57   ;;  %v1241_v13 = vsub.f32 1.0, %v1240_v28 }
 0x1fa   : > { %v1225_v40 = vmul.f32 %v2348_v5, %v3237_v11  ;;  %vm1230_vm4 = vweird.f32 %v2348_v5  ;;  %v2166_v11 = vmul.f32 -1.442695, %v1131_v26 }
 0x1fb   : > { %2349 = vrcp.f32 %v1156_v22  ;;  %v1202_v14 = vsel %vm1201_vm15, %v2342_v50, %v1198_v59  ;;  %v1242_v42 = vmul.f32 %v2344_v20, %v1241_v13  ;;  %vm1231_vm8 = vmor %vm1229_vm6, %vm1230_vm4  ;;  %v1175_v1 = vand.u32 2147483648, %v1156_v22 }
 0x1fc   : > { %v1207_v17 = vsel %vm1204_vm1, %v1206_v2, %v1202_v14  ;;  %v1226_v4 = vsub.f32 1.0, %v1225_v40  ;;  %v1173_v38 = vand.u32 2147483647, %v1156_v22  ;;  %vm1169_vm11 = vweird.f32 %v1156_v22 }
 0x1fd   : > { %1296 = vperm.xlu2 %2218, %v1207_v17   ;;  %v1243_v43 = vadd.f32 %v2344_v20, %v1242_v42  ;;  %v1176_v35 = vor.u32 1.1754944e-38, %v1175_v1  ;;  %2351 = vpow2.f32 %v2166_v11  ;;  %v2187_v17 = vld [vmem:[%s3262_s22 + $0x10] sm:$0xff] }
 0x1fe   : > { %v1227_v21 = vmul.f32 %v2348_v5, %v1226_v4  ;;  %vm1174_vm13 = vcmp.eq.f32.partialorder %v1173_v38, 8.507059e+37 }
 0x1ff   : > { %v1247_v29 = vsel %vm1246_vm5, %v2344_v20, %v1243_v43 }
 0x200   : > { %v1228_v44 = vadd.f32 %v2348_v5, %v1227_v21  ;;  %v1252_v41 = vsel %vm1249_vm7, %v1251_v52, %v1247_v29  ;;  %v2188_v52 = vld [vmem:[%s3262_s22 + $0x18] sm:$0xff]  ;;  %vm1428_vm7 = vcmask 523264  }
 0x201   : > { %v2350_v56 = vpop.eup %2349  ;;  %1311 = vperm.xlu0 %2219, %v1252_v41  }
 0x202   : > { %v1232_v45 = vsel %vm1231_vm8, %v2348_v5, %v1228_v44  ;;  %v1165_v16 = vmul.f32 %v2350_v56, %v1156_v22  ;;  %vm1170_vm10 = vweird.f32 %v2350_v56  ;;  %vm1676_vm8 = vcmask 64544  }
 0x203   : > { %v1237_v47 = vsel %vm1234_vm9, %v1236_v49, %v1232_v45  ;;  %vm1171_vm12 = vmor %vm1169_vm11, %vm1170_vm10  ;;  %v2352_v50 = vpop.eup %2351  ;;  %vm1571_vm9 = vcmask 31744   ;;  %vm1958_vm10 = vcmask 64512   ;;  %vm1967_vm11 = vcmask 97280  }
 0x204   : > { %1306 = vperm.xlu1 %2217, %v1237_v47   ;;  %v1166_v31 = vsub.f32 1.0, %v1165_v16  ;;  %v1163_v24 = vadd.f32 1.0, %v2352_v50  ;;  %v1417_v50 = vld [vmem:[%s3765_s5 + $0x28] sm:$0xff] }
 0x205   : > { %1073 = vmatmul.bf16.gmra.mxu3 %v2187_v17 }
 0x206   : > { %v1167_v18 = vmul.f32 %v2350_v56, %v1166_v31  ;;  %vm1274_vm3 = vweird.f32 %v1163_v24  ;;  %v1280_v22 = vand.u32 2147483648, %v1163_v24  ;;  %v1278_v2 = vand.u32 2147483647, %v1163_v24 }
 0x208   : > { %v1168_v48 = vadd.f32 %v2350_v56, %v1167_v18  ;;  %v1281_v13 = vor.u32 1.1754944e-38, %v1280_v22  ;;  %vm1279_vm6 = vcmp.eq.f32.partialorder %v1278_v2, 8.507059e+37  ;;  %v1421_v2 = vld [vmem:[%s3766_s6 + $0x8] sm:$0xff] }
 0x20a   : > { %v1172_v62 = vsel %vm1171_vm12, %v2350_v56, %v1168_v48 }
 0x20b   : > { %v1177_v27 = vsel %vm1174_vm13, %v1176_v35, %v1172_v62 }
 0x20c   : > { %1286 = vperm.xlu0 %2219, %v1177_v27   ;;  %v1418_v27 = vld [vmem:[%s3765_s5 + $0x30] sm:$0xff] }
 0x215   : > { %1078 = vmatmul.bf16.gmra.mxu3 %v2188_v52 }
 0x217   : > { %v1120_v60 = vpop.xlane.xlu1 %1119 }
 0x218   : > { %v1130_v10 = vadd.f32 %v3215_v8, %v1120_v60 }
 0x21a   : > { %v2165_v32 = vmul.f32 -1.442695, %v1130_v10  ;;  %v1427_v10 = vld [vmem:[%s3766_s6 + $0x38] sm:$0xff] }
 0x21b   : > { %1461 = vmatpush.msrb.mxu0 %v1427_v10  ;;  %2197 = vmatpush.msra.mxu1 %v1427_v10 }
 0x21c   : > { %2353 = vpow2.f32 %v2165_v32  ;;  %v1426_v32 = vld [vmem:[%s3766_s6 + $0x30] sm:$0xff] }
 0x21d   : > { %2355 = vrcp.f32 %v1163_v24  ;;  %1462 = vmatpush.msrb.mxu0 %v1426_v32  ;;  %2198 = vmatpush.msra.mxu1 %v1426_v32 }
 0x21f   : > { %1463 = vmatpush.msrb.mxu0 %v1425_v0  ;;  %2199 = vmatpush.msra.mxu1 %v1425_v0 }
 0x222   : > { %v2354_v6 = vpop.eup %2353 }
 0x223   : > { %v1162_v19 = vadd.f32 1.0, %v2354_v6  ;;  %v2356_v33 = vpop.eup %2355  ;;  %v1415_v6 = vld [vmem:[%s3765_s5 + $0x18] sm:$0xff] }
 0x224   : > { %v1270_v36 = vmul.f32 %v2356_v33, %v1163_v24  ;;  %vm1275_vm4 = vweird.f32 %v2356_v33  ;;  %v1416_v24 = vld [vmem:[%s3765_s5 + $0x20] sm:$0xff] }
 0x225   : > { %2357 = vrcp.f32 %v1162_v19  ;;  %v1265_v20 = vand.u32 2147483648, %v1162_v19  ;;  %vm1259_vm14 = vweird.f32 %v1162_v19  ;;  %v1263_v61 = vand.u32 2147483647, %v1162_v19  ;;  %vm1276_vm5 = vmor %vm1274_vm3, %vm1275_vm4 }
 0x226   : > { %v1271_v55 = vsub.f32 1.0, %v1270_v36  ;;  %v1413_v36 = vld [vmem:[%s3765_s5 + $0x8] sm:$0xff] }
 0x227   : > { %v1266_v28 = vor.u32 1.1754944e-38, %v1265_v20  ;;  %vm1264_vm2 = vcmp.eq.f32.partialorder %v1263_v61, 8.507059e+37 }
 0x228   : > { %v1272_v23 = vmul.f32 %v2356_v33, %v1271_v55 }
 0x22a   : > { %v1273_v57 = vadd.f32 %v2356_v33, %v1272_v23 }
 0x22b   : > { %v2358_v54 = vpop.eup %2357 }
 0x22c   : > { %v1255_v8 = vmul.f32 %v2358_v54, %v1162_v19  ;;  %vm1260_vm15 = vweird.f32 %v2358_v54  ;;  %v1277_v14 = vsel %vm1276_vm5, %v2356_v33, %v1273_v57  ;;  %v1424_v19 = vld [vmem:[%s3766_s6 + $0x20] sm:$0xff]  ;;  %v1414_v33 = vld [vmem:[%s3765_s5 + $0x10] sm:$0xff] }
 0x22d   : > { %vm1261_vm1 = vmor %vm1259_vm14, %vm1260_vm15  ;;  %v1282_v63 = vsel %vm1279_vm6, %v1281_v13, %v1277_v14  ;;  %1464 = vmatpush.msrb.mxu0 %v1424_v19  ;;  %2200 = vmatpush.msra.mxu1 %v1424_v19 }
 0x22e   : > { %v1256_v9 = vsub.f32 1.0, %v1255_v8 }
 0x230   : > { %v1257_v3 = vmul.f32 %v2358_v54, %v1256_v9 }
 0x232   : > { %v1258_v5 = vadd.f32 %v2358_v54, %v1257_v3 }
 0x234   : > { %v1262_v59 = vsel %vm1261_vm1, %v2358_v54, %v1258_v5  ;;  %v1412_v54 = vld [vmem:[%s3765_s5] sm:$0xff] }
 0x235   : > { %v1267_v40 = vsel %vm1264_vm2, %v1266_v28, %v1262_v59  ;;  %v1423_v59 = vld [vmem:[%s3766_s6 + $0x18] sm:$0xff] }
 0x236   : > { %1316 = vperm.xlu2 %2218, %v1267_v40   ;;  %1465 = vmatpush.msrb.mxu0 %v1423_v59  ;;  %v1420_v40 = vld [vmem:[%s3766_s6] sm:$0xff] }
 0x237   : > { %2201 = vmatpush.msra.mxu1 %v1423_v59 }
 0x23e   : > { %1321 = vperm.xlu2 %2218, %v1282_v63  }
 0x257   : > { %v1297_v4 = vpop.permute.xlu2 %1296 }
 0x258   : > { %v3268_v42 = vmul.f32 %v1297_v4, %v3137_v37 }
 0x25a   : > { %v1342_v15 = vmax.f32 %v3268_v42, 0.0  ;;  %v1334_v21 = vsub.f32 %v3137_v37, %v3268_v42 }
 0x25c   : > { %1350 = vst.msk [vmem:[%s3274_s25 + $0x10] sm:$0xff] %vm450_vm0, %v1342_v15  ;;  %v1358_v12 = vmax.f32 %v1334_v21, 0.0 }
 0x25e   : > { %1366 = vst.msk [vmem:[%s3283_s28 + $0x10] sm:$0xff] %vm450_vm0, %v1358_v12 }
 0x265   : > { %v1302_v43 = vpop.permute.xlu0 %1301 }
 0x266   : > { %v3291_v44 = vmul.f32 %v1302_v43, %v3128_v30 }
 0x268   : > { %v1343_v37 = vmax.f32 %v3291_v44, 0.0  ;;  %v1335_v29 = vsub.f32 %v3128_v30, %v3291_v44 }
 0x26a   : > { %1351 = vst.msk [vmem:[%s3274_s25 + $0x18] sm:$0xff] %vm450_vm0, %v1343_v37  ;;  %v1359_v56 = vmax.f32 %v1335_v29, 0.0  ;;  %1386 = vrot.lane.b32.xlu0 %v1335_v29, %s2466_s11 }
 0x26b   : > { %v1292_v49 = vpop.permute.xlu1 %1291 }
 0x26c   : > { %1367 = vst.msk [vmem:[%s3283_s28 + $0x18] sm:$0xff] %vm450_vm0, %v1359_v56  ;;  %v3302_v41 = vmul.f32 %v1292_v49, %v3134_v39 }
 0x26e   : > { %v1341_v45 = vmax.f32 %v3302_v41, 0.0  ;;  %v1333_v16 = vsub.f32 %v3134_v39, %v3302_v41 }
 0x270   : > { %1349 = vst.msk [vmem:[%s3274_s25 + $0x8] sm:$0xff] %vm450_vm0, %v1341_v45  ;;  %1382 = vrot.lane.b32.xlu1 %v1333_v16, %s2466_s11  ;;  %v1357_v30 = vmax.f32 %v1333_v16, 0.0 }
 0x272   : > { %1365 = vst.msk [vmem:[%s3283_s28 + $0x8] sm:$0xff] %vm450_vm0, %v1357_v30 }
 0x273   : > { %v1312_v47 = vpop.permute.xlu0 %1311 }
 0x274   : > { %v3313_v31 = vmul.f32 %v1312_v47, %v3145_v51 }
 0x276   : > { %v1307_v1 = vpop.permute.xlu1 %1306  ;;  %v1345_v39 = vmax.f32 %v3313_v31, 0.0  ;;  %v1337_v38 = vsub.f32 %v3145_v51, %v3313_v31 }
 0x277   : > { %v3316_v18 = vmul.f32 %v1307_v1, %v3149_v58 }
 0x278   : > { %1353 = vst.msk [vmem:[%s3274_s25 + $0x28] sm:$0xff] %vm450_vm0, %v1345_v39  ;;  %1384 = vrot.lane.b32.xlu1 %v1334_v21, %s2466_s11  ;;  %v1361_v35 = vmax.f32 %v1337_v38, 0.0  ;;  %v1069_v13 = vpop.f32.mrf.mxu3  ;;  %v3446_v39 = vld [vmem:[%s3767_s7] ss:$0 sm:$0xff] }
 0x279   : > { %v1344_v34 = vmax.f32 %v3316_v18, 0.0  ;;  %v1336_v48 = vsub.f32 %v3149_v58, %v3316_v18  ;;  %v1419_v58 = vld [vmem:[%s3765_s5 + $0x38] sm:$0xff] }
 0x27a   : > { %1369 = vst.msk [vmem:[%s3283_s28 + $0x28] sm:$0xff] %vm450_vm0, %v1361_v35  ;;  %1526 = vmatpush.msra.mxu2 %v1419_v58 }
 0x27b   : > { %1352 = vst.msk [vmem:[%s3274_s25 + $0x20] sm:$0xff] %vm450_vm0, %v1344_v34  ;;  %v1360_v62 = vmax.f32 %v1336_v48, 0.0  ;;  %1388 = vrot.lane.b32.xlu2 %v1336_v48, %s2466_s11 }
 0x27c   : > { %1527 = vmatpush.msra.mxu2 %v1418_v27 }
 0x27d   : > { %1368 = vst.msk [vmem:[%s3283_s28 + $0x20] sm:$0xff] %vm450_vm0, %v1360_v62 }
 0x27e   : > { %v1287_v51 = vpop.permute.xlu0 %1286  ;;  %1528 = vmatpush.msra.mxu2 %v1417_v50 }
 0x27f   : > { %v3335_v26 = vmul.f32 %v1287_v51, %v3164_v53 }
 0x280   : > { %1390 = vrot.lane.b32.xlu1 %v1337_v38, %s2466_s11  ;;  %1529 = vmatpush.msra.mxu2 %v1416_v24  ;;  %v1071_v14 = vpop.f32.mrf.mxu3 }
 0x281   : > { %v1340_v11 = vmax.f32 %v3335_v26, 0.0  ;;  %v1332_v60 = vsub.f32 %v3164_v53, %v3335_v26 }
 0x282   : > { %1530 = vmatpush.msra.mxu2 %v1415_v6 }
 0x283   : > { %1348 = vst.msk [vmem:[%s3274_s25] sm:$0xff] %vm450_vm0, %v1340_v11  ;;  %1380 = vrot.lane.b32.xlu2 %v1332_v60, %s2466_s11  ;;  %v1356_v53 = vmax.f32 %v1332_v60, 0.0 }
 0x284   : > { %1531 = vmatpush.msra.mxu2 %v1414_v33 }
 0x285   : > { %1364 = vst.msk [vmem:[%s3283_s28] sm:$0xff] %vm450_vm0, %v1356_v53 }
 0x286   : > { %1532 = vmatpush.msra.mxu2 %v1413_v36 }
 0x288   : > { %1533 = vmatpush.msra.mxu2 %v1412_v54  ;;  %v1074_v25 = vpop.f32.mrf.mxu3 }
 0x290   : > { %v1317_v8 = vpop.permute.xlu2 %1316  ;;  %v1076_v15 = vpop.f32.mrf.mxu3 }
 0x291   : > { %v3383_v55 = vmul.f32 %v1317_v8, %v3195_v7 }
 0x293   : > { %v1346_v20 = vmax.f32 %v3383_v55, 0.0  ;;  %v1338_v9 = vsub.f32 %v3195_v7, %v3383_v55  ;;  %v1064_v7 = vpop.f32.mrf.mxu0 }
 0x294   : > { %2175 = vmatmul.msk.f32.vlgmr.msra.gmra.mxu2 %vm1428_vm7, %v1064_v7 }
 0x295   : > { %1354 = vst.msk [vmem:[%s3274_s25 + $0x30] sm:$0xff] %vm450_vm0, %v1346_v20  ;;  %1392 = vrot.lane.b32.xlu0 %v1338_v9, %s2466_s11  ;;  %v1362_v61 = vmax.f32 %v1338_v9, 0.0 }
 0x297   : > { %1370 = vst.msk [vmem:[%s3283_s28 + $0x30] sm:$0xff] %vm450_vm0, %v1362_v61 }
 0x298   : > { %v1322_v3 = vpop.permute.xlu2 %1321  ;;  %v1079_v43 = vpop.f32.mrf.mxu3 }
 0x299   : > { %v1331_v23 = vmul.f32 %v1322_v3, %v3179_v46 }
 0x29b   : > { %v1347_v28 = vmax.f32 %v1331_v23, 0.0  ;;  %v1339_v5 = vsub.f32 %v3179_v46, %v1331_v23  ;;  %v1066_v57 = vpop.f32.mrf.mxu0  ;;  %v1422_v46 = vld [vmem:[%s3766_s6 + $0x10] sm:$0xff] }
 0x29c   : > { %2176 = vmatmul.msk.f32.gmra.mxu2 %vm1428_vm7, %v1066_v57  ;;  %1466 = vmatpush.msrb.mxu0 %v1422_v46 }
 0x29d   : > { %1355 = vst.msk [vmem:[%s3274_s25 + $0x38] sm:$0xff] %vm450_vm0, %v1347_v28  ;;  %1394 = vrot.lane.b32.xlu1 %v1339_v5, %s2466_s11  ;;  %v1363_v22 = vmax.f32 %v1339_v5, 0.0  ;;  %2202 = vmatpush.msra.mxu1 %v1422_v46 }
 0x29e   : > { %1467 = vmatpush.msrb.mxu0 %v1421_v2 }
 0x29f   : > { %1371 = vst.msk [vmem:[%s3283_s28 + $0x38] sm:$0xff] %vm450_vm0, %v1363_v22  ;;  %2203 = vmatpush.msra.mxu1 %v1421_v2 }
 0x2a0   : > { %1468 = vmatpush.msrb.mxu0 %v1420_v40  ;;  %v1081_v56 = vpop.f32.mrf.mxu3 }
 0x2a1   : > { %2204 = vmatpush.msra.mxu1 %v1420_v40 }
 0x2a4   : > { %2177 = vmatmul.msk.f32.gmra.mxu2 %vm1428_vm7, %v1069_v13 }
 0x2ac   : > { %2178 = vmatmul.msk.f32.gmra.mxu2 %vm1428_vm7, %v1071_v14 }
 0x2b4   : > { %2179 = vmatmul.msk.f32.gmra.mxu2 %vm1428_vm7, %v1074_v25 }
 0x2bc   : > { %2180 = vmatmul.msk.f32.gmra.mxu2 %vm1428_vm7, %v1076_v15 }
 0x2c4   : > { %2181 = vmatmul.msk.f32.gmra.mxu2 %vm1428_vm7, %v1079_v43 }
 0x2cc   : > { %2182 = vmatmul.msk.f32.gmra.mxu2 %vm1428_vm7, %v1081_v56 }
 0x2d5   : > { %v1389_v63 = vpop.permute.xlu2 %1388 }
 0x2dc   : > { %v1387_v29 = vpop.permute.xlu0 %1386 }
 0x2dd   : > { %v1381_v17 = vpop.permute.xlu2 %1380  ;;  %v1407_v49 = vsel %vm450_vm0, %v3291_v44, %v1387_v29 }
 0x2de   : > { %v1404_v4 = vsel %vm450_vm0, %v3335_v26, %v1381_v17 }
 0x2df   : > { %2167 = vmatmul.msk.f32.vlgmr.msrb.gmra.mxu0 %vm1428_vm7, %v1404_v4 }
 0x2e2   : > { %v1383_v21 = vpop.permute.xlu1 %1382 }
 0x2e3   : > { %v1405_v12 = vsel %vm450_vm0, %v3302_v41, %v1383_v21  ;;  %v1408_v41 = vsel %vm450_vm0, %v3316_v18, %v1389_v63 }
 0x2e4   : > { %2168 = vmatmul.msk.f32.vlgmr.msra.gmra.mxu1 %vm1428_vm7, %v1405_v12 }
 0x2ea   : > { %v1385_v52 = vpop.permute.xlu1 %1384 }
 0x2eb   : > { %v1406_v37 = vsel %vm450_vm0, %v3268_v42, %v1385_v52 }
 0x2ec   : > { %2169 = vmatmul.msk.f32.gmra.mxu1 %vm1428_vm7, %v1406_v37 }
 0x2f2   : > { %v1391_v45 = vpop.permute.xlu1 %1390 }
 0x2f3   : > { %v1409_v42 = vsel %vm450_vm0, %v3313_v31, %v1391_v45 }
 0x2f4   : > { %2170 = vmatmul.msk.f32.gmra.mxu1 %vm1428_vm7, %v1407_v49 }
 0x2fc   : > { %2171 = vmatmul.msk.f32.gmra.mxu1 %vm1428_vm7, %v1408_v41 }
 0x304   : > { %2172 = vmatmul.msk.f32.gmra.mxu1 %vm1428_vm7, %v1409_v42 }
 0x307   : > { %v1393_v16 = vpop.permute.xlu0 %1392 }
 0x308   : > { %v1410_v30 = vsel %vm450_vm0, %v3383_v55, %v1393_v16 }
 0x30c   : > { %2173 = vmatmul.msk.f32.gmra.mxu1 %vm1428_vm7, %v1410_v30 }
 0x30f   : > { %v1395_v44 = vpop.permute.xlu1 %1394 }
 0x310   : > { %v1411_v47 = vsel %vm450_vm0, %v1331_v23, %v1395_v44  ;;  %vm1813_vm0 = vcmask 97344  }
 0x314   : > { %2174 = vmatmul.msk.f32.gmra.mxu1 %vm1428_vm7, %v1411_v47 }
 0x317   : > { %v1535_v1 = vpop.f32.mrf.mxu2 }
 0x31f   : > { %v1538_v18 = vpop.f32.mrf.mxu2 }
 0x327   : > { %v1541_v51 = vpop.f32.mrf.mxu2 }
 0x32f   : > { %v1544_v10 = vpop.f32.mrf.mxu2 }
 0x337   : > { %v1547_v36 = vpop.f32.mrf.mxu2 }
 0x33f   : > { %v1550_v3 = vpop.f32.mrf.mxu2 }
 0x347   : > { %v1553_v40 = vpop.f32.mrf.mxu2 }
 0x34f   : > { %v1556_v15 = vpop.f32.mrf.mxu2 }
 0x35c   : > { %v1470_v31 = vpop.f32.mrf.mxu0 }
 0x35d   : > { %v1536_v38 = vadd.f32 %v1535_v1, %v1470_v31 }
 0x35f   : > { %v3449_v34 = vadd.f32 %v3446_v39, %v1536_v38 }
 0x361   : > { %v1677_v48 = vsel %vm1676_vm8, %v3449_v34, -inf  ;;  %v1572_v35 = vsel %vm1571_vm9, %v3449_v34, -inf  ;;  %v1473_v62 = vpop.f32.mrf.mxu1  ;;  %v1814_v11 = vsel %vm1813_vm0, %v3449_v34, -inf }
 0x362   : > { %1678 = vmax.xlane.f32.xlu2 %v1677_v48  ;;  %1573 = vmax.xlane.f32.xlu0 %v1572_v35  ;;  %v1539_v26 = vadd.f32 %v1538_v18, %v1473_v62 }
 0x364   : > { %v3456_v58 = vadd.f32 %v3446_v39, %v1539_v26 }
 0x366   : > { %v1680_v27 = vsel %vm1676_vm8, %v3456_v58, -inf  ;;  %v1817_v53 = vsel %vm1813_vm0, %v3456_v58, -inf  ;;  %v1575_v0 = vsel %vm1571_vm9, %v3456_v58, -inf }
 0x367   : > { %1681 = vmax.xlane.f32.xlu1 %v1680_v27 }
 0x369   : > { %v1476_v60 = vpop.f32.mrf.mxu1 }
 0x36a   : > { %1815 = vmax.xlane.f32.xlu2 %v1814_v11  ;;  %v1542_v50 = vadd.f32 %v1541_v51, %v1476_v60 }
 0x36c   : > { %v3463_v32 = vadd.f32 %v3446_v39, %v1542_v50 }
 0x36e   : > { %v1683_v24 = vsel %vm1676_vm8, %v3463_v32, -inf  ;;  %v1578_v54 = vsel %vm1571_vm9, %v3463_v32, -inf  ;;  %v1820_v55 = vsel %vm1813_vm0, %v3463_v32, -inf }
 0x36f   : > { %1818 = vmax.xlane.f32.xlu1 %v1817_v53  ;;  %1684 = vmax.xlane.f32.xlu0 %v1683_v24 }
 0x371   : > { %v1479_v6 = vpop.f32.mrf.mxu1 }
 0x372   : > { %1576 = vmax.xlane.f32.xlu2 %v1575_v0  ;;  %v1545_v19 = vadd.f32 %v1544_v10, %v1479_v6 }
 0x374   : > { %v3472_v33 = vadd.f32 %v3446_v39, %v1545_v19 }
 0x376   : > { %v1581_v8 = vsel %vm1571_vm9, %v3472_v33, -inf  ;;  %v1823_v61 = vsel %vm1813_vm0, %v3472_v33, -inf  ;;  %v1686_v23 = vsel %vm1676_vm8, %v3472_v33, -inf }
 0x377   : > { %1579 = vmax.xlane.f32.xlu1 %v1578_v54  ;;  %1582 = vmax.xlane.f32.xlu0 %v1581_v8 }
 0x379   : > { %v1482_v20 = vpop.f32.mrf.mxu1 }
 0x37a   : > { %1821 = vmax.xlane.f32.xlu2 %v1820_v55  ;;  %v1548_v9 = vadd.f32 %v1547_v36, %v1482_v20 }
 0x37c   : > { %v3485_v5 = vadd.f32 %v3446_v39, %v1548_v9 }
 0x37e   : > { %v1689_v59 = vsel %vm1676_vm8, %v3485_v5, -inf  ;;  %v1584_v46 = vsel %vm1571_vm9, %v3485_v5, -inf  ;;  %v1826_v25 = vsel %vm1813_vm0, %v3485_v5, -inf }
 0x37f   : > { %1824 = vmax.xlane.f32.xlu1 %v1823_v61 }
 0x381   : > { %v1485_v28 = vpop.f32.mrf.mxu1 }
 0x382   : > { %1687 = vmax.xlane.f32.xlu2 %v1686_v23  ;;  %v1551_v22 = vadd.f32 %v1550_v3, %v1485_v28 }
 0x384   : > { %v3488_v7 = vadd.f32 %v3446_v39, %v1551_v22 }
 0x386   : > { %v1692_v57 = vsel %vm1676_vm8, %v3488_v7, -inf  ;;  %v1587_v14 = vsel %vm1571_vm9, %v3488_v7, -inf  ;;  %v1829_v63 = vsel %vm1813_vm0, %v3488_v7, -inf }
 0x387   : > { %1690 = vmax.xlane.f32.xlu1 %v1689_v59  ;;  %1693 = vmax.xlane.f32.xlu0 %v1692_v57 }
 0x389   : > { %v1488_v2 = vpop.f32.mrf.mxu1 }
 0x38a   : > { %1585 = vmax.xlane.f32.xlu2 %v1584_v46  ;;  %v1554_v13 = vadd.f32 %v1553_v40, %v1488_v2 }
 0x38c   : > { %v3503_v17 = vadd.f32 %v3446_v39, %v1554_v13 }
 0x38e   : > { %v1832_v12 = vsel %vm1813_vm0, %v3503_v17, -inf  ;;  %v1590_v43 = vsel %vm1571_vm9, %v3503_v17, -inf  ;;  %v1695_v52 = vsel %vm1676_vm8, %v3503_v17, -inf }
 0x38f   : > { %1588 = vmax.xlane.f32.xlu1 %v1587_v14  ;;  %1830 = vmax.xlane.f32.xlu0 %v1829_v63 }
 0x391   : > { %v1491_v4 = vpop.f32.mrf.mxu1 }
 0x392   : > { %1827 = vmax.xlane.f32.xlu2 %v1826_v25  ;;  %v1557_v21 = vadd.f32 %v1556_v15, %v1491_v4 }
 0x394   : > { %v3512_v37 = vadd.f32 %v3446_v39, %v1557_v21 }
 0x396   : > { %v1698_v29 = vsel %vm1676_vm8, %v3512_v37, -inf  ;;  %v1593_v56 = vsel %vm1571_vm9, %v3512_v37, -inf  ;;  %v1835_v49 = vsel %vm1813_vm0, %v3512_v37, -inf }
 0x397   : > { %1833 = vmax.xlane.f32.xlu1 %v1832_v12  ;;  %1591 = vmax.xlane.f32.xlu0 %v1590_v43 }
 0x39a   : > { %1696 = vmax.xlane.f32.xlu2 %v1695_v52 }
 0x39f   : > { %1699 = vmax.xlane.f32.xlu1 %v1698_v29 }
 0x3a2   : > { %1594 = vmax.xlane.f32.xlu2 %v1593_v56 }
 0x3aa   : > { %1836 = vmax.xlane.f32.xlu2 %v1835_v49 }
 0x3d5   : > { %v3520_v41 = vpop.xlane.xlu2 %1678  ;;  %v3526_v30 = vpop.xlane.xlu0 %1573 }
 0x3d6   : > { %v1701_v45 = vsub.f32 %v3449_v34, %v3520_v41  ;;  %v1596_v10 = vsub.f32 %v3449_v34, %v3526_v30 }
 0x3d8   : > { %v1709_v42 = vmul.f32 1.442695, %v1701_v45  ;;  %v1604_v24 = vmul.f32 1.442695, %v1596_v10 }
 0x3da   : > { %2359 = vpow2.f32 %v1709_v42  ;;  %v3524_v16 = vpop.xlane.xlu1 %1681 }
 0x3db   : > { %v1702_v28 = vsub.f32 %v3456_v58, %v3524_v16 }
 0x3dd   : > { %v3528_v44 = vpop.xlane.xlu2 %1815  ;;  %v1711_v57 = vmul.f32 1.442695, %v1702_v28 }
 0x3de   : > { %v1838_v47 = vsub.f32 %v3449_v34, %v3528_v44 }
 0x3e0   : > { %v2360_v1 = vpop.eup %2359  ;;  %v1846_v18 = vmul.f32 1.442695, %v1838_v47 }
 0x3e1   : > { %1733 = vrot.lane.b32.xlu0 %v2360_v1, %s2467_s27 }
 0x3e2   : > { %2361 = vpow2.f32 %v1846_v18  ;;  %v3533_v39 = vpop.xlane.xlu1 %1818  ;;  %v3537_v38 = vpop.xlane.xlu0 %1684 }
 0x3e3   : > { %v1839_v31 = vsub.f32 %v3456_v58, %v3533_v39  ;;  %v1703_v62 = vsub.f32 %v3463_v32, %v3537_v38 }
 0x3e5   : > { %v1848_v48 = vmul.f32 1.442695, %v1839_v31  ;;  %v1713_v51 = vmul.f32 1.442695, %v1703_v62  ;;  %v3543_v11 = vpop.xlane.xlu2 %1576 }
 0x3e6   : > { %v1597_v60 = vsub.f32 %v3456_v58, %v3543_v11 }
 0x3e7   : > { %2363 = vpow2.f32 %v1848_v48 }
 0x3e8   : > { %v2362_v35 = vpop.eup %2361  ;;  %2365 = vpow2.f32 %v1713_v51  ;;  %v1606_v50 = vmul.f32 1.442695, %v1597_v60 }
 0x3e9   : > { %1870 = vrot.lane.b32.xlu1 %v2362_v35, %s2468_s29 }
 0x3ea   : > { %2367 = vpow2.f32 %v1606_v50  ;;  %v3550_v53 = vpop.xlane.xlu1 %1579  ;;  %v3589_v47 = vpop.xlane.xlu0 %1582 }
 0x3eb   : > { %2369 = vpow2.f32 %v1604_v24  ;;  %v1598_v36 = vsub.f32 %v3463_v32, %v3550_v53 }
 0x3ed   : > { %v2364_v26 = vpop.eup %2363  ;;  %v3557_v8 = vpop.xlane.xlu2 %1821  ;;  %v1608_v20 = vmul.f32 1.442695, %v1598_v36 }
 0x3ee   : > { %1872 = vrot.lane.b32.xlu2 %v2364_v26, %s2468_s29  ;;  %v2366_v27 = vpop.eup %2365  ;;  %v1840_v2 = vsub.f32 %v3463_v32, %v3557_v8  ;;  %v1599_v26 = vsub.f32 %v3472_v33, %v3589_v47 }
 0x3ef   : > { %2371 = vpow2.f32 %v1608_v20 }
 0x3f0   : > { %v2368_v0 = vpop.eup %2367  ;;  %v1850_v13 = vmul.f32 1.442695, %v1840_v2  ;;  %v1610_v50 = vmul.f32 1.442695, %v1599_v26 }
 0x3f1   : > { %v1623_v6 = vsel %vm1571_vm9, %v2368_v0, 0.0  ;;  %v2370_v54 = vpop.eup %2369 }
 0x3f2   : > { %v3553_v19 = vpop.xlane.xlu1 %1824  ;;  %v1620_v9 = vsel %vm1571_vm9, %v2370_v54, 0.0 }
 0x3f3   : > { %v1841_v55 = vsub.f32 %v3472_v33, %v3553_v19 }
 0x3f5   : > { %v1852_v61 = vmul.f32 1.442695, %v1841_v55  ;;  %v3562_v3 = vpop.xlane.xlu2 %1687  ;;  %v2372_v23 = vpop.eup %2371 }
 0x3f6   : > { %1737 = vrot.lane.b32.xlu2 %v2366_v27, %s2467_s27  ;;  %v1626_v59 = vsel %vm1571_vm9, %v2372_v23, 0.0  ;;  %v1704_v25 = vsub.f32 %v3472_v33, %v3562_v3 }
 0x3f7   : > { %2373 = vpow2.f32 %v1852_v61 }
 0x3f8   : > { %2375 = vpow2.f32 %v1711_v57  ;;  %v1715_v21 = vmul.f32 1.442695, %v1704_v25 }
 0x3f9   : > { %2377 = vpow2.f32 %v1850_v13 }
 0x3fa   : > { %v3572_v40 = vpop.xlane.xlu1 %1690  ;;  %v3594_v48 = vpop.xlane.xlu0 %1693 }
 0x3fb   : > { %v1705_v14 = vsub.f32 %v3485_v5, %v3572_v40  ;;  %v1706_v35 = vsub.f32 %v3488_v7, %v3594_v48 }
 0x3fd   : > { %v2374_v22 = vpop.eup %2373  ;;  %v3568_v46 = vpop.xlane.xlu2 %1585  ;;  %v1717_v4 = vmul.f32 1.442695, %v1705_v14  ;;  %v1719_v62 = vmul.f32 1.442695, %v1706_v35 }
 0x3fe   : > { %v2376_v63 = vpop.eup %2375  ;;  %v1600_v56 = vsub.f32 %v3485_v5, %v3568_v46 }
 0x3ff   : > { %2379 = vpow2.f32 %v1717_v4  ;;  %v2378_v43 = vpop.eup %2377 }
 0x400   : > { %2381 = vpow2.f32 %v1715_v21  ;;  %v1612_v45 = vmul.f32 1.442695, %v1600_v56 }
 0x402   : > { %v3592_v31 = vpop.xlane.xlu1 %1588  ;;  %v3612_v61 = vpop.xlane.xlu0 %1830 }
 0x403   : > { %v1601_v60 = vsub.f32 %v3488_v7, %v3592_v31 }
 0x405   : > { %v3579_v15 = vpop.xlane.xlu2 %1827  ;;  %v2380_v29 = vpop.eup %2379  ;;  %v1614_v24 = vmul.f32 1.442695, %v1601_v60 }
 0x406   : > { %v1842_v12 = vsub.f32 %v3485_v5, %v3579_v15  ;;  %v2382_v49 = vpop.eup %2381 }
 0x408   : > { %v1854_v52 = vmul.f32 1.442695, %v1842_v12 }
 0x40a   : > { %2383 = vpow2.f32 %v1854_v52  ;;  %v3598_v51 = vpop.xlane.xlu1 %1833 }
 0x40b   : > { %1624 = vadd.xlane.f32.xlu0 %v1623_v6  ;;  %2385 = vpow2.f32 %v1612_v45  ;;  %v1844_v27 = vsub.f32 %v3503_v17, %v3598_v51  ;;  %v3634_v45 = vpop.xlane.xlu0 %1591 }
 0x40c   : > { %2387 = vpow2.f32 %v1719_v62  ;;  %v1602_v60 = vsub.f32 %v3503_v17, %v3634_v45 }
 0x40d   : > { %v1858_v10 = vmul.f32 1.442695, %v1844_v27  ;;  %2389 = vpow2.f32 %v1610_v50  ;;  %v3607_v36 = vpop.xlane.xlu2 %1696 }
 0x40e   : > { %v1707_v14 = vsub.f32 %v3503_v17, %v3607_v36 }
 0x40f   : > { %2391 = vpow2.f32 %v1858_v10 }
 0x410   : > { %v2384_v42 = vpop.eup %2383  ;;  %2393 = vpow2.f32 %v1614_v24  ;;  %v1721_v25 = vmul.f32 1.442695, %v1707_v14  ;;  %v1616_v24 = vmul.f32 1.442695, %v1602_v60 }
 0x411   : > { %v2386_v1 = vpop.eup %2385 }
 0x412   : > { %v1632_v18 = vsel %vm1571_vm9, %v2386_v1, 0.0  ;;  %v2388_v0 = vpop.eup %2387  ;;  %v3616_v28 = vpop.xlane.xlu1 %1699 }
 0x413   : > { %1621 = vadd.xlane.f32.xlu1 %v1620_v9  ;;  %v2390_v6 = vpop.eup %2389 }
 0x414   : > { %v1629_v20 = vsel %vm1571_vm9, %v2390_v6, 0.0 }
 0x415   : > { %v2392_v54 = vpop.eup %2391  ;;  %v3614_v23 = vpop.xlane.xlu2 %1594 }
 0x416   : > { %v2394_v55 = vpop.eup %2393  ;;  %v1603_v4 = vsub.f32 %v3512_v37, %v3614_v23 }
 0x417   : > { %v1635_v9 = vsel %vm1571_vm9, %v2394_v55, 0.0 }
 0x418   : > { %v1618_v52 = vmul.f32 1.442695, %v1603_v4 }
 0x41d   : > { %v3622_v13 = vpop.xlane.xlu2 %1836 }
 0x41f   : > { %1876 = vrot.lane.b32.xlu0 %v2374_v22, %s2468_s29  ;;  %1627 = vadd.xlane.f32.xlu2 %v1626_v59  ;;  %v1843_v22 = vsub.f32 %v3488_v7, %v3612_v61  ;;  %v1708_v59 = vsub.f32 %v3512_v37, %v3616_v28 }
 0x421   : > { %v1856_v57 = vmul.f32 1.442695, %v1843_v22  ;;  %v1723_v2 = vmul.f32 1.442695, %v1708_v59 }
 0x423   : > { %2395 = vpow2.f32 %v1856_v57 }
 0x424   : > { %2397 = vpow2.f32 %v1723_v2 }
 0x425   : > { %2399 = vpow2.f32 %v1721_v25 }
 0x429   : > { %v2396_v21 = vpop.eup %2395 }
 0x42c   : > { %1735 = vrot.lane.b32.xlu1 %v2376_v63, %s2467_s27  ;;  %v1845_v63 = vsub.f32 %v3512_v37, %v3622_v13 }
 0x42e   : > { %v1860_v12 = vmul.f32 1.442695, %v1845_v63 }
 0x430   : > { %2401 = vpow2.f32 %v1860_v12 }
 0x431   : > { %2403 = vpow2.f32 %v1618_v52 }
 0x432   : > { %2405 = vpow2.f32 %v1616_v24 }
 0x434   : > { %1874 = vrot.lane.b32.xlu1 %v2378_v43, %s2468_s29  ;;  %v2398_v43 = vpop.eup %2397 }
 0x437   : > { %1741 = vrot.lane.b32.xlu2 %v2380_v29, %s2467_s27  ;;  %v2400_v29 = vpop.eup %2399 }
 0x438   : > { %v2402_v56 = vpop.eup %2401 }
 0x43c   : > { %1739 = vrot.lane.b32.xlu1 %v2382_v49, %s2467_s27  ;;  %v2404_v49 = vpop.eup %2403 }
 0x43d   : > { %v1641_v1 = vsel %vm1571_vm9, %v2404_v49, 0.0  ;;  %v2406_v55 = vpop.eup %2405 }
 0x43f   : > { %1878 = vrot.lane.b32.xlu2 %v2384_v42, %s2468_s29 }
 0x448   : > { %v1873_v10 = vpop.permute.xlu2 %1872 }
 0x449   : > { %1633 = vadd.xlane.f32.xlu0 %v1632_v18  ;;  %v1897_v63 = vsel %vm1571_vm9, %v1873_v10, 0.0 }
 0x453   : > { %v1734_v18 = vpop.permute.xlu0 %1733 }
 0x454   : > { %v1757_v57 = vsel %vm1571_vm9, %v1734_v18, 0.0 }
 0x45b   : > { %v1871_v42 = vpop.permute.xlu1 %1870 }
 0x45c   : > { %v1894_v62 = vsel %vm1571_vm9, %v1871_v42, 0.0 }
 0x45d   : > { %1743 = vrot.lane.b32.xlu0 %v2388_v0, %s2467_s27 }
 0x465   : > { %1882 = vrot.lane.b32.xlu0 %v2392_v54, %s2468_s29  ;;  %v1738_v54 = vpop.permute.xlu2 %1737 }
 0x466   : > { %1630 = vadd.xlane.f32.xlu1 %v1629_v20  ;;  %v1638_v20 = vsel %vm1571_vm9, %v2406_v55, 0.0 }
 0x468   : > { %1636 = vadd.xlane.f32.xlu2 %v1635_v9  ;;  %v1763_v9 = vsel %vm1571_vm9, %v1738_v54, 0.0 }
 0x47e   : > { %v3638_v26 = vpop.xlane.xlu0 %1624 }
 0x47f   : > { %1880 = vrot.lane.b32.xlu1 %v2396_v21, %s2468_s29 }
 0x480   : > { %1747 = vrot.lane.b32.xlu2 %v2398_v43, %s2467_s27 }
 0x486   : > { %v1622_v35 = vpop.xlane.xlu1 %1621 }
 0x487   : > { %1745 = vrot.lane.b32.xlu1 %v2400_v29, %s2467_s27  ;;  %2407 = vlog2.f32 %v1622_v35 }
 0x488   : > { %1884 = vrot.lane.b32.xlu2 %v2402_v56, %s2468_s29 }
 0x48f   : > { %1642 = vadd.xlane.f32.xlu0 %v1641_v1 }
 0x491   : > { %v1877_v0 = vpop.permute.xlu0 %1876 }
 0x492   : > { %v1903_v6 = vsel %vm1571_vm9, %v1877_v0, 0.0  ;;  %v1628_v22 = vpop.xlane.xlu2 %1627 }
 0x497   : > { %1895 = vadd.xlane.f32.xlu0 %v1894_v62 }
 0x49a   : > { %v1742_v14 = vpop.permute.xlu2 %1741 }
 0x49b   : > { %v1769_v25 = vsel %vm1571_vm9, %v1742_v14, 0.0 }
 0x49e   : > { %v1736_v27 = vpop.permute.xlu1 %1735 }
 0x49f   : > { %v1760_v50 = vsel %vm1571_vm9, %v1736_v27, 0.0 }
 0x4a0   : > { %1761 = vadd.xlane.f32.xlu0 %v1760_v50 }
 0x4a2   : > { %v1879_v43 = vpop.permute.xlu2 %1878 }
 0x4a3   : > { %v1906_v29 = vsel %vm1571_vm9, %v1879_v43, 0.0 }
 0x4a6   : > { %v1875_v59 = vpop.permute.xlu1 %1874 }
 0x4a7   : > { %v1900_v2 = vsel %vm1571_vm9, %v1875_v59, 0.0 }
 0x4a8   : > { %1904 = vadd.xlane.f32.xlu0 %v1903_v6 }
 0x4ae   : > { %v1740_v4 = vpop.permute.xlu1 %1739 }
 0x4af   : > { %v1766_v12 = vsel %vm1571_vm9, %v1740_v4, 0.0 }
 0x4b1   : > { %1639 = vadd.xlane.f32.xlu1 %v1638_v20  ;;  %1764 = vadd.xlane.f32.xlu2 %v1763_v9 }
 0x4b9   : > { %1758 = vadd.xlane.f32.xlu1 %v1757_v57  ;;  %1901 = vadd.xlane.f32.xlu2 %v1900_v2  ;;  %v2408_v57 = vpop.eup %2407 }
 0x4ba   : > { %v1645_v43 = vmul.f32 0.6931472, %v2408_v57 }
 0x4bc   : > { %v3650_v21 = vpop.xlane.xlu0 %1633 }
 0x4c1   : > { %1898 = vadd.xlane.f32.xlu1 %v1897_v63  ;;  %1770 = vadd.xlane.f32.xlu2 %v1769_v25 }
 0x4c9   : > { %1767 = vadd.xlane.f32.xlu1 %v1766_v12 }
 0x4cf   : > { %v1744_v52 = vpop.permute.xlu0 %1743 }
 0x4d0   : > { %v1772_v56 = vsel %vm1571_vm9, %v1744_v52, 0.0 }
 0x4d1   : > { %1907 = vadd.xlane.f32.xlu1 %v1906_v29  ;;  %1773 = vadd.xlane.f32.xlu0 %v1772_v56 }
 0x4d7   : > { %v1883_v49 = vpop.permute.xlu0 %1882 }
 0x4d8   : > { %v1912_v42 = vsel %vm1571_vm9, %v1883_v49, 0.0 }
 0x4d9   : > { %1913 = vadd.xlane.f32.xlu0 %v1912_v42  ;;  %v1631_v27 = vpop.xlane.xlu1 %1630  ;;  %v1660_v42 = vadd.f32 %v1645_v43, %v3526_v30 }
 0x4db   : > { %v3656_v1 = vpop.xlane.xlu2 %1636 }
 0x4e3   : > { %v1748_v18 = vpop.permute.xlu2 %1747 }
 0x4e4   : > { %v1778_v62 = vsel %vm1571_vm9, %v1748_v18, 0.0 }
 0x4e5   : > { %1779 = vadd.xlane.f32.xlu2 %v1778_v62 }
 0x4eb   : > { %v1885_v0 = vpop.permute.xlu2 %1884 }
 0x4ec   : > { %v1915_v6 = vsel %vm1571_vm9, %v1885_v0, 0.0 }
 0x4f1   : > { %v1881_v60 = vpop.permute.xlu1 %1880 }
 0x4f2   : > { %v1909_v50 = vsel %vm1571_vm9, %v1881_v60, 0.0 }
 0x4f3   : > { %1910 = vadd.xlane.f32.xlu2 %v1909_v50 }
 0x4f9   : > { %v1746_v10 = vpop.permute.xlu1 %1745 }
 0x4fa   : > { %v1775_v24 = vsel %vm1571_vm9, %v1746_v10, 0.0 }
 0x4fb   : > { %1776 = vadd.xlane.f32.xlu1 %v1775_v24 }
 0x502   : > { %v3662_v54 = vpop.xlane.xlu0 %1642 }
 0x503   : > { %1916 = vadd.xlane.f32.xlu1 %v1915_v6 }
 0x50a   : > { %v1896_v55 = vpop.xlane.xlu0 %1895 }
 0x513   : > { %v1762_v59 = vpop.xlane.xlu0 %1761 }
 0x51b   : > { %v1905_v24 = vpop.xlane.xlu0 %1904 }
 0x524   : > { %v3664_v20 = vpop.xlane.xlu1 %1639  ;;  %v1765_v9 = vpop.xlane.xlu2 %1764 }
 0x525   : > { %2409 = vlog2.f32 %v1765_v9  ;;  %v1668_v9 = vsub.f32 %v3449_v34, %v1660_v42 }
 0x526   : > { %2411 = vlog2.f32 %v1628_v22 }
 0x527   : > { %2413 = vlog2.f32 %v1896_v55 }
 0x528   : > { %2415 = vlog2.f32 %v3638_v26 }
 0x529   : > { %2417 = vlog2.f32 %v1762_v59 }
 0x52b   : > { %v2410_v2 = vpop.eup %2409 }
 0x52c   : > { %v1759_v14 = vpop.xlane.xlu1 %1758  ;;  %v2412_v63 = vpop.eup %2411  ;;  %v1786_v12 = vmul.f32 0.6931472, %v2410_v2 }
 0x52d   : > { %2419 = vlog2.f32 %v1759_v14  ;;  %v1902_v25 = vpop.xlane.xlu2 %1901  ;;  %v2414_v4 = vpop.eup %2413  ;;  %v1649_v52 = vmul.f32 0.6931472, %v2412_v63 }
 0x52e   : > { %2421 = vlog2.f32 %v1902_v25  ;;  %v2416_v35 = vpop.eup %2415  ;;  %v1919_v29 = vmul.f32 0.6931472, %v2414_v4  ;;  %v1799_v22 = vadd.f32 %v1786_v12, %v3537_v38 }
 0x52f   : > { %v2418_v56 = vpop.eup %2417  ;;  %v1662_v18 = vadd.f32 %v1649_v52, %v3550_v53  ;;  %v1647_v38 = vmul.f32 0.6931472, %v2416_v35 }
 0x530   : > { %v1934_v50 = vadd.f32 %v1919_v29, %v3528_v44  ;;  %v1784_v10 = vmul.f32 0.6931472, %v2418_v56  ;;  %v1807_v6 = vsub.f32 %v3463_v32, %v1799_v22 }
 0x531   : > { %v1670_v53 = vsub.f32 %v3463_v32, %v1662_v18  ;;  %v1661_v63 = vadd.f32 %v1647_v38, %v3543_v11 }
 0x532   : > { %v1798_v59 = vadd.f32 %v1784_v10, %v3524_v16 }
 0x533   : > { %v2420_v49 = vpop.eup %2419  ;;  %v1952_v57 = vsel %vm1571_vm9, %v1670_v53, %v1807_v6  ;;  %v1669_v52 = vsub.f32 %v3456_v58, %v1661_v63 }
 0x534   : > { %v2422_v26 = vpop.eup %2421  ;;  %v1782_v62 = vmul.f32 0.6931472, %v2420_v49  ;;  %v1899_v60 = vpop.xlane.xlu1 %1898 }
 0x535   : > { %v1923_v0 = vmul.f32 0.6931472, %v2422_v26  ;;  %2423 = vlog2.f32 %v1899_v60 }
 0x536   : > { %v1797_v55 = vadd.f32 %v1782_v62, %v3520_v41  ;;  %2425 = vlog2.f32 %v1631_v27  ;;  %v1942_v41 = vsub.f32 %v3449_v34, %v1934_v50  ;;  %v1771_v27 = vpop.xlane.xlu2 %1770 }
 0x537   : > { %v1936_v30 = vadd.f32 %v1923_v0, %v3557_v8  ;;  %2427 = vlog2.f32 %v1905_v24 }
 0x538   : > { %v1805_v44 = vsub.f32 %v3449_v34, %v1797_v55  ;;  %2429 = vlog2.f32 %v1771_v27 }
 0x539   : > { %v1944_v8 = vsub.f32 %v3463_v32, %v1936_v30  ;;  %v1806_v32 = vsub.f32 %v3456_v58, %v1798_v59 }
 0x53a   : > { %v1950_v2 = vsel %vm1571_vm9, %v1668_v9, %v1805_v44 }
 0x53b   : > { %v2424_v14 = vpop.eup %2423  ;;  %v1959_v25 = vsel %vm1958_vm10, %v1950_v2, %v1942_v41  ;;  %v1961_v4 = vsel %vm1958_vm10, %v1952_v57, %v1944_v8  ;;  %v1951_v56 = vsel %vm1571_vm9, %v1669_v52, %v1806_v32 }
 0x53c   : > { %1968 = vst.msk [vmem:[%s3681_s14] sm:$0xff] %vm1967_vm11, %v1959_v25  ;;  %v1921_v34 = vmul.f32 0.6931472, %v2424_v14  ;;  %v1768_v16 = vpop.xlane.xlu1 %1767  ;;  %v2426_v12 = vpop.eup %2425 }
 0x53d   : > { %1970 = vst.msk [vmem:[%s3681_s14 + $0x10] sm:$0xff] %vm1967_vm11, %v1961_v4  ;;  %2431 = vlog2.f32 %v1768_v16  ;;  %v2428_v43 = vpop.eup %2427  ;;  %v1651_v35 = vmul.f32 0.6931472, %v2426_v12 }
 0x53e   : > { %2433 = vlog2.f32 %v3650_v21  ;;  %v1935_v11 = vadd.f32 %v1921_v34, %v3533_v39  ;;  %v1925_v22 = vmul.f32 0.6931472, %v2428_v43  ;;  %v2430_v49 = vpop.eup %2429 }
 0x53f   : > { %v1663_v62 = vadd.f32 %v1651_v35, %v3589_v47  ;;  %v1790_v50 = vmul.f32 0.6931472, %v2430_v49 }
 0x540   : > { %v1943_v29 = vsub.f32 %v3456_v58, %v1935_v11  ;;  %v1937_v60 = vadd.f32 %v1925_v22, %v3553_v19 }
 0x541   : > { %v1671_v24 = vsub.f32 %v3472_v33, %v1663_v62  ;;  %v1801_v55 = vadd.f32 %v1790_v50, %v3572_v40 }
 0x542   : > { %v1960_v42 = vsel %vm1958_vm10, %v1951_v56, %v1943_v29  ;;  %v1945_v6 = vsub.f32 %v3472_v33, %v1937_v60 }
 0x543   : > { %v2432_v26 = vpop.eup %2431  ;;  %1969 = vst.msk [vmem:[%s3681_s14 + $0x8] sm:$0xff] %vm1967_vm11, %v1960_v42  ;;  %v1809_v30 = vsub.f32 %v3485_v5, %v1801_v55 }
 0x544   : > { %v2434_v18 = vpop.eup %2433  ;;  %v1788_v21 = vmul.f32 0.6931472, %v2432_v26  ;;  %v1908_v39 = vpop.xlane.xlu1 %1907 }
 0x545   : > { %2435 = vlog2.f32 %v1908_v39  ;;  %v1653_v10 = vmul.f32 0.6931472, %v2434_v18 }
 0x546   : > { %v1800_v58 = vadd.f32 %v1788_v21, %v3562_v3 }
 0x547   : > { %v1664_v9 = vadd.f32 %v1653_v10, %v3568_v46  ;;  %v1774_v46 = vpop.xlane.xlu0 %1773 }
 0x548   : > { %v1808_v0 = vsub.f32 %v3472_v33, %v1800_v58  ;;  %2437 = vlog2.f32 %v1774_v46 }
 0x549   : > { %v1672_v44 = vsub.f32 %v3485_v5, %v1664_v9  ;;  %2439 = vlog2.f32 %v3656_v1 }
 0x54a   : > { %v1953_v47 = vsel %vm1571_vm9, %v1671_v24, %v1808_v0 }
 0x54b   : > { %v2436_v38 = vpop.eup %2435  ;;  %v1962_v19 = vsel %vm1958_vm10, %v1953_v47, %v1945_v6  ;;  %v1954_v40 = vsel %vm1571_vm9, %v1672_v44, %v1809_v30 }
 0x54c   : > { %1971 = vst.msk [vmem:[%s3681_s14 + $0x18] sm:$0xff] %vm1967_vm11, %v1962_v19  ;;  %v1927_v3 = vmul.f32 0.6931472, %v2436_v38 }
 0x54e   : > { %v1938_v53 = vadd.f32 %v1927_v3, %v3579_v15  ;;  %v2438_v8 = vpop.eup %2437 }
 0x54f   : > { %v2440_v27 = vpop.eup %2439  ;;  %v1792_v2 = vmul.f32 0.6931472, %v2438_v8  ;;  %v1914_v15 = vpop.xlane.xlu0 %1913 }
 0x550   : > { %v1946_v33 = vsub.f32 %v3485_v5, %v1938_v53  ;;  %v1655_v14 = vmul.f32 0.6931472, %v2440_v27 }
 0x551   : > { %v1802_v5 = vadd.f32 %v1792_v2, %v3594_v48 }
 0x552   : > { %v1963_v41 = vsel %vm1958_vm10, %v1954_v40, %v1946_v33  ;;  %v1665_v25 = vadd.f32 %v1655_v14, %v3592_v31 }
 0x553   : > { %1972 = vst.msk [vmem:[%s3681_s14 + $0x20] sm:$0xff] %vm1967_vm11, %v1963_v41  ;;  %v1810_v16 = vsub.f32 %v3488_v7, %v1802_v5 }
 0x558   : > { %v1780_v59 = vpop.xlane.xlu2 %1779 }
 0x566   : > { %v1911_v57 = vpop.xlane.xlu2 %1910 }
 0x567   : > { %2441 = vlog2.f32 %v1911_v57 }
 0x568   : > { %2443 = vlog2.f32 %v3664_v20  ;;  %v1673_v20 = vsub.f32 %v3488_v7, %v1665_v25 }
 0x569   : > { %2445 = vlog2.f32 %v1914_v15 }
 0x56a   : > { %2447 = vlog2.f32 %v1780_v59  ;;  %v1955_v31 = vsel %vm1571_vm9, %v1673_v20, %v1810_v16 }
 0x56d   : > { %v2442_v63 = vpop.eup %2441 }
 0x56e   : > { %v1929_v4 = vmul.f32 0.6931472, %v2442_v63  ;;  %v1777_v34 = vpop.xlane.xlu1 %1776  ;;  %v2444_v1 = vpop.eup %2443 }
 0x56f   : > { %2449 = vlog2.f32 %v1777_v34  ;;  %v2446_v12 = vpop.eup %2445  ;;  %v1657_v43 = vmul.f32 0.6931472, %v2444_v1 }
 0x570   : > { %2451 = vlog2.f32 %v3662_v54  ;;  %v1939_v32 = vadd.f32 %v1929_v4, %v3612_v61  ;;  %v1931_v11 = vmul.f32 0.6931472, %v2446_v12  ;;  %v2448_v52 = vpop.eup %2447 }
 0x571   : > { %v1666_v22 = vadd.f32 %v1657_v43, %v3634_v45  ;;  %v1796_v42 = vmul.f32 0.6931472, %v2448_v52 }
 0x572   : > { %v1947_v48 = vsub.f32 %v3488_v7, %v1939_v32  ;;  %v1940_v49 = vadd.f32 %v1931_v11, %v3598_v51 }
 0x573   : > { %v1674_v18 = vsub.f32 %v3503_v17, %v1666_v22  ;;  %v1804_v39 = vadd.f32 %v1796_v42, %v3616_v28 }
 0x574   : > { %v1964_v35 = vsel %vm1958_vm10, %v1955_v31, %v1947_v48  ;;  %v1948_v21 = vsub.f32 %v3503_v17, %v1940_v49 }
 0x575   : > { %v2450_v29 = vpop.eup %2449  ;;  %1973 = vst.msk [vmem:[%s3681_s14 + $0x28] sm:$0xff] %vm1967_vm11, %v1964_v35  ;;  %v1812_v58 = vsub.f32 %v3512_v37, %v1804_v39 }
 0x576   : > { %v2452_v56 = vpop.eup %2451  ;;  %v1794_v54 = vmul.f32 0.6931472, %v2450_v29  ;;  %v1917_v61 = vpop.xlane.xlu1 %1916 }
 0x577   : > { %2453 = vlog2.f32 %v1917_v61  ;;  %v1659_v26 = vmul.f32 0.6931472, %v2452_v56 }
 0x578   : > { %v1803_v7 = vadd.f32 %v1794_v54, %v3607_v36 }
 0x579   : > { %v1667_v50 = vadd.f32 %v1659_v26, %v3614_v23 }
 0x57a   : > { %v1811_v62 = vsub.f32 %v3503_v17, %v1803_v7 }
 0x57b   : > { %v1675_v24 = vsub.f32 %v3512_v37, %v1667_v50 }
 0x57c   : > { %v1956_v45 = vsel %vm1571_vm9, %v1674_v18, %v1811_v62 }
 0x57d   : > { %v2454_v60 = vpop.eup %2453  ;;  %v1965_v51 = vsel %vm1958_vm10, %v1956_v45, %v1948_v21  ;;  %v1957_v28 = vsel %vm1571_vm9, %v1675_v24, %v1812_v58 }
 0x57e   : > { %1974 = vst.msk [vmem:[%s3681_s14 + $0x30] sm:$0xff] %vm1967_vm11, %v1965_v51  ;;  %v1933_v36 = vmul.f32 0.6931472, %v2454_v60 }
 0x580   : > { %v1941_v10 = vadd.f32 %v1933_v36, %v3622_v13 }
 0x582   : > { %v1949_v17 = vsub.f32 %v3512_v37, %v1941_v10 }
 0x584   : > { %v1966_v0 = vsel %vm1958_vm10, %v1957_v28, %v1949_v17 }
 0x585   : > { %1975 = vst.msk [vmem:[%s3681_s14 + $0x38] sm:$0xff] %vm1967_vm11, %v1966_v0 }
 0x586 PF: > { %s23_s15 = sadd.s32 1, %s2463_s15  }
 0x587   : > { %p20_p4 = scmp.ge.s32.totalorder %s23_s15, 4  }
 0x589   :  { %22 = sbr.rel (!%p20_p4) target bundleno = 3 (0x3), region = 109 }

</bundles_post_ra>
